<compile_context>
chip_gen: v7x
topology: tpu7x:2x2x1
jax: 0.10.0
libtpu: 0.0.40
codegen_flags: <defaults>
</compile_context>

<pallas_src>
import functools

import jax
import jax.numpy as jnp
from jax.experimental import pallas as pl
from jax.experimental.pallas import tpu as pltpu


# ----------------------------------------------------------------------------
# helpers
# ----------------------------------------------------------------------------
def _lane_tile(m, target=1024):
    """Largest lane tile (multiple of 128, <= target) dividing m, else m."""
    if m <= target:
        return m
    t = target
    while t >= 128:
        if m % t == 0:
            return t
        t //= 2
    return m


def _vmem_limit(block_bytes, scratch_bytes):
    """Right-sized VMEM request: 2x (double-buffered blocks) + scratch + slack."""
    need = 2 * block_bytes + scratch_bytes + (4 << 20)
    return int(min(40 << 20, max(24 << 20, need)))


# ----------------------------------------------------------------------------
# ConvTranspose2d(k=4, s=2, p=1) sub-pixel decomposition.
# O[:, 2a+ph, 2b+pw] = sum over 4 taps; each tap reads a (r, c)-shifted view of
# the 1-padded input and one (kh, kw) slice of the weight:
#   row options (r_shift, kh):  ph=0 -> (1,1),(0,3);  ph=1 -> (1,2),(2,0)
#   col options (c_shift, kw):  pw=0 -> (1,1),(0,3);  pw=1 -> (1,2),(2,0)
# view index = 3*r + c  (all 9 shifts in {0,1,2}^2 are used across phases).
# ----------------------------------------------------------------------------
_ROW = {0: ((1, 1), (0, 3)), 1: ((1, 2), (2, 0))}
_COL = {0: ((1, 1), (0, 3)), 1: ((1, 2), (2, 0))}


def _make_phase_taps():
    phases = []
    for ph in (0, 1):
        for pw in (0, 1):                       # phase index = 2*ph + pw
            taps = []
            for r, kh in _ROW[ph]:
                for c, kw in _COL[pw]:
                    taps.append((3 * r + c, kh, kw))
            phases.append(tuple(taps))
    return tuple(phases)


_PHASE_TAPS = _make_phase_taps()                # [phase][tap] -> (view, kh, kw)
_N_PHASES = 4
_N_TAPS = 4


# ----------------------------------------------------------------------------
# Pallas kernel 1: per-(phase, tap) conv matmul with f32 accumulation,
# bf16 output, optional fused per-phase BN sum/sumsq stats.
# grid = (phase, lane_tile, tap); tap is the innermost reduction axis.
# ----------------------------------------------------------------------------
def _conv_tap_kernel(tap_tbl_ref, w_ref, a_ref, *rest, with_stats):
    del tap_tbl_ref                         # only used inside the index_maps
    if with_stats:
        o_ref, sum_ref, sq_ref, acc_ref = rest
    else:
        o_ref, acc_ref = rest

    t = pl.program_id(2)

    @pl.when(t == 0)
    def _zero_acc():
        acc_ref[...] = jnp.zeros_like(acc_ref)

    # Operands live in VMEM as bf16; upcast in-register and accumulate in f32.
    # (Avoids the unsupported bf16 x bf16 -> f32 dot on the interpret/CPU path;
    # the memory traffic stays bf16 either way.)
    acc_ref[...] += jnp.dot(
        w_ref[0, 0].astype(jnp.float32),
        a_ref[0].astype(jnp.float32),
        preferred_element_type=jnp.float32)

    if with_stats:
        @pl.when(jnp.logical_and(pl.program_id(1) == 0, t == 0))
        def _zero_stats():
            sum_ref[...] = jnp.zeros_like(sum_ref)
            sq_ref[...] = jnp.zeros_like(sq_ref)

    @pl.when(t == pl.num_programs(2) - 1)
    def _finalize():
        acc = acc_ref[...]
        o_ref[0] = acc.astype(o_ref.dtype)
        if with_stats:
            sum_ref[0] += jnp.sum(acc, axis=1, keepdims=True)
            sq_ref[0] += jnp.sum(acc * acc, axis=1, keepdims=True)


def conv_phase_matmul(h, w, with_stats):
    """h: (Cin, N, H, W) bf16; w: (Cin, Cout, 4, 4) f32 (PyTorch layout).

    Returns the (4, Cout, N*H*W) bf16 phase stack; if with_stats also returns
    per-phase per-channel (sum, sumsq) f32 stats of shape (4, Cout, 1).
    """
    cin, n, hh, ww = h.shape
    cout = w.shape[1]
    m = n * hh * ww
    tm = _lane_tile(m)

    # 9 unique shifted views of the 1-padded input (deduped im2col).
    hp = jnp.pad(h, ((0, 0), (0, 0), (1, 1), (1, 1)))
    views = jnp.stack([hp[:, :, r:r + hh, c:c + ww].reshape(cin, m)
                       for r in range(3) for c in range(3)])      # (9, Cin, M)

    wb = w.astype(jnp.bfloat16)
    w_stack = jnp.stack([
        jnp.stack([wb[:, :, kh, kw].T for (_, kh, kw) in _PHASE_TAPS[p]])
        for p in range(_N_PHASES)
    ])                                                            # (4, 4, Cout, Cin)
    view_tbl = jnp.asarray(
        [[v for (v, _, _) in _PHASE_TAPS[p]] for p in range(_N_PHASES)],
        dtype=jnp.int32)                                          # (4, 4)

    grid = (_N_PHASES, m // tm, _N_TAPS)

    main_shape = jax.ShapeDtypeStruct((_N_PHASES, cout, m), jnp.bfloat16)
    main_spec = pl.BlockSpec((1, cout, tm), lambda p, mi, t, tbl: (p, 0, mi))
    if with_stats:
        stat_shape = jax.ShapeDtypeStruct((_N_PHASES, cout, 1), jnp.float32)
        stat_spec = pl.BlockSpec((1, cout, 1), lambda p, mi, t, tbl: (p, 0, 0))
        out_shape = (main_shape, stat_shape, stat_shape)
        out_specs = (main_spec, stat_spec, stat_spec)
    else:
        out_shape = main_shape
        out_specs = main_spec

    block_bytes = (cout * cin * 2 + cin * tm * 2 + cout * tm * 2 + 2 * cout * 4)
    cost = pl.CostEstimate(
        flops=2 * _N_PHASES * _N_TAPS * cout * cin * m,
        transcendentals=0,
        bytes_accessed=(2 * _N_PHASES * _N_TAPS * cin * m
                        + 2 * _N_PHASES * _N_TAPS * cout * cin
                        + 2 * _N_PHASES * cout * m
                        + 8 * _N_PHASES * cout))

    return pl.pallas_call(
        functools.partial(_conv_tap_kernel, with_stats=with_stats),
        out_shape=out_shape,
        grid_spec=pltpu.PrefetchScalarGridSpec(
            num_scalar_prefetch=1,          # (4,4) int32 (phase, tap) -> view
            grid=grid,
            in_specs=[
                pl.BlockSpec((1, 1, cout, cin), lambda p, mi, t, tbl: (p, t, 0, 0)),
                pl.BlockSpec((1, cin, tm), lambda p, mi, t, tbl: (tbl[p, t], 0, mi)),
            ],
            out_specs=out_specs,
            scratch_shapes=[pltpu.VMEM((cout, tm), jnp.float32)],
        ),
        compiler_params=pltpu.CompilerParams(
            # phases are fully independent (stats are per-phase) -> megacore
            # parallel; lane tiles and the tap reduction stay sequential.
            dimension_semantics=("parallel", "arbitrary", "arbitrary"),
            vmem_limit_bytes=_vmem_limit(block_bytes, cout * tm * 4),
        ),
        cost_estimate=cost,
    )(view_tbl, w_stack, views)


# ----------------------------------------------------------------------------
# Pallas kernel 2: lane-dense per-channel scale/shift + activation
#   (BatchNorm-apply + ReLU, or bias + Tanh).  Phase axis collapsed into the
#   block so the grid only runs over lane tiles.
# ----------------------------------------------------------------------------
def _scale_shift_act_kernel(x_ref, s_ref, b_ref, o_ref, *, act):
    y = x_ref[...].astype(jnp.float32) * s_ref[...] + b_ref[...]
    if act == "relu":
        y = jnp.maximum(y, 0.0)
    else:  # "tanh"
        y = jnp.tanh(y)
    o_ref[...] = y.astype(o_ref.dtype)


def scale_shift_act(x_stack, scale, shift, act, out_dtype):
    """x_stack: (P, C, M) bf16/f32; scale/shift: (C, 1) f32 (resident)."""
    p, c, m = x_stack.shape
    tm = _lane_tile(m)
    return pl.pallas_call(
        functools.partial(_scale_shift_act_kernel, act=act),
        out_shape=jax.ShapeDtypeStruct((p, c, m), out_dtype),
        grid_spec=pltpu.PrefetchScalarGridSpec(
            num_scalar_prefetch=0,
            grid=(m // tm,),
            in_specs=[pl.BlockSpec((p, c, tm), lambda mi: (0, 0, mi)),
                      pl.BlockSpec((c, 1), lambda mi: (0, 0)),
                      pl.BlockSpec((c, 1), lambda mi: (0, 0))],
            out_specs=pl.BlockSpec((p, c, tm), lambda mi: (0, 0, mi)),
        ),
        compiler_params=pltpu.CompilerParams(
            dimension_semantics=("parallel",),
        ),
    )(x_stack, scale, shift)


# ----------------------------------------------------------------------------
# Pallas kernel 3: small dense matmul with the large axis on lanes (layer 0).
# ----------------------------------------------------------------------------
def _matmul_kernel(a_ref, b_ref, o_ref):
    o_ref[...] = jnp.dot(
        a_ref[...].astype(jnp.float32), b_ref[...].astype(jnp.float32),
        preferred_element_type=jnp.float32).astype(o_ref.dtype)


def matmul_lane_dense(a, b, out_dtype=jnp.float32):
    """a: (N, K) bf16; b: (K, M) bf16 -> (N, M) with the big M on lanes."""
    n, k = a.shape
    m = b.shape[1]
    tm = _lane_tile(m)
    return pl.pallas_call(
        _matmul_kernel,
        out_shape=jax.ShapeDtypeStruct((n, m), out_dtype),
        grid_spec=pltpu.PrefetchScalarGridSpec(
            num_scalar_prefetch=0,
            grid=(m // tm,),
            in_specs=[pl.BlockSpec((n, k), lambda mi: (0, 0)),
                      pl.BlockSpec((k, tm), lambda mi: (0, mi))],
            out_specs=pl.BlockSpec((n, tm), lambda mi: (0, mi)),
        ),
        compiler_params=pltpu.CompilerParams(
            dimension_semantics=("parallel",),
        ),
    )(a, b)


# ----------------------------------------------------------------------------
# XLA glue: depth-to-space interleave and BN scale/shift folding.
# ----------------------------------------------------------------------------
def interleave_phases(y_stack, n, hh, ww):
    """(4, C, N*H*W) phase stack -> (C, N, 2H, 2W); phase index = 2*ph + pw."""
    # TODO(synk): fold this depth-to-space into the Pallas out_spec (or into the
    # next layer's tap shifts) so the interleaved activation is never
    # materialized by XLA.
    c = y_stack.shape[1]
    y = y_stack.reshape(2, 2, c, n, hh, ww)
    y = jnp.transpose(y, (2, 3, 4, 0, 5, 1))        # (C, N, H, ph, W, pw)
    return y.reshape(c, n, 2 * hh, 2 * ww)


def bn_scale_shift(csum, csq, gamma, beta, count):
    """Fold training-mode BatchNorm2d (biased var, eps=1e-5) into scale/shift."""
    mean = csum / count
    var = jnp.maximum(csq / count - mean * mean, 0.0)
    scale = gamma * jax.lax.rsqrt(var + 1e-5)
    shift = beta - mean * scale
    return scale[:, None], shift[:, None]


# ----------------------------------------------------------------------------
# Generator (WGAN-GP)
# ----------------------------------------------------------------------------
def init_generator_params(key, z_dim, channels_img, features_g):
    fg = features_g
    chans = [z_dim, fg * 16, fg * 8, fg * 4, fg * 2, channels_img]
    params = {}
    keys = jax.random.split(key, 16)
    ki = 0
    for layer in range(5):
        cin, cout = chans[layer], chans[layer + 1]
        params[f"w{layer}"] = 0.05 * jax.random.normal(
            keys[ki], (cin, cout, 4, 4), dtype=jnp.float32)
        ki += 1
        if layer < 4:  # blocks have BatchNorm
            params[f"gamma{layer}"] = 1.0 + 0.1 * jax.random.normal(
                keys[ki], (cout,), dtype=jnp.float32)
            ki += 1
            params[f"beta{layer}"] = 0.05 * jax.random.normal(
                keys[ki], (cout,), dtype=jnp.float32)
            ki += 1
    params["b4"] = 0.05 * jax.random.normal(
        keys[ki], (channels_img,), dtype=jnp.float32)
    return params


@jax.jit
def generator_forward(params, x):
    n, z = x.shape[0], x.shape[1]

    # ---- layer 0: ConvTranspose2d(z, fg*16, k=4, s=1, p=0): 1x1 -> 4x4 ------
    w0 = params["w0"]
    c0 = w0.shape[1]
    a0 = x.reshape(n, z).astype(jnp.bfloat16)                   # (N, z)
    b0 = w0.reshape(z, c0 * 16).astype(jnp.bfloat16)            # (z, c0*16)
    out0 = matmul_lane_dense(a0, b0, out_dtype=jnp.float32)     # (N, c0*16)
    v0 = out0.reshape(n, c0, 16)
    # layer-0 BN stats in XLA (tiny tensor); fold into scale/shift.
    mean0 = jnp.mean(v0, axis=(0, 2))
    var0 = jnp.mean(jnp.square(v0 - mean0[None, :, None]), axis=(0, 2))
    scale0 = params["gamma0"] * jax.lax.rsqrt(var0 + 1e-5)
    shift0 = params["beta0"] - mean0 * scale0
    h0 = jnp.transpose(v0, (1, 0, 2)).reshape(1, c0, n * 16)    # (1, c0, N*16)
    act0 = scale_shift_act(h0, scale0[:, None], shift0[:, None],
                           act="relu", out_dtype=jnp.bfloat16)
    h = act0.reshape(c0, n, 4, 4)                               # (c0, N, 4, 4)

    # ---- layers 1..3: ConvTranspose2d(k=4, s=2, p=1) + BN + ReLU ------------
    for layer in range(1, 4):
        w = params[f"w{layer}"]
        cin, nn, hh, ww = h.shape
        out_stack, csum, csq = conv_phase_matmul(h, w, with_stats=True)
        scale, shift = bn_scale_shift(
            csum.sum(axis=0)[:, 0], csq.sum(axis=0)[:, 0],
            params[f"gamma{layer}"], params[f"beta{layer}"],
            count=4.0 * nn * hh * ww)
        act = scale_shift_act(out_stack, scale, shift, act="relu",
                              out_dtype=jnp.bfloat16)
        h = interleave_phases(act, nn, hh, ww)                  # (cout, N, 2H, 2W)

    # ---- layer 4: ConvTranspose2d(fg*2, channels_img) + bias + Tanh ---------
    w4 = params["w4"]
    cin, nn, hh, ww = h.shape
    cimg = w4.shape[1]
    out_stack = conv_phase_matmul(h, w4, with_stats=False)      # (4, cimg, M)
    ones = jnp.ones((cimg, 1), jnp.float32)
    act = scale_shift_act(out_stack, ones, params["b4"][:, None],
                          act="tanh", out_dtype=jnp.float32)
    y = interleave_phases(act, nn, hh, ww)                      # (cimg, N, 64, 64)
    return jnp.transpose(y, (1, 0, 2, 3))                       # NCHW


# ----------------------------------------------------------------------------
# Pure-JAX f32 reference (col2im formulation) for a numerical cross-check
# ----------------------------------------------------------------------------
def _ref_conv_transpose2d(x, w, stride, padding):
    n, cin, hh, ww = x.shape
    cout, k = w.shape[1], w.shape[2]
    col = jnp.einsum("nchw,cokl->noklhw", x, w)
    hout = (hh - 1) * stride - 2 * padding + k
    wout = (ww - 1) * stride - 2 * padding + k
    out = jnp.zeros((n, cout, (hh - 1) * stride + k, (ww - 1) * stride + k),
                    jnp.float32)
    for kh in range(k):
        for kw in range(k):
            out = out.at[:, :, kh:kh + (hh - 1) * stride + 1:stride,
                               kw:kw + (ww - 1) * stride + 1:stride].add(
                                   col[:, :, kh, kw])
    return out[:, :, padding:padding + hout, padding:padding + wout]


def _ref_bn_relu(x, gamma, beta):
    mean = jnp.mean(x, axis=(0, 2, 3), keepdims=True)
    var = jnp.mean(jnp.square(x - mean), axis=(0, 2, 3), keepdims=True)
    y = (x - mean) * jax.lax.rsqrt(var + 1e-5)
    y = y * gamma.reshape(1, -1, 1, 1) + beta.reshape(1, -1, 1, 1)
    return jnp.maximum(y, 0.0)


@jax.jit
def reference_forward(params, x):
    h = _ref_conv_transpose2d(x, params["w0"], 1, 0)
    h = _ref_bn_relu(h, params["gamma0"], params["beta0"])
    for layer in range(1, 4):
        h = _ref_conv_transpose2d(h, params[f"w{layer}"], 2, 1)
        h = _ref_bn_relu(h, params[f"gamma{layer}"], params[f"beta{layer}"])
    h = _ref_conv_transpose2d(h, params["w4"], 2, 1)
    return jnp.tanh(h + params["b4"].reshape(1, -1, 1, 1))


if __name__ == "__main__":
    N, Z_DIM, CH_IMG, FEATURES_G = 2, 32, 3, 4

    key = jax.random.PRNGKey(0)
    k_param, k_x = jax.random.split(key)
    params = init_generator_params(k_param, Z_DIM, CH_IMG, FEATURES_G)
    x = jax.random.normal(k_x, (N, Z_DIM, 1, 1), dtype=jnp.float32)

    out = jax.block_until_ready(generator_forward(params, x))

    assert out.shape == (N, CH_IMG, 64, 64), out.shape
    assert bool(jnp.all(jnp.isfinite(out)))
    assert bool(jnp.all(jnp.abs(out) <= 1.0))  # tanh range

    # cross-check against the pure-JAX f32 col2im reference (bf16 tolerance)
    ref = jax.block_until_ready(reference_forward(params, x))
    max_err = float(jnp.max(jnp.abs(out - ref)))
    assert max_err < 0.1, f"mismatch vs reference: {max_err}"

    print("KERNEL_OK")
</pallas_src>

<mosaic_0001>
module attributes {stable_mosaic.version = 11 : i64} {
  func.func @_matmul_kernel(%arg0: i32, %arg1: memref<2x32xbf16, #tpu.memory_space<vmem>>, %arg2: memref<32x1024xbf16, #tpu.memory_space<vmem>>, %arg3: memref<2x1024xf32, #tpu.memory_space<vmem>>) attributes {dimension_semantics = [#tpu.dimension_semantics<parallel>], iteration_bounds = array<i64: 1>, scalar_prefetch = 0 : i64, scratch_operands = 0 : i64, tpu.core_type = #tpu.core_type<tc>, window_params = [{pipeline_mode = #tpu.pipeline_mode<synchronous>, transform_indices = @transform_0, window_bounds = array<i64: 2, 32>}, {transform_indices = @transform_1, window_bounds = array<i64: 32, 1024>}, {transform_indices = @transform_2, window_bounds = array<i64: 2, 1024>}]} {
    %c0 = arith.constant 0 : index
    %c0_0 = arith.constant 0 : index
    %0 = vector.load %arg1[%c0, %c0_0] : memref<2x32xbf16, #tpu.memory_space<vmem>>, vector<2x32xbf16>
    %1 = arith.extf %0 : vector<2x32xbf16> to vector<2x32xf32>
    %c0_1 = arith.constant 0 : index
    %c0_2 = arith.constant 0 : index
    %2 = vector.load %arg2[%c0_1, %c0_2] : memref<32x1024xbf16, #tpu.memory_space<vmem>>, vector<32x1024xbf16>
    %3 = arith.extf %2 : vector<32x1024xbf16> to vector<32x1024xf32>
    %cst = arith.constant dense<0.000000e+00> : vector<2x1024xf32>
    %4 = tpu.matmul %1, %3, %cst {dimension_numbers = #tpu.dot_dimension_numbers<[1], [0], [0], [1], [0, 0, 1, 1], [], []>} : vector<2x32xf32>, vector<32x1024xf32>, vector<2x1024xf32> -> vector<2x1024xf32>
    %c0_3 = arith.constant 0 : index
    %c0_4 = arith.constant 0 : index
    %5 = vector.load %arg3[%c0_3, %c0_4] : memref<2x1024xf32, #tpu.memory_space<vmem>>, vector<2x1024xf32>
    tpu.vector_store %arg3[%c0_3, %c0_4], %4 {strides = array<i32>} : memref<2x1024xf32, #tpu.memory_space<vmem>>, vector<2x1024xf32>,
    return
  }
  func.func @transform_0(%arg0: i32) -> (i32, i32) {
    %c0_i32 = arith.constant 0 : i32
    %c0_i32_0 = arith.constant 0 : i32
    %c0_i32_1 = arith.constant 0 : i32
    return %c0_i32, %c0_i32_0 : i32, i32
  }
  func.func @transform_1(%arg0: i32) -> (i32, i32) {
    %c0_i32 = arith.constant 0 : i32
    %c0_i32_0 = arith.constant 0 : i32
    return %c0_i32, %arg0 : i32, i32
  }
  func.func @transform_2(%arg0: i32) -> (i32, i32) {
    %c0_i32 = arith.constant 0 : i32
    %c0_i32_0 = arith.constant 0 : i32
    return %c0_i32, %arg0 : i32, i32
  }
}

module attributes {stable_mosaic.version = 11 : i64} {
  func.func @_scale_shift_act_kernel(%arg0: i32, %arg1: memref<1x64x32xf32, #tpu.memory_space<vmem>>, %arg2: memref<64x1xf32, #tpu.memory_space<vmem>>, %arg3: memref<64x1xf32, #tpu.memory_space<vmem>>, %arg4: memref<1x64x32xbf16, #tpu.memory_space<vmem>>) attributes {dimension_semantics = [#tpu.dimension_semantics<parallel>], iteration_bounds = array<i64: 1>, scalar_prefetch = 0 : i64, scratch_operands = 0 : i64, tpu.core_type = #tpu.core_type<tc>, window_params = [{transform_indices = @transform_0, window_bounds = array<i64: 1, 64, 32>}, {pipeline_mode = #tpu.pipeline_mode<synchronous>, transform_indices = @transform_1, window_bounds = array<i64: 64, 1>}, {pipeline_mode = #tpu.pipeline_mode<synchronous>, transform_indices = @transform_2, window_bounds = array<i64: 64, 1>}, {transform_indices = @transform_3, window_bounds = array<i64: 1, 64, 32>}]} {
    %c0 = arith.constant 0 : index
    %c0_0 = arith.constant 0 : index
    %c0_1 = arith.constant 0 : index
    %0 = vector.load %arg1[%c0, %c0_0, %c0_1] : memref<1x64x32xf32, #tpu.memory_space<vmem>>, vector<1x64x32xf32>
    %c0_2 = arith.constant 0 : index
    %c0_3 = arith.constant 0 : index
    %1 = vector.load %arg2[%c0_2, %c0_3] : memref<64x1xf32, #tpu.memory_space<vmem>>, vector<64x1xf32>
    %2 = vector.shape_cast %1 : vector<64x1xf32> to vector<1x64x1xf32>
    %3 = vector.broadcast %2 : vector<1x64x1xf32> to vector<1x64x32xf32>
    %4 = arith.mulf %0, %3 : vector<1x64x32xf32>
    %c0_4 = arith.constant 0 : index
    %c0_5 = arith.constant 0 : index
    %5 = vector.load %arg3[%c0_4, %c0_5] : memref<64x1xf32, #tpu.memory_space<vmem>>, vector<64x1xf32>
    %6 = vector.shape_cast %5 : vector<64x1xf32> to vector<1x64x1xf32>
    %7 = vector.broadcast %6 : vector<1x64x1xf32> to vector<1x64x32xf32>
    %8 = arith.addf %4, %7 : vector<1x64x32xf32>
    %cst = arith.constant 0.000000e+00 : f32
    %9 = vector.broadcast %cst : f32 to vector<1x64x32xf32>
    %10 = arith.maximumf %8, %9 : vector<1x64x32xf32>
    %11 = arith.truncf %10 : vector<1x64x32xf32> to vector<1x64x32xbf16>
    %c0_6 = arith.constant 0 : index
    %c0_7 = arith.constant 0 : index
    %c0_8 = arith.constant 0 : index
    %12 = vector.load %arg4[%c0_6, %c0_7, %c0_8] : memref<1x64x32xbf16, #tpu.memory_space<vmem>>, vector<1x64x32xbf16>
    tpu.vector_store %arg4[%c0_6, %c0_7, %c0_8], %11 {strides = array<i32>} : memref<1x64x32xbf16, #tpu.memory_space<vmem>>, vector<1x64x32xbf16>,
    return
  }
  func.func @transform_0(%arg0: i32) -> (i32, i32, i32) {
    %c0_i32 = arith.constant 0 : i32
    %c0_i32_0 = arith.constant 0 : i32
    %c0_i32_1 = arith.constant 0 : i32
    return %c0_i32, %c0_i32_0, %arg0 : i32, i32, i32
  }
  func.func @transform_1(%arg0: i32) -> (i32, i32) {
    %c0_i32 = arith.constant 0 : i32
    %c0_i32_0 = arith.constant 0 : i32
    %c0_i32_1 = arith.constant 0 : i32
    return %c0_i32, %c0_i32_0 : i32, i32
  }
  func.func @transform_2(%arg0: i32) -> (i32, i32) {
    %c0_i32 = arith.constant 0 : i32
    %c0_i32_0 = arith.constant 0 : i32
    %c0_i32_1 = arith.constant 0 : i32
    return %c0_i32, %c0_i32_0 : i32, i32
  }
  func.func @transform_3(%arg0: i32) -> (i32, i32, i32) {
    %c0_i32 = arith.constant 0 : i32
    %c0_i32_0 = arith.constant 0 : i32
    %c0_i32_1 = arith.constant 0 : i32
    return %c0_i32, %c0_i32_0, %arg0 : i32, i32, i32
  }
}

module attributes {stable_mosaic.version = 11 : i64} {
  func.func @_conv_tap_kernel(%arg0: i32, %arg1: i32, %arg2: i32, %arg3: memref<4x4xi32, #tpu.memory_space<smem>>, %arg4: memref<1x1x32x64xbf16, #tpu.memory_space<vmem>>, %arg5: memref<1x64x32xbf16, #tpu.memory_space<vmem>>, %arg6: memref<1x32x32xbf16, #tpu.memory_space<vmem>>, %arg7: memref<1x32x1xf32, #tpu.memory_space<vmem>>, %arg8: memref<1x32x1xf32, #tpu.memory_space<vmem>>, %arg9: memref<32x32xf32, #tpu.memory_space<vmem>>) attributes {dimension_semantics = [#tpu.dimension_semantics<parallel>, #tpu.dimension_semantics<arbitrary>, #tpu.dimension_semantics<arbitrary>], iteration_bounds = array<i64: 4, 1, 4>, scalar_prefetch = 1 : i64, scratch_operands = 1 : i64, tpu.core_type = #tpu.core_type<tc>, window_params = [{transform_indices = @transform_0, window_bounds = array<i64: 1, 1, 32, 64>}, {transform_indices = @transform_1, window_bounds = array<i64: 1, 64, 32>}, {transform_indices = @transform_2, window_bounds = array<i64: 1, 32, 32>}, {transform_indices = @transform_3, window_bounds = array<i64: 1, 32, 1>}, {transform_indices = @transform_4, window_bounds = array<i64: 1, 32, 1>}]} {
    %c0_i32 = arith.constant 0 : i32
    %0 = arith.cmpi eq, %arg2, %c0_i32 : i32
    %1 = arith.extui %0 : i1 to i32
    %c0_i32_0 = arith.constant 0 : i32
    %2 = arith.cmpi ne, %1, %c0_i32_0 : i32
    scf.if %2 {
      %cst_15 = arith.constant 0.000000e+00 : f32
      %21 = vector.broadcast %cst_15 : f32 to vector<32x32xf32>
      %c0_16 = arith.constant 0 : index
      %c0_17 = arith.constant 0 : index
      %22 = vector.load %arg9[%c0_16, %c0_17] : memref<32x32xf32, #tpu.memory_space<vmem>>, vector<32x32xf32>
      tpu.vector_store %arg9[%c0_16, %c0_17], %21 {strides = array<i32>} : memref<32x32xf32, #tpu.memory_space<vmem>>, vector<32x32xf32>,
    } else {
    }
    %c0 = arith.constant 0 : index
    %c0_1 = arith.constant 0 : index
    %3 = vector.load %arg9[%c0, %c0_1] : memref<32x32xf32, #tpu.memory_space<vmem>>, vector<32x32xf32>
    %c0_2 = arith.constant 0 : index
    %c0_3 = arith.constant 0 : index
    %c0_4 = arith.constant 0 : index
    %c0_5 = arith.constant 0 : index
    %4 = vector.load %arg4[%c0_2, %c0_3, %c0_4, %c0_5] : memref<1x1x32x64xbf16, #tpu.memory_space<vmem>>, vector<1x1x32x64xbf16>
    %5 = vector.shape_cast %4 : vector<1x1x32x64xbf16> to vector<32x64xbf16>
    %6 = arith.extf %5 : vector<32x64xbf16> to vector<32x64xf32>
    %c0_6 = arith.constant 0 : index
    %c0_7 = arith.constant 0 : index
    %c0_8 = arith.constant 0 : index
    %7 = vector.load %arg5[%c0_6, %c0_7, %c0_8] : memref<1x64x32xbf16, #tpu.memory_space<vmem>>, vector<1x64x32xbf16>
    %8 = vector.shape_cast %7 : vector<1x64x32xbf16> to vector<64x32xbf16>
    %9 = arith.extf %8 : vector<64x32xbf16> to vector<64x32xf32>
    %cst = arith.constant dense<0.000000e+00> : vector<32x32xf32>
    %10 = tpu.matmul %6, %9, %cst {dimension_numbers = #tpu.dot_dimension_numbers<[1], [0], [0], [1], [0, 0, 1, 1], [], []>} : vector<32x64xf32>, vector<64x32xf32>, vector<32x32xf32> -> vector<32x32xf32>
    %11 = arith.addf %3, %10 : vector<32x32xf32>
    %c0_9 = arith.constant 0 : index
    %c0_10 = arith.constant 0 : index
    %12 = vector.load %arg9[%c0_9, %c0_10] : memref<32x32xf32, #tpu.memory_space<vmem>>, vector<32x32xf32>
    tpu.vector_store %arg9[%c0_9, %c0_10], %11 {strides = array<i32>} : memref<32x32xf32, #tpu.memory_space<vmem>>, vector<32x32xf32>,
    %c0_i32_11 = arith.constant 0 : i32
    %13 = arith.cmpi eq, %arg1, %c0_i32_11 : i32
    %c0_i32_12 = arith.constant 0 : i32
    %14 = arith.cmpi eq, %arg2, %c0_i32_12 : i32
    %15 = arith.andi %13, %14 : i1
    %16 = arith.extui %15 : i1 to i32
    %c0_i32_13 = arith.constant 0 : i32
    %17 = arith.cmpi ne, %16, %c0_i32_13 : i32
    scf.if %17 {
      %cst_15 = arith.constant 0.000000e+00 : f32
      %21 = vector.broadcast %cst_15 : f32 to vector<1x32x1xf32>
      %c0_16 = arith.constant 0 : index
      %c0_17 = arith.constant 0 : index
      %c0_18 = arith.constant 0 : index
      %22 = vector.load %arg7[%c0_16, %c0_17, %c0_18] : memref<1x32x1xf32, #tpu.memory_space<vmem>>, vector<1x32x1xf32>
      tpu.vector_store %arg7[%c0_16, %c0_17, %c0_18], %21 {strides = array<i32>} : memref<1x32x1xf32, #tpu.memory_space<vmem>>, vector<1x32x1xf32>,
      %cst_19 = arith.constant 0.000000e+00 : f32
      %23 = vector.broadcast %cst_19 : f32 to vector<1x32x1xf32>
      %c0_20 = arith.constant 0 : index
      %c0_21 = arith.constant 0 : index
      %c0_22 = arith.constant 0 : index
      %24 = vector.load %arg8[%c0_20, %c0_21, %c0_22] : memref<1x32x1xf32, #tpu.memory_space<vmem>>, vector<1x32x1xf32>
      tpu.vector_store %arg8[%c0_20, %c0_21, %c0_22], %23 {strides = array<i32>} : memref<1x32x1xf32, #tpu.memory_space<vmem>>, vector<1x32x1xf32>,
    } else {
    }
    %c3_i32 = arith.constant 3 : i32
    %18 = arith.cmpi eq, %arg2, %c3_i32 : i32
    %19 = arith.extui %18 : i1 to i32
    %c0_i32_14 = arith.constant 0 : i32
    %20 = arith.cmpi ne, %19, %c0_i32_14 : i32
    scf.if %20 {
      %c0_15 = arith.constant 0 : index
      %c0_16 = arith.constant 0 : index
      %21 = vector.load %arg9[%c0_15, %c0_16] : memref<32x32xf32, #tpu.memory_space<vmem>>, vector<32x32xf32>
      %22 = arith.truncf %21 : vector<32x32xf32> to vector<32x32xbf16>
      %c0_17 = arith.constant 0 : index
      %c0_18 = arith.constant 0 : index
      %c0_19 = arith.constant 0 : index
      %23 = vector.load %arg6[%c0_17, %c0_18, %c0_19] : memref<1x32x32xbf16, #tpu.memory_space<vmem>>, vector<1x32x32xbf16>
      %24 = vector.shape_cast %23 : vector<1x32x32xbf16> to vector<32x32xbf16>
      %25 = vector.shape_cast %22 : vector<32x32xbf16> to vector<1x32x32xbf16>
      tpu.vector_store %arg6[%c0_17, %c0_18, %c0_19], %25 {strides = array<i32>} : memref<1x32x32xbf16, #tpu.memory_space<vmem>>, vector<1x32x32xbf16>,
      %c0_20 = arith.constant 0 : index
      %c0_21 = arith.constant 0 : index
      %c0_22 = arith.constant 0 : index
      %26 = vector.load %arg7[%c0_20, %c0_21, %c0_22] : memref<1x32x1xf32, #tpu.memory_space<vmem>>, vector<1x32x1xf32>
      %27 = vector.shape_cast %26 : vector<1x32x1xf32> to vector<32x1xf32>
      %cst_23 = arith.constant dense<0.000000e+00> : vector<32xf32>
      %28 = vector.multi_reduction <add>, %21, %cst_23 [1] : vector<32x32xf32> to vector<32xf32>
      %29 = vector.shape_cast %28 : vector<32xf32> to vector<32x1xf32>
      %30 = arith.addf %27, %29 : vector<32x1xf32>
      %c0_24 = arith.constant 0 : index
      %c0_25 = arith.constant 0 : index
      %c0_26 = arith.constant 0 : index
      %31 = vector.load %arg7[%c0_24, %c0_25, %c0_26] : memref<1x32x1xf32, #tpu.memory_space<vmem>>, vector<1x32x1xf32>
      %32 = vector.shape_cast %31 : vector<1x32x1xf32> to vector<32x1xf32>
      %33 = vector.shape_cast %30 : vector<32x1xf32> to vector<1x32x1xf32>
      tpu.vector_store %arg7[%c0_24, %c0_25, %c0_26], %33 {strides = array<i32>} : memref<1x32x1xf32, #tpu.memory_space<vmem>>, vector<1x32x1xf32>,
      %c0_27 = arith.constant 0 : index
      %c0_28 = arith.constant 0 : index
      %c0_29 = arith.constant 0 : index
      %34 = vector.load %arg8[%c0_27, %c0_28, %c0_29] : memref<1x32x1xf32, #tpu.memory_space<vmem>>, vector<1x32x1xf32>
      %35 = vector.shape_cast %34 : vector<1x32x1xf32> to vector<32x1xf32>
      %36 = arith.mulf %21, %21 : vector<32x32xf32>
      %cst_30 = arith.constant dense<0.000000e+00> : vector<32xf32>
      %37 = vector.multi_reduction <add>, %36, %cst_30 [1] : vector<32x32xf32> to vector<32xf32>
      %38 = vector.shape_cast %37 : vector<32xf32> to vector<32x1xf32>
      %39 = arith.addf %35, %38 : vector<32x1xf32>
      %c0_31 = arith.constant 0 : index
      %c0_32 = arith.constant 0 : index
      %c0_33 = arith.constant 0 : index
      %40 = vector.load %arg8[%c0_31, %c0_32, %c0_33] : memref<1x32x1xf32, #tpu.memory_space<vmem>>, vector<1x32x1xf32>
      %41 = vector.shape_cast %40 : vector<1x32x1xf32> to vector<32x1xf32>
      %42 = vector.shape_cast %39 : vector<32x1xf32> to vector<1x32x1xf32>
      tpu.vector_store %arg8[%c0_31, %c0_32, %c0_33], %42 {strides = array<i32>} : memref<1x32x1xf32, #tpu.memory_space<vmem>>, vector<1x32x1xf32>,
    } else {
    }
    return
  }
  func.func @transform_0(%arg0: i32, %arg1: i32, %arg2: i32, %arg3: memref<4x4xi32, #tpu.memory_space<smem>>) -> (i32, i32, i32, i32) {
    %c0_i32 = arith.constant 0 : i32
    %c0_i32_0 = arith.constant 0 : i32
    %c0_i32_1 = arith.constant 0 : i32
    return %arg0, %arg2, %c0_i32, %c0_i32_0 : i32, i32, i32, i32
  }
  func.func @transform_1(%arg0: i32, %arg1: i32, %arg2: i32, %arg3: memref<4x4xi32, #tpu.memory_space<smem>>) -> (i32, i32, i32) {
    %0 = arith.index_cast %arg0 : i32 to index
    %1 = arith.index_cast %arg2 : i32 to index
    %2 = memref.load %arg3[%0, %1] : memref<4x4xi32, #tpu.memory_space<smem>>
    %c0_i32 = arith.constant 0 : i32
    %c0_i32_0 = arith.constant 0 : i32
    return %2, %c0_i32, %arg1 : i32, i32, i32
  }
  func.func @transform_2(%arg0: i32, %arg1: i32, %arg2: i32, %arg3: memref<4x4xi32, #tpu.memory_space<smem>>) -> (i32, i32, i32) {
    %c0_i32 = arith.constant 0 : i32
    %c0_i32_0 = arith.constant 0 : i32
    return %arg0, %c0_i32, %arg1 : i32, i32, i32
  }
  func.func @transform_3(%arg0: i32, %arg1: i32, %arg2: i32, %arg3: memref<4x4xi32, #tpu.memory_space<smem>>) -> (i32, i32, i32) {
    %c0_i32 = arith.constant 0 : i32
    %c0_i32_0 = arith.constant 0 : i32
    %c0_i32_1 = arith.constant 0 : i32
    return %arg0, %c0_i32, %c0_i32_0 : i32, i32, i32
  }
  func.func @transform_4(%arg0: i32, %arg1: i32, %arg2: i32, %arg3: memref<4x4xi32, #tpu.memory_space<smem>>) -> (i32, i32, i32) {
    %c0_i32 = arith.constant 0 : i32
    %c0_i32_0 = arith.constant 0 : i32
    %c0_i32_1 = arith.constant 0 : i32
    return %arg0, %c0_i32, %c0_i32_0 : i32, i32, i32
  }
}

module attributes {stable_mosaic.version = 11 : i64} {
  func.func @_scale_shift_act_kernel(%arg0: i32, %arg1: memref<4x32x32xbf16, #tpu.memory_space<vmem>>, %arg2: memref<32x1xf32, #tpu.memory_space<vmem>>, %arg3: memref<32x1xf32, #tpu.memory_space<vmem>>, %arg4: memref<4x32x32xbf16, #tpu.memory_space<vmem>>) attributes {dimension_semantics = [#tpu.dimension_semantics<parallel>], iteration_bounds = array<i64: 1>, scalar_prefetch = 0 : i64, scratch_operands = 0 : i64, tpu.core_type = #tpu.core_type<tc>, window_params = [{transform_indices = @transform_0, window_bounds = array<i64: 4, 32, 32>}, {pipeline_mode = #tpu.pipeline_mode<synchronous>, transform_indices = @transform_1, window_bounds = array<i64: 32, 1>}, {pipeline_mode = #tpu.pipeline_mode<synchronous>, transform_indices = @transform_2, window_bounds = array<i64: 32, 1>}, {transform_indices = @transform_3, window_bounds = array<i64: 4, 32, 32>}]} {
    %c0 = arith.constant 0 : index
    %c0_0 = arith.constant 0 : index
    %c0_1 = arith.constant 0 : index
    %0 = vector.load %arg1[%c0, %c0_0, %c0_1] : memref<4x32x32xbf16, #tpu.memory_space<vmem>>, vector<4x32x32xbf16>
    %1 = arith.extf %0 : vector<4x32x32xbf16> to vector<4x32x32xf32>
    %c0_2 = arith.constant 0 : index
    %c0_3 = arith.constant 0 : index
    %2 = vector.load %arg2[%c0_2, %c0_3] : memref<32x1xf32, #tpu.memory_space<vmem>>, vector<32x1xf32>
    %3 = vector.shape_cast %2 : vector<32x1xf32> to vector<1x32x1xf32>
    %4 = vector.broadcast %3 : vector<1x32x1xf32> to vector<4x32x32xf32>
    %5 = arith.mulf %1, %4 : vector<4x32x32xf32>
    %c0_4 = arith.constant 0 : index
    %c0_5 = arith.constant 0 : index
    %6 = vector.load %arg3[%c0_4, %c0_5] : memref<32x1xf32, #tpu.memory_space<vmem>>, vector<32x1xf32>
    %7 = vector.shape_cast %6 : vector<32x1xf32> to vector<1x32x1xf32>
    %8 = vector.broadcast %7 : vector<1x32x1xf32> to vector<4x32x32xf32>
    %9 = arith.addf %5, %8 : vector<4x32x32xf32>
    %cst = arith.constant 0.000000e+00 : f32
    %10 = vector.broadcast %cst : f32 to vector<4x32x32xf32>
    %11 = arith.maximumf %9, %10 : vector<4x32x32xf32>
    %12 = arith.truncf %11 : vector<4x32x32xf32> to vector<4x32x32xbf16>
    %c0_6 = arith.constant 0 : index
    %c0_7 = arith.constant 0 : index
    %c0_8 = arith.constant 0 : index
    %13 = vector.load %arg4[%c0_6, %c0_7, %c0_8] : memref<4x32x32xbf16, #tpu.memory_space<vmem>>, vector<4x32x32xbf16>
    tpu.vector_store %arg4[%c0_6, %c0_7, %c0_8], %12 {strides = array<i32>} : memref<4x32x32xbf16, #tpu.memory_space<vmem>>, vector<4x32x32xbf16>,
    return
  }
  func.func @transform_0(%arg0: i32) -> (i32, i32, i32) {
    %c0_i32 = arith.constant 0 : i32
    %c0_i32_0 = arith.constant 0 : i32
    %c0_i32_1 = arith.constant 0 : i32
    return %c0_i32, %c0_i32_0, %arg0 : i32, i32, i32
  }
  func.func @transform_1(%arg0: i32) -> (i32, i32) {
    %c0_i32 = arith.constant 0 : i32
    %c0_i32_0 = arith.constant 0 : i32
    %c0_i32_1 = arith.constant 0 : i32
    return %c0_i32, %c0_i32_0 : i32, i32
  }
  func.func @transform_2(%arg0: i32) -> (i32, i32) {
    %c0_i32 = arith.constant 0 : i32
    %c0_i32_0 = arith.constant 0 : i32
    %c0_i32_1 = arith.constant 0 : i32
    return %c0_i32, %c0_i32_0 : i32, i32
  }
  func.func @transform_3(%arg0: i32) -> (i32, i32, i32) {
    %c0_i32 = arith.constant 0 : i32
    %c0_i32_0 = arith.constant 0 : i32
    %c0_i32_1 = arith.constant 0 : i32
    return %c0_i32, %c0_i32_0, %arg0 : i32, i32, i32
  }
}

module attributes {stable_mosaic.version = 11 : i64} {
  func.func @_conv_tap_kernel(%arg0: i32, %arg1: i32, %arg2: i32, %arg3: memref<4x4xi32, #tpu.memory_space<smem>>, %arg4: memref<1x1x16x32xbf16, #tpu.memory_space<vmem>>, %arg5: memref<1x32x128xbf16, #tpu.memory_space<vmem>>, %arg6: memref<1x16x128xbf16, #tpu.memory_space<vmem>>, %arg7: memref<1x16x1xf32, #tpu.memory_space<vmem>>, %arg8: memref<1x16x1xf32, #tpu.memory_space<vmem>>, %arg9: memref<16x128xf32, #tpu.memory_space<vmem>>) attributes {dimension_semantics = [#tpu.dimension_semantics<parallel>, #tpu.dimension_semantics<arbitrary>, #tpu.dimension_semantics<arbitrary>], iteration_bounds = array<i64: 4, 1, 4>, scalar_prefetch = 1 : i64, scratch_operands = 1 : i64, tpu.core_type = #tpu.core_type<tc>, window_params = [{transform_indices = @transform_0, window_bounds = array<i64: 1, 1, 16, 32>}, {transform_indices = @transform_1, window_bounds = array<i64: 1, 32, 128>}, {transform_indices = @transform_2, window_bounds = array<i64: 1, 16, 128>}, {transform_indices = @transform_3, window_bounds = array<i64: 1, 16, 1>}, {transform_indices = @transform_4, window_bounds = array<i64: 1, 16, 1>}]} {
    %c0_i32 = arith.constant 0 : i32
    %0 = arith.cmpi eq, %arg2, %c0_i32 : i32
    %1 = arith.extui %0 : i1 to i32
    %c0_i32_0 = arith.constant 0 : i32
    %2 = arith.cmpi ne, %1, %c0_i32_0 : i32
    scf.if %2 {
      %cst_15 = arith.constant 0.000000e+00 : f32
      %21 = vector.broadcast %cst_15 : f32 to vector<16x128xf32>
      %c0_16 = arith.constant 0 : index
      %c0_17 = arith.constant 0 : index
      %22 = vector.load %arg9[%c0_16, %c0_17] : memref<16x128xf32, #tpu.memory_space<vmem>>, vector<16x128xf32>
      tpu.vector_store %arg9[%c0_16, %c0_17], %21 {strides = array<i32>} : memref<16x128xf32, #tpu.memory_space<vmem>>, vector<16x128xf32>,
    } else {
    }
    %c0 = arith.constant 0 : index
    %c0_1 = arith.constant 0 : index
    %3 = vector.load %arg9[%c0, %c0_1] : memref<16x128xf32, #tpu.memory_space<vmem>>, vector<16x128xf32>
    %c0_2 = arith.constant 0 : index
    %c0_3 = arith.constant 0 : index
    %c0_4 = arith.constant 0 : index
    %c0_5 = arith.constant 0 : index
    %4 = vector.load %arg4[%c0_2, %c0_3, %c0_4, %c0_5] : memref<1x1x16x32xbf16, #tpu.memory_space<vmem>>, vector<1x1x16x32xbf16>
    %5 = vector.shape_cast %4 : vector<1x1x16x32xbf16> to vector<16x32xbf16>
    %6 = arith.extf %5 : vector<16x32xbf16> to vector<16x32xf32>
    %c0_6 = arith.constant 0 : index
    %c0_7 = arith.constant 0 : index
    %c0_8 = arith.constant 0 : index
    %7 = vector.load %arg5[%c0_6, %c0_7, %c0_8] : memref<1x32x128xbf16, #tpu.memory_space<vmem>>, vector<1x32x128xbf16>
    %8 = vector.shape_cast %7 : vector<1x32x128xbf16> to vector<32x128xbf16>
    %9 = arith.extf %8 : vector<32x128xbf16> to vector<32x128xf32>
    %cst = arith.constant dense<0.000000e+00> : vector<16x128xf32>
    %10 = tpu.matmul %6, %9, %cst {dimension_numbers = #tpu.dot_dimension_numbers<[1], [0], [0], [1], [0, 0, 1, 1], [], []>} : vector<16x32xf32>, vector<32x128xf32>, vector<16x128xf32> -> vector<16x128xf32>
    %11 = arith.addf %3, %10 : vector<16x128xf32>
    %c0_9 = arith.constant 0 : index
    %c0_10 = arith.constant 0 : index
    %12 = vector.load %arg9[%c0_9, %c0_10] : memref<16x128xf32, #tpu.memory_space<vmem>>, vector<16x128xf32>
    tpu.vector_store %arg9[%c0_9, %c0_10], %11 {strides = array<i32>} : memref<16x128xf32, #tpu.memory_space<vmem>>, vector<16x128xf32>,
    %c0_i32_11 = arith.constant 0 : i32
    %13 = arith.cmpi eq, %arg1, %c0_i32_11 : i32
    %c0_i32_12 = arith.constant 0 : i32
    %14 = arith.cmpi eq, %arg2, %c0_i32_12 : i32
    %15 = arith.andi %13, %14 : i1
    %16 = arith.extui %15 : i1 to i32
    %c0_i32_13 = arith.constant 0 : i32
    %17 = arith.cmpi ne, %16, %c0_i32_13 : i32
    scf.if %17 {
      %cst_15 = arith.constant 0.000000e+00 : f32
      %21 = vector.broadcast %cst_15 : f32 to vector<1x16x1xf32>
      %c0_16 = arith.constant 0 : index
      %c0_17 = arith.constant 0 : index
      %c0_18 = arith.constant 0 : index
      %22 = vector.load %arg7[%c0_16, %c0_17, %c0_18] : memref<1x16x1xf32, #tpu.memory_space<vmem>>, vector<1x16x1xf32>
      tpu.vector_store %arg7[%c0_16, %c0_17, %c0_18], %21 {strides = array<i32>} : memref<1x16x1xf32, #tpu.memory_space<vmem>>, vector<1x16x1xf32>,
      %cst_19 = arith.constant 0.000000e+00 : f32
      %23 = vector.broadcast %cst_19 : f32 to vector<1x16x1xf32>
      %c0_20 = arith.constant 0 : index
      %c0_21 = arith.constant 0 : index
      %c0_22 = arith.constant 0 : index
      %24 = vector.load %arg8[%c0_20, %c0_21, %c0_22] : memref<1x16x1xf32, #tpu.memory_space<vmem>>, vector<1x16x1xf32>
      tpu.vector_store %arg8[%c0_20, %c0_21, %c0_22], %23 {strides = array<i32>} : memref<1x16x1xf32, #tpu.memory_space<vmem>>, vector<1x16x1xf32>,
    } else {
    }
    %c3_i32 = arith.constant 3 : i32
    %18 = arith.cmpi eq, %arg2, %c3_i32 : i32
    %19 = arith.extui %18 : i1 to i32
    %c0_i32_14 = arith.constant 0 : i32
    %20 = arith.cmpi ne, %19, %c0_i32_14 : i32
    scf.if %20 {
      %c0_15 = arith.constant 0 : index
      %c0_16 = arith.constant 0 : index
      %21 = vector.load %arg9[%c0_15, %c0_16] : memref<16x128xf32, #tpu.memory_space<vmem>>, vector<16x128xf32>
      %22 = arith.truncf %21 : vector<16x128xf32> to vector<16x128xbf16>
      %c0_17 = arith.constant 0 : index
      %c0_18 = arith.constant 0 : index
      %c0_19 = arith.constant 0 : index
      %23 = vector.load %arg6[%c0_17, %c0_18, %c0_19] : memref<1x16x128xbf16, #tpu.memory_space<vmem>>, vector<1x16x128xbf16>
      %24 = vector.shape_cast %23 : vector<1x16x128xbf16> to vector<16x128xbf16>
      %25 = vector.shape_cast %22 : vector<16x128xbf16> to vector<1x16x128xbf16>
      tpu.vector_store %arg6[%c0_17, %c0_18, %c0_19], %25 {strides = array<i32>} : memref<1x16x128xbf16, #tpu.memory_space<vmem>>, vector<1x16x128xbf16>,
      %c0_20 = arith.constant 0 : index
      %c0_21 = arith.constant 0 : index
      %c0_22 = arith.constant 0 : index
      %26 = vector.load %arg7[%c0_20, %c0_21, %c0_22] : memref<1x16x1xf32, #tpu.memory_space<vmem>>, vector<1x16x1xf32>
      %27 = vector.shape_cast %26 : vector<1x16x1xf32> to vector<16x1xf32>
      %cst_23 = arith.constant dense<0.000000e+00> : vector<16xf32>
      %28 = vector.multi_reduction <add>, %21, %cst_23 [1] : vector<16x128xf32> to vector<16xf32>
      %29 = vector.shape_cast %28 : vector<16xf32> to vector<16x1xf32>
      %30 = arith.addf %27, %29 : vector<16x1xf32>
      %c0_24 = arith.constant 0 : index
      %c0_25 = arith.constant 0 : index
      %c0_26 = arith.constant 0 : index
      %31 = vector.load %arg7[%c0_24, %c0_25, %c0_26] : memref<1x16x1xf32, #tpu.memory_space<vmem>>, vector<1x16x1xf32>
      %32 = vector.shape_cast %31 : vector<1x16x1xf32> to vector<16x1xf32>
      %33 = vector.shape_cast %30 : vector<16x1xf32> to vector<1x16x1xf32>
      tpu.vector_store %arg7[%c0_24, %c0_25, %c0_26], %33 {strides = array<i32>} : memref<1x16x1xf32, #tpu.memory_space<vmem>>, vector<1x16x1xf32>,
      %c0_27 = arith.constant 0 : index
      %c0_28 = arith.constant 0 : index
      %c0_29 = arith.constant 0 : index
      %34 = vector.load %arg8[%c0_27, %c0_28, %c0_29] : memref<1x16x1xf32, #tpu.memory_space<vmem>>, vector<1x16x1xf32>
      %35 = vector.shape_cast %34 : vector<1x16x1xf32> to vector<16x1xf32>
      %36 = arith.mulf %21, %21 : vector<16x128xf32>
      %cst_30 = arith.constant dense<0.000000e+00> : vector<16xf32>
      %37 = vector.multi_reduction <add>, %36, %cst_30 [1] : vector<16x128xf32> to vector<16xf32>
      %38 = vector.shape_cast %37 : vector<16xf32> to vector<16x1xf32>
      %39 = arith.addf %35, %38 : vector<16x1xf32>
      %c0_31 = arith.constant 0 : index
      %c0_32 = arith.constant 0 : index
      %c0_33 = arith.constant 0 : index
      %40 = vector.load %arg8[%c0_31, %c0_32, %c0_33] : memref<1x16x1xf32, #tpu.memory_space<vmem>>, vector<1x16x1xf32>
      %41 = vector.shape_cast %40 : vector<1x16x1xf32> to vector<16x1xf32>
      %42 = vector.shape_cast %39 : vector<16x1xf32> to vector<1x16x1xf32>
      tpu.vector_store %arg8[%c0_31, %c0_32, %c0_33], %42 {strides = array<i32>} : memref<1x16x1xf32, #tpu.memory_space<vmem>>, vector<1x16x1xf32>,
    } else {
    }
    return
  }
  func.func @transform_0(%arg0: i32, %arg1: i32, %arg2: i32, %arg3: memref<4x4xi32, #tpu.memory_space<smem>>) -> (i32, i32, i32, i32) {
    %c0_i32 = arith.constant 0 : i32
    %c0_i32_0 = arith.constant 0 : i32
    %c0_i32_1 = arith.constant 0 : i32
    return %arg0, %arg2, %c0_i32, %c0_i32_0 : i32, i32, i32, i32
  }
  func.func @transform_1(%arg0: i32, %arg1: i32, %arg2: i32, %arg3: memref<4x4xi32, #tpu.memory_space<smem>>) -> (i32, i32, i32) {
    %0 = arith.index_cast %arg0 : i32 to index
    %1 = arith.index_cast %arg2 : i32 to index
    %2 = memref.load %arg3[%0, %1] : memref<4x4xi32, #tpu.memory_space<smem>>
    %c0_i32 = arith.constant 0 : i32
    %c0_i32_0 = arith.constant 0 : i32
    return %2, %c0_i32, %arg1 : i32, i32, i32
  }
  func.func @transform_2(%arg0: i32, %arg1: i32, %arg2: i32, %arg3: memref<4x4xi32, #tpu.memory_space<smem>>) -> (i32, i32, i32) {
    %c0_i32 = arith.constant 0 : i32
    %c0_i32_0 = arith.constant 0 : i32
    return %arg0, %c0_i32, %arg1 : i32, i32, i32
  }
  func.func @transform_3(%arg0: i32, %arg1: i32, %arg2: i32, %arg3: memref<4x4xi32, #tpu.memory_space<smem>>) -> (i32, i32, i32) {
    %c0_i32 = arith.constant 0 : i32
    %c0_i32_0 = arith.constant 0 : i32
    %c0_i32_1 = arith.constant 0 : i32
    return %arg0, %c0_i32, %c0_i32_0 : i32, i32, i32
  }
  func.func @transform_4(%arg0: i32, %arg1: i32, %arg2: i32, %arg3: memref<4x4xi32, #tpu.memory_space<smem>>) -> (i32, i32, i32) {
    %c0_i32 = arith.constant 0 : i32
    %c0_i32_0 = arith.constant 0 : i32
    %c0_i32_1 = arith.constant 0 : i32
    return %arg0, %c0_i32, %c0_i32_0 : i32, i32, i32
  }
}

module attributes {stable_mosaic.version = 11 : i64} {
  func.func @_scale_shift_act_kernel(%arg0: i32, %arg1: memref<4x16x128xbf16, #tpu.memory_space<vmem>>, %arg2: memref<16x1xf32, #tpu.memory_space<vmem>>, %arg3: memref<16x1xf32, #tpu.memory_space<vmem>>, %arg4: memref<4x16x128xbf16, #tpu.memory_space<vmem>>) attributes {dimension_semantics = [#tpu.dimension_semantics<parallel>], iteration_bounds = array<i64: 1>, scalar_prefetch = 0 : i64, scratch_operands = 0 : i64, tpu.core_type = #tpu.core_type<tc>, window_params = [{transform_indices = @transform_0, window_bounds = array<i64: 4, 16, 128>}, {pipeline_mode = #tpu.pipeline_mode<synchronous>, transform_indices = @transform_1, window_bounds = array<i64: 16, 1>}, {pipeline_mode = #tpu.pipeline_mode<synchronous>, transform_indices = @transform_2, window_bounds = array<i64: 16, 1>}, {transform_indices = @transform_3, window_bounds = array<i64: 4, 16, 128>}]} {
    %c0 = arith.constant 0 : index
    %c0_0 = arith.constant 0 : index
    %c0_1 = arith.constant 0 : index
    %0 = vector.load %arg1[%c0, %c0_0, %c0_1] : memref<4x16x128xbf16, #tpu.memory_space<vmem>>, vector<4x16x128xbf16>
    %1 = arith.extf %0 : vector<4x16x128xbf16> to vector<4x16x128xf32>
    %c0_2 = arith.constant 0 : index
    %c0_3 = arith.constant 0 : index
    %2 = vector.load %arg2[%c0_2, %c0_3] : memref<16x1xf32, #tpu.memory_space<vmem>>, vector<16x1xf32>
    %3 = vector.shape_cast %2 : vector<16x1xf32> to vector<1x16x1xf32>
    %4 = vector.broadcast %3 : vector<1x16x1xf32> to vector<4x16x128xf32>
    %5 = arith.mulf %1, %4 : vector<4x16x128xf32>
    %c0_4 = arith.constant 0 : index
    %c0_5 = arith.constant 0 : index
    %6 = vector.load %arg3[%c0_4, %c0_5] : memref<16x1xf32, #tpu.memory_space<vmem>>, vector<16x1xf32>
    %7 = vector.shape_cast %6 : vector<16x1xf32> to vector<1x16x1xf32>
    %8 = vector.broadcast %7 : vector<1x16x1xf32> to vector<4x16x128xf32>
    %9 = arith.addf %5, %8 : vector<4x16x128xf32>
    %cst = arith.constant 0.000000e+00 : f32
    %10 = vector.broadcast %cst : f32 to vector<4x16x128xf32>
    %11 = arith.maximumf %9, %10 : vector<4x16x128xf32>
    %12 = arith.truncf %11 : vector<4x16x128xf32> to vector<4x16x128xbf16>
    %c0_6 = arith.constant 0 : index
    %c0_7 = arith.constant 0 : index
    %c0_8 = arith.constant 0 : index
    %13 = vector.load %arg4[%c0_6, %c0_7, %c0_8] : memref<4x16x128xbf16, #tpu.memory_space<vmem>>, vector<4x16x128xbf16>
    tpu.vector_store %arg4[%c0_6, %c0_7, %c0_8], %12 {strides = array<i32>} : memref<4x16x128xbf16, #tpu.memory_space<vmem>>, vector<4x16x128xbf16>,
    return
  }
  func.func @transform_0(%arg0: i32) -> (i32, i32, i32) {
    %c0_i32 = arith.constant 0 : i32
    %c0_i32_0 = arith.constant 0 : i32
    %c0_i32_1 = arith.constant 0 : i32
    return %c0_i32, %c0_i32_0, %arg0 : i32, i32, i32
  }
  func.func @transform_1(%arg0: i32) -> (i32, i32) {
    %c0_i32 = arith.constant 0 : i32
    %c0_i32_0 = arith.constant 0 : i32
    %c0_i32_1 = arith.constant 0 : i32
    return %c0_i32, %c0_i32_0 : i32, i32
  }
  func.func @transform_2(%arg0: i32) -> (i32, i32) {
    %c0_i32 = arith.constant 0 : i32
    %c0_i32_0 = arith.constant 0 : i32
    %c0_i32_1 = arith.constant 0 : i32
    return %c0_i32, %c0_i32_0 : i32, i32
  }
  func.func @transform_3(%arg0: i32) -> (i32, i32, i32) {
    %c0_i32 = arith.constant 0 : i32
    %c0_i32_0 = arith.constant 0 : i32
    %c0_i32_1 = arith.constant 0 : i32
    return %c0_i32, %c0_i32_0, %arg0 : i32, i32, i32
  }
}

module attributes {stable_mosaic.version = 11 : i64} {
  func.func @_conv_tap_kernel(%arg0: i32, %arg1: i32, %arg2: i32, %arg3: memref<4x4xi32, #tpu.memory_space<smem>>, %arg4: memref<1x1x8x16xbf16, #tpu.memory_space<vmem>>, %arg5: memref<1x16x512xbf16, #tpu.memory_space<vmem>>, %arg6: memref<1x8x512xbf16, #tpu.memory_space<vmem>>, %arg7: memref<1x8x1xf32, #tpu.memory_space<vmem>>, %arg8: memref<1x8x1xf32, #tpu.memory_space<vmem>>, %arg9: memref<8x512xf32, #tpu.memory_space<vmem>>) attributes {dimension_semantics = [#tpu.dimension_semantics<parallel>, #tpu.dimension_semantics<arbitrary>, #tpu.dimension_semantics<arbitrary>], iteration_bounds = array<i64: 4, 1, 4>, scalar_prefetch = 1 : i64, scratch_operands = 1 : i64, tpu.core_type = #tpu.core_type<tc>, window_params = [{transform_indices = @transform_0, window_bounds = array<i64: 1, 1, 8, 16>}, {transform_indices = @transform_1, window_bounds = array<i64: 1, 16, 512>}, {transform_indices = @transform_2, window_bounds = array<i64: 1, 8, 512>}, {transform_indices = @transform_3, window_bounds = array<i64: 1, 8, 1>}, {transform_indices = @transform_4, window_bounds = array<i64: 1, 8, 1>}]} {
    %c0_i32 = arith.constant 0 : i32
    %0 = arith.cmpi eq, %arg2, %c0_i32 : i32
    %1 = arith.extui %0 : i1 to i32
    %c0_i32_0 = arith.constant 0 : i32
    %2 = arith.cmpi ne, %1, %c0_i32_0 : i32
    scf.if %2 {
      %cst_15 = arith.constant 0.000000e+00 : f32
      %21 = vector.broadcast %cst_15 : f32 to vector<8x512xf32>
      %c0_16 = arith.constant 0 : index
      %c0_17 = arith.constant 0 : index
      %22 = vector.load %arg9[%c0_16, %c0_17] : memref<8x512xf32, #tpu.memory_space<vmem>>, vector<8x512xf32>
      tpu.vector_store %arg9[%c0_16, %c0_17], %21 {strides = array<i32>} : memref<8x512xf32, #tpu.memory_space<vmem>>, vector<8x512xf32>,
    } else {
    }
    %c0 = arith.constant 0 : index
    %c0_1 = arith.constant 0 : index
    %3 = vector.load %arg9[%c0, %c0_1] : memref<8x512xf32, #tpu.memory_space<vmem>>, vector<8x512xf32>
    %c0_2 = arith.constant 0 : index
    %c0_3 = arith.constant 0 : index
    %c0_4 = arith.constant 0 : index
    %c0_5 = arith.constant 0 : index
    %4 = vector.load %arg4[%c0_2, %c0_3, %c0_4, %c0_5] : memref<1x1x8x16xbf16, #tpu.memory_space<vmem>>, vector<1x1x8x16xbf16>
    %5 = vector.shape_cast %4 : vector<1x1x8x16xbf16> to vector<8x16xbf16>
    %6 = arith.extf %5 : vector<8x16xbf16> to vector<8x16xf32>
    %c0_6 = arith.constant 0 : index
    %c0_7 = arith.constant 0 : index
    %c0_8 = arith.constant 0 : index
    %7 = vector.load %arg5[%c0_6, %c0_7, %c0_8] : memref<1x16x512xbf16, #tpu.memory_space<vmem>>, vector<1x16x512xbf16>
    %8 = vector.shape_cast %7 : vector<1x16x512xbf16> to vector<16x512xbf16>
    %9 = arith.extf %8 : vector<16x512xbf16> to vector<16x512xf32>
    %cst = arith.constant dense<0.000000e+00> : vector<8x512xf32>
    %10 = tpu.matmul %6, %9, %cst {dimension_numbers = #tpu.dot_dimension_numbers<[1], [0], [0], [1], [0, 0, 1, 1], [], []>} : vector<8x16xf32>, vector<16x512xf32>, vector<8x512xf32> -> vector<8x512xf32>
    %11 = arith.addf %3, %10 : vector<8x512xf32>
    %c0_9 = arith.constant 0 : index
    %c0_10 = arith.constant 0 : index
    %12 = vector.load %arg9[%c0_9, %c0_10] : memref<8x512xf32, #tpu.memory_space<vmem>>, vector<8x512xf32>
    tpu.vector_store %arg9[%c0_9, %c0_10], %11 {strides = array<i32>} : memref<8x512xf32, #tpu.memory_space<vmem>>, vector<8x512xf32>,
    %c0_i32_11 = arith.constant 0 : i32
    %13 = arith.cmpi eq, %arg1, %c0_i32_11 : i32
    %c0_i32_12 = arith.constant 0 : i32
    %14 = arith.cmpi eq, %arg2, %c0_i32_12 : i32
    %15 = arith.andi %13, %14 : i1
    %16 = arith.extui %15 : i1 to i32
    %c0_i32_13 = arith.constant 0 : i32
    %17 = arith.cmpi ne, %16, %c0_i32_13 : i32
    scf.if %17 {
      %cst_15 = arith.constant 0.000000e+00 : f32
      %21 = vector.broadcast %cst_15 : f32 to vector<1x8x1xf32>
      %c0_16 = arith.constant 0 : index
      %c0_17 = arith.constant 0 : index
      %c0_18 = arith.constant 0 : index
      %22 = vector.load %arg7[%c0_16, %c0_17, %c0_18] : memref<1x8x1xf32, #tpu.memory_space<vmem>>, vector<1x8x1xf32>
      tpu.vector_store %arg7[%c0_16, %c0_17, %c0_18], %21 {strides = array<i32>} : memref<1x8x1xf32, #tpu.memory_space<vmem>>, vector<1x8x1xf32>,
      %cst_19 = arith.constant 0.000000e+00 : f32
      %23 = vector.broadcast %cst_19 : f32 to vector<1x8x1xf32>
      %c0_20 = arith.constant 0 : index
      %c0_21 = arith.constant 0 : index
      %c0_22 = arith.constant 0 : index
      %24 = vector.load %arg8[%c0_20, %c0_21, %c0_22] : memref<1x8x1xf32, #tpu.memory_space<vmem>>, vector<1x8x1xf32>
      tpu.vector_store %arg8[%c0_20, %c0_21, %c0_22], %23 {strides = array<i32>} : memref<1x8x1xf32, #tpu.memory_space<vmem>>, vector<1x8x1xf32>,
    } else {
    }
    %c3_i32 = arith.constant 3 : i32
    %18 = arith.cmpi eq, %arg2, %c3_i32 : i32
    %19 = arith.extui %18 : i1 to i32
    %c0_i32_14 = arith.constant 0 : i32
    %20 = arith.cmpi ne, %19, %c0_i32_14 : i32
    scf.if %20 {
      %c0_15 = arith.constant 0 : index
      %c0_16 = arith.constant 0 : index
      %21 = vector.load %arg9[%c0_15, %c0_16] : memref<8x512xf32, #tpu.memory_space<vmem>>, vector<8x512xf32>
      %22 = arith.truncf %21 : vector<8x512xf32> to vector<8x512xbf16>
      %c0_17 = arith.constant 0 : index
      %c0_18 = arith.constant 0 : index
      %c0_19 = arith.constant 0 : index
      %23 = vector.load %arg6[%c0_17, %c0_18, %c0_19] : memref<1x8x512xbf16, #tpu.memory_space<vmem>>, vector<1x8x512xbf16>
      %24 = vector.shape_cast %23 : vector<1x8x512xbf16> to vector<8x512xbf16>
      %25 = vector.shape_cast %22 : vector<8x512xbf16> to vector<1x8x512xbf16>
      tpu.vector_store %arg6[%c0_17, %c0_18, %c0_19], %25 {strides = array<i32>} : memref<1x8x512xbf16, #tpu.memory_space<vmem>>, vector<1x8x512xbf16>,
      %c0_20 = arith.constant 0 : index
      %c0_21 = arith.constant 0 : index
      %c0_22 = arith.constant 0 : index
      %26 = vector.load %arg7[%c0_20, %c0_21, %c0_22] : memref<1x8x1xf32, #tpu.memory_space<vmem>>, vector<1x8x1xf32>
      %27 = vector.shape_cast %26 : vector<1x8x1xf32> to vector<8x1xf32>
      %cst_23 = arith.constant dense<0.000000e+00> : vector<8xf32>
      %28 = vector.multi_reduction <add>, %21, %cst_23 [1] : vector<8x512xf32> to vector<8xf32>
      %29 = vector.shape_cast %28 : vector<8xf32> to vector<8x1xf32>
      %30 = arith.addf %27, %29 : vector<8x1xf32>
      %c0_24 = arith.constant 0 : index
      %c0_25 = arith.constant 0 : index
      %c0_26 = arith.constant 0 : index
      %31 = vector.load %arg7[%c0_24, %c0_25, %c0_26] : memref<1x8x1xf32, #tpu.memory_space<vmem>>, vector<1x8x1xf32>
      %32 = vector.shape_cast %31 : vector<1x8x1xf32> to vector<8x1xf32>
      %33 = vector.shape_cast %30 : vector<8x1xf32> to vector<1x8x1xf32>
      tpu.vector_store %arg7[%c0_24, %c0_25, %c0_26], %33 {strides = array<i32>} : memref<1x8x1xf32, #tpu.memory_space<vmem>>, vector<1x8x1xf32>,
      %c0_27 = arith.constant 0 : index
      %c0_28 = arith.constant 0 : index
      %c0_29 = arith.constant 0 : index
      %34 = vector.load %arg8[%c0_27, %c0_28, %c0_29] : memref<1x8x1xf32, #tpu.memory_space<vmem>>, vector<1x8x1xf32>
      %35 = vector.shape_cast %34 : vector<1x8x1xf32> to vector<8x1xf32>
      %36 = arith.mulf %21, %21 : vector<8x512xf32>
      %cst_30 = arith.constant dense<0.000000e+00> : vector<8xf32>
      %37 = vector.multi_reduction <add>, %36, %cst_30 [1] : vector<8x512xf32> to vector<8xf32>
      %38 = vector.shape_cast %37 : vector<8xf32> to vector<8x1xf32>
      %39 = arith.addf %35, %38 : vector<8x1xf32>
      %c0_31 = arith.constant 0 : index
      %c0_32 = arith.constant 0 : index
      %c0_33 = arith.constant 0 : index
      %40 = vector.load %arg8[%c0_31, %c0_32, %c0_33] : memref<1x8x1xf32, #tpu.memory_space<vmem>>, vector<1x8x1xf32>
      %41 = vector.shape_cast %40 : vector<1x8x1xf32> to vector<8x1xf32>
      %42 = vector.shape_cast %39 : vector<8x1xf32> to vector<1x8x1xf32>
      tpu.vector_store %arg8[%c0_31, %c0_32, %c0_33], %42 {strides = array<i32>} : memref<1x8x1xf32, #tpu.memory_space<vmem>>, vector<1x8x1xf32>,
    } else {
    }
    return
  }
  func.func @transform_0(%arg0: i32, %arg1: i32, %arg2: i32, %arg3: memref<4x4xi32, #tpu.memory_space<smem>>) -> (i32, i32, i32, i32) {
    %c0_i32 = arith.constant 0 : i32
    %c0_i32_0 = arith.constant 0 : i32
    %c0_i32_1 = arith.constant 0 : i32
    return %arg0, %arg2, %c0_i32, %c0_i32_0 : i32, i32, i32, i32
  }
  func.func @transform_1(%arg0: i32, %arg1: i32, %arg2: i32, %arg3: memref<4x4xi32, #tpu.memory_space<smem>>) -> (i32, i32, i32) {
    %0 = arith.index_cast %arg0 : i32 to index
    %1 = arith.index_cast %arg2 : i32 to index
    %2 = memref.load %arg3[%0, %1] : memref<4x4xi32, #tpu.memory_space<smem>>
    %c0_i32 = arith.constant 0 : i32
    %c0_i32_0 = arith.constant 0 : i32
    return %2, %c0_i32, %arg1 : i32, i32, i32
  }
  func.func @transform_2(%arg0: i32, %arg1: i32, %arg2: i32, %arg3: memref<4x4xi32, #tpu.memory_space<smem>>) -> (i32, i32, i32) {
    %c0_i32 = arith.constant 0 : i32
    %c0_i32_0 = arith.constant 0 : i32
    return %arg0, %c0_i32, %arg1 : i32, i32, i32
  }
  func.func @transform_3(%arg0: i32, %arg1: i32, %arg2: i32, %arg3: memref<4x4xi32, #tpu.memory_space<smem>>) -> (i32, i32, i32) {
    %c0_i32 = arith.constant 0 : i32
    %c0_i32_0 = arith.constant 0 : i32
    %c0_i32_1 = arith.constant 0 : i32
    return %arg0, %c0_i32, %c0_i32_0 : i32, i32, i32
  }
  func.func @transform_4(%arg0: i32, %arg1: i32, %arg2: i32, %arg3: memref<4x4xi32, #tpu.memory_space<smem>>) -> (i32, i32, i32) {
    %c0_i32 = arith.constant 0 : i32
    %c0_i32_0 = arith.constant 0 : i32
    %c0_i32_1 = arith.constant 0 : i32
    return %arg0, %c0_i32, %c0_i32_0 : i32, i32, i32
  }
}

module attributes {stable_mosaic.version = 11 : i64} {
  func.func @_scale_shift_act_kernel(%arg0: i32, %arg1: memref<4x8x512xbf16, #tpu.memory_space<vmem>>, %arg2: memref<8x1xf32, #tpu.memory_space<vmem>>, %arg3: memref<8x1xf32, #tpu.memory_space<vmem>>, %arg4: memref<4x8x512xbf16, #tpu.memory_space<vmem>>) attributes {dimension_semantics = [#tpu.dimension_semantics<parallel>], iteration_bounds = array<i64: 1>, scalar_prefetch = 0 : i64, scratch_operands = 0 : i64, tpu.core_type = #tpu.core_type<tc>, window_params = [{transform_indices = @transform_0, window_bounds = array<i64: 4, 8, 512>}, {pipeline_mode = #tpu.pipeline_mode<synchronous>, transform_indices = @transform_1, window_bounds = array<i64: 8, 1>}, {pipeline_mode = #tpu.pipeline_mode<synchronous>, transform_indices = @transform_2, window_bounds = array<i64: 8, 1>}, {transform_indices = @transform_3, window_bounds = array<i64: 4, 8, 512>}]} {
    %c0 = arith.constant 0 : index
    %c0_0 = arith.constant 0 : index
    %c0_1 = arith.constant 0 : index
    %0 = vector.load %arg1[%c0, %c0_0, %c0_1] : memref<4x8x512xbf16, #tpu.memory_space<vmem>>, vector<4x8x512xbf16>
    %1 = arith.extf %0 : vector<4x8x512xbf16> to vector<4x8x512xf32>
    %c0_2 = arith.constant 0 : index
    %c0_3 = arith.constant 0 : index
    %2 = vector.load %arg2[%c0_2, %c0_3] : memref<8x1xf32, #tpu.memory_space<vmem>>, vector<8x1xf32>
    %3 = vector.shape_cast %2 : vector<8x1xf32> to vector<1x8x1xf32>
    %4 = vector.broadcast %3 : vector<1x8x1xf32> to vector<4x8x512xf32>
    %5 = arith.mulf %1, %4 : vector<4x8x512xf32>
    %c0_4 = arith.constant 0 : index
    %c0_5 = arith.constant 0 : index
    %6 = vector.load %arg3[%c0_4, %c0_5] : memref<8x1xf32, #tpu.memory_space<vmem>>, vector<8x1xf32>
    %7 = vector.shape_cast %6 : vector<8x1xf32> to vector<1x8x1xf32>
    %8 = vector.broadcast %7 : vector<1x8x1xf32> to vector<4x8x512xf32>
    %9 = arith.addf %5, %8 : vector<4x8x512xf32>
    %cst = arith.constant 0.000000e+00 : f32
    %10 = vector.broadcast %cst : f32 to vector<4x8x512xf32>
    %11 = arith.maximumf %9, %10 : vector<4x8x512xf32>
    %12 = arith.truncf %11 : vector<4x8x512xf32> to vector<4x8x512xbf16>
    %c0_6 = arith.constant 0 : index
    %c0_7 = arith.constant 0 : index
    %c0_8 = arith.constant 0 : index
    %13 = vector.load %arg4[%c0_6, %c0_7, %c0_8] : memref<4x8x512xbf16, #tpu.memory_space<vmem>>, vector<4x8x512xbf16>
    tpu.vector_store %arg4[%c0_6, %c0_7, %c0_8], %12 {strides = array<i32>} : memref<4x8x512xbf16, #tpu.memory_space<vmem>>, vector<4x8x512xbf16>,
    return
  }
  func.func @transform_0(%arg0: i32) -> (i32, i32, i32) {
    %c0_i32 = arith.constant 0 : i32
    %c0_i32_0 = arith.constant 0 : i32
    %c0_i32_1 = arith.constant 0 : i32
    return %c0_i32, %c0_i32_0, %arg0 : i32, i32, i32
  }
  func.func @transform_1(%arg0: i32) -> (i32, i32) {
    %c0_i32 = arith.constant 0 : i32
    %c0_i32_0 = arith.constant 0 : i32
    %c0_i32_1 = arith.constant 0 : i32
    return %c0_i32, %c0_i32_0 : i32, i32
  }
  func.func @transform_2(%arg0: i32) -> (i32, i32) {
    %c0_i32 = arith.constant 0 : i32
    %c0_i32_0 = arith.constant 0 : i32
    %c0_i32_1 = arith.constant 0 : i32
    return %c0_i32, %c0_i32_0 : i32, i32
  }
  func.func @transform_3(%arg0: i32) -> (i32, i32, i32) {
    %c0_i32 = arith.constant 0 : i32
    %c0_i32_0 = arith.constant 0 : i32
    %c0_i32_1 = arith.constant 0 : i32
    return %c0_i32, %c0_i32_0, %arg0 : i32, i32, i32
  }
}

module attributes {stable_mosaic.version = 11 : i64} {
  func.func @_conv_tap_kernel(%arg0: i32, %arg1: i32, %arg2: i32, %arg3: memref<4x4xi32, #tpu.memory_space<smem>>, %arg4: memref<1x1x3x8xbf16, #tpu.memory_space<vmem>>, %arg5: memref<1x8x1024xbf16, #tpu.memory_space<vmem>>, %arg6: memref<1x3x1024xbf16, #tpu.memory_space<vmem>>, %arg7: memref<3x1024xf32, #tpu.memory_space<vmem>>) attributes {dimension_semantics = [#tpu.dimension_semantics<parallel>, #tpu.dimension_semantics<arbitrary>, #tpu.dimension_semantics<arbitrary>], iteration_bounds = array<i64: 4, 2, 4>, scalar_prefetch = 1 : i64, scratch_operands = 1 : i64, tpu.core_type = #tpu.core_type<tc>, window_params = [{transform_indices = @transform_0, window_bounds = array<i64: 1, 1, 3, 8>}, {transform_indices = @transform_1, window_bounds = array<i64: 1, 8, 1024>}, {transform_indices = @transform_2, window_bounds = array<i64: 1, 3, 1024>}]} {
    %c0_i32 = arith.constant 0 : i32
    %0 = arith.cmpi eq, %arg2, %c0_i32 : i32
    %1 = arith.extui %0 : i1 to i32
    %c0_i32_0 = arith.constant 0 : i32
    %2 = arith.cmpi ne, %1, %c0_i32_0 : i32
    scf.if %2 {
      %cst_12 = arith.constant 0.000000e+00 : f32
      %16 = vector.broadcast %cst_12 : f32 to vector<3x1024xf32>
      %c0_13 = arith.constant 0 : index
      %c0_14 = arith.constant 0 : index
      %17 = vector.load %arg7[%c0_13, %c0_14] : memref<3x1024xf32, #tpu.memory_space<vmem>>, vector<3x1024xf32>
      tpu.vector_store %arg7[%c0_13, %c0_14], %16 {strides = array<i32>} : memref<3x1024xf32, #tpu.memory_space<vmem>>, vector<3x1024xf32>,
    } else {
    }
    %c0 = arith.constant 0 : index
    %c0_1 = arith.constant 0 : index
    %3 = vector.load %arg7[%c0, %c0_1] : memref<3x1024xf32, #tpu.memory_space<vmem>>, vector<3x1024xf32>
    %c0_2 = arith.constant 0 : index
    %c0_3 = arith.constant 0 : index
    %c0_4 = arith.constant 0 : index
    %c0_5 = arith.constant 0 : index
    %4 = vector.load %arg4[%c0_2, %c0_3, %c0_4, %c0_5] : memref<1x1x3x8xbf16, #tpu.memory_space<vmem>>, vector<1x1x3x8xbf16>
    %5 = vector.shape_cast %4 : vector<1x1x3x8xbf16> to vector<3x8xbf16>
    %6 = arith.extf %5 : vector<3x8xbf16> to vector<3x8xf32>
    %c0_6 = arith.constant 0 : index
    %c0_7 = arith.constant 0 : index
    %c0_8 = arith.constant 0 : index
    %7 = vector.load %arg5[%c0_6, %c0_7, %c0_8] : memref<1x8x1024xbf16, #tpu.memory_space<vmem>>, vector<1x8x1024xbf16>
    %8 = vector.shape_cast %7 : vector<1x8x1024xbf16> to vector<8x1024xbf16>
    %9 = arith.extf %8 : vector<8x1024xbf16> to vector<8x1024xf32>
    %cst = arith.constant dense<0.000000e+00> : vector<3x1024xf32>
    %10 = tpu.matmul %6, %9, %cst {dimension_numbers = #tpu.dot_dimension_numbers<[1], [0], [0], [1], [0, 0, 1, 1], [], []>} : vector<3x8xf32>, vector<8x1024xf32>, vector<3x1024xf32> -> vector<3x1024xf32>
    %11 = arith.addf %3, %10 : vector<3x1024xf32>
    %c0_9 = arith.constant 0 : index
    %c0_10 = arith.constant 0 : index
    %12 = vector.load %arg7[%c0_9, %c0_10] : memref<3x1024xf32, #tpu.memory_space<vmem>>, vector<3x1024xf32>
    tpu.vector_store %arg7[%c0_9, %c0_10], %11 {strides = array<i32>} : memref<3x1024xf32, #tpu.memory_space<vmem>>, vector<3x1024xf32>,
    %c3_i32 = arith.constant 3 : i32
    %13 = arith.cmpi eq, %arg2, %c3_i32 : i32
    %14 = arith.extui %13 : i1 to i32
    %c0_i32_11 = arith.constant 0 : i32
    %15 = arith.cmpi ne, %14, %c0_i32_11 : i32
    scf.if %15 {
      %c0_12 = arith.constant 0 : index
      %c0_13 = arith.constant 0 : index
      %16 = vector.load %arg7[%c0_12, %c0_13] : memref<3x1024xf32, #tpu.memory_space<vmem>>, vector<3x1024xf32>
      %17 = arith.truncf %16 : vector<3x1024xf32> to vector<3x1024xbf16>
      %c0_14 = arith.constant 0 : index
      %c0_15 = arith.constant 0 : index
      %c0_16 = arith.constant 0 : index
      %18 = vector.load %arg6[%c0_14, %c0_15, %c0_16] : memref<1x3x1024xbf16, #tpu.memory_space<vmem>>, vector<1x3x1024xbf16>
      %19 = vector.shape_cast %18 : vector<1x3x1024xbf16> to vector<3x1024xbf16>
      %20 = vector.shape_cast %17 : vector<3x1024xbf16> to vector<1x3x1024xbf16>
      tpu.vector_store %arg6[%c0_14, %c0_15, %c0_16], %20 {strides = array<i32>} : memref<1x3x1024xbf16, #tpu.memory_space<vmem>>, vector<1x3x1024xbf16>,
    } else {
    }
    return
  }
  func.func @transform_0(%arg0: i32, %arg1: i32, %arg2: i32, %arg3: memref<4x4xi32, #tpu.memory_space<smem>>) -> (i32, i32, i32, i32) {
    %c0_i32 = arith.constant 0 : i32
    %c0_i32_0 = arith.constant 0 : i32
    %c0_i32_1 = arith.constant 0 : i32
    return %arg0, %arg2, %c0_i32, %c0_i32_0 : i32, i32, i32, i32
  }
  func.func @transform_1(%arg0: i32, %arg1: i32, %arg2: i32, %arg3: memref<4x4xi32, #tpu.memory_space<smem>>) -> (i32, i32, i32) {
    %0 = arith.index_cast %arg0 : i32 to index
    %1 = arith.index_cast %arg2 : i32 to index
    %2 = memref.load %arg3[%0, %1] : memref<4x4xi32, #tpu.memory_space<smem>>
    %c0_i32 = arith.constant 0 : i32
    %c0_i32_0 = arith.constant 0 : i32
    return %2, %c0_i32, %arg1 : i32, i32, i32
  }
  func.func @transform_2(%arg0: i32, %arg1: i32, %arg2: i32, %arg3: memref<4x4xi32, #tpu.memory_space<smem>>) -> (i32, i32, i32) {
    %c0_i32 = arith.constant 0 : i32
    %c0_i32_0 = arith.constant 0 : i32
    return %arg0, %c0_i32, %arg1 : i32, i32, i32
  }
}

module attributes {stable_mosaic.version = 11 : i64} {
  func.func @_scale_shift_act_kernel(%arg0: i32, %arg1: memref<4x3x1024xbf16, #tpu.memory_space<vmem>>, %arg2: memref<3x1xf32, #tpu.memory_space<vmem>>, %arg3: memref<3x1xf32, #tpu.memory_space<vmem>>, %arg4: memref<4x3x1024xf32, #tpu.memory_space<vmem>>) attributes {dimension_semantics = [#tpu.dimension_semantics<parallel>], iteration_bounds = array<i64: 2>, scalar_prefetch = 0 : i64, scratch_operands = 0 : i64, tpu.core_type = #tpu.core_type<tc>, window_params = [{transform_indices = @transform_0, window_bounds = array<i64: 4, 3, 1024>}, {pipeline_mode = #tpu.pipeline_mode<synchronous>, transform_indices = @transform_1, window_bounds = array<i64: 3, 1>}, {pipeline_mode = #tpu.pipeline_mode<synchronous>, transform_indices = @transform_2, window_bounds = array<i64: 3, 1>}, {transform_indices = @transform_3, window_bounds = array<i64: 4, 3, 1024>}]} {
    %c0 = arith.constant 0 : index
    %c0_0 = arith.constant 0 : index
    %c0_1 = arith.constant 0 : index
    %0 = vector.load %arg1[%c0, %c0_0, %c0_1] : memref<4x3x1024xbf16, #tpu.memory_space<vmem>>, vector<4x3x1024xbf16>
    %1 = arith.extf %0 : vector<4x3x1024xbf16> to vector<4x3x1024xf32>
    %c0_2 = arith.constant 0 : index
    %c0_3 = arith.constant 0 : index
    %2 = vector.load %arg2[%c0_2, %c0_3] : memref<3x1xf32, #tpu.memory_space<vmem>>, vector<3x1xf32>
    %3 = vector.shape_cast %2 : vector<3x1xf32> to vector<1x3x1xf32>
    %4 = vector.broadcast %3 : vector<1x3x1xf32> to vector<4x3x1024xf32>
    %5 = arith.mulf %1, %4 : vector<4x3x1024xf32>
    %c0_4 = arith.constant 0 : index
    %c0_5 = arith.constant 0 : index
    %6 = vector.load %arg3[%c0_4, %c0_5] : memref<3x1xf32, #tpu.memory_space<vmem>>, vector<3x1xf32>
    %7 = vector.shape_cast %6 : vector<3x1xf32> to vector<1x3x1xf32>
    %8 = vector.broadcast %7 : vector<1x3x1xf32> to vector<4x3x1024xf32>
    %9 = arith.addf %5, %8 : vector<4x3x1024xf32>
    %10 = math.tanh %9 : vector<4x3x1024xf32>
    %c0_6 = arith.constant 0 : index
    %c0_7 = arith.constant 0 : index
    %c0_8 = arith.constant 0 : index
    %11 = vector.load %arg4[%c0_6, %c0_7, %c0_8] : memref<4x3x1024xf32, #tpu.memory_space<vmem>>, vector<4x3x1024xf32>
    tpu.vector_store %arg4[%c0_6, %c0_7, %c0_8], %10 {strides = array<i32>} : memref<4x3x1024xf32, #tpu.memory_space<vmem>>, vector<4x3x1024xf32>,
    return
  }
  func.func @transform_0(%arg0: i32) -> (i32, i32, i32) {
    %c0_i32 = arith.constant 0 : i32
    %c0_i32_0 = arith.constant 0 : i32
    %c0_i32_1 = arith.constant 0 : i32
    return %c0_i32, %c0_i32_0, %arg0 : i32, i32, i32
  }
  func.func @transform_1(%arg0: i32) -> (i32, i32) {
    %c0_i32 = arith.constant 0 : i32
    %c0_i32_0 = arith.constant 0 : i32
    %c0_i32_1 = arith.constant 0 : i32
    return %c0_i32, %c0_i32_0 : i32, i32
  }
  func.func @transform_2(%arg0: i32) -> (i32, i32) {
    %c0_i32 = arith.constant 0 : i32
    %c0_i32_0 = arith.constant 0 : i32
    %c0_i32_1 = arith.constant 0 : i32
    return %c0_i32, %c0_i32_0 : i32, i32
  }
  func.func @transform_3(%arg0: i32) -> (i32, i32, i32) {
    %c0_i32 = arith.constant 0 : i32
    %c0_i32_0 = arith.constant 0 : i32
    %c0_i32_1 = arith.constant 0 : i32
    return %c0_i32, %c0_i32_0, %arg0 : i32, i32, i32
  }
}

</mosaic_0001>

<bundles_post_ra>
// kernel: generator_forward.10
= control target key start
LH: loop header
LB: loop body
LE: loop exit
PB: predicated region body
PF: predicated region fallthrough
CT: control target
= control target key end

     0   :  { %v453_v3 = vmov 0.0   ;;  %vm61_vm0 = vcmask 261120   ;;  %v454_v35 = vmov 1983009808   ;;  %v362_v37 = vlaneseq  ;;  %s531_s1 = inlined_call_operand.vmem [shape: bf16[32,1024], index: 1, kind: input, shape index: {}]   ;;  %s532_s0 = inlined_call_operand.vmem [shape: bf16[2,32], index: 0, kind: input, shape index: {}]   ;;  %s533_s2 = inlined_call_operand.vmem [shape: f32[2,1024], index: 2, kind: output, shape index: {}]  }
   0x1   :  { %v13_v0 = vld [vmem:[%s531_s1] sm:$0xff]  ;;  %v14_v2 = vld [vmem:[%s531_s1 + $0x8] sm:$0xff]  ;;  %129 = vmatprep.mubr.f32.mxu0 %v453_v3  ;;  %200 = vmatprep.mubr.f32.mxu1 %v453_v3  ;;  %v15_v15 = vld [vmem:[%s531_s1 + $0x10] sm:$0xff]  ;;  %v360_v36 = vunpack.c.l.s4 %v454_v35 }
   0x2   :  { %v17_v1 = vld [vmem:[%s531_s1 + $0x20] sm:$0xff]  ;;  %v18_v5 = vld [vmem:[%s531_s1 + $0x28] sm:$0xff]  ;;  %v19_v16 = vld [vmem:[%s531_s1 + $0x30] sm:$0xff]  ;;  %v363_v39 = vshrl.u32 %v362_v37, 7 }
   0x3   :  { %v435_v4 = vcombine.high %v13_v0, %v17_v1  ;;  %v436_v6 = vcombine.low %v13_v0, %v17_v1  ;;  %v21_v7 = vld [vmem:[%s531_s1 + $0x40] sm:$0xff]  ;;  %v439_v9 = vcombine.high %v14_v2, %v18_v5  ;;  %v440_v10 = vcombine.low %v14_v2, %v18_v5  ;;  %v22_v12 = vld [vmem:[%s531_s1 + $0x48] sm:$0xff]  ;;  %v16_v17 = vld [vmem:[%s531_s1 + $0x18] sm:$0xff] }
   0x4   :  { %v25_v8 = vld [vmem:[%s531_s1 + $0x60] sm:$0xff]  ;;  %v26_v13 = vld [vmem:[%s531_s1 + $0x68] sm:$0xff]  ;;  %v20_v20 = vld [vmem:[%s531_s1 + $0x38] sm:$0xff]  ;;  %v443_v22 = vcombine.high %v15_v15, %v19_v16  ;;  %v444_v29 = vcombine.low %v15_v15, %v19_v16  ;;  %v361_v38 = vunpack.c.0.s8 %v360_v36 }
   0x5   :  { %v437_v11 = vcombine.high %v21_v7, %v25_v8  ;;  %404 = vmatprep.subr.bf16.mxu0 %v435_v4  ;;  %v441_v14 = vcombine.high %v22_v12, %v26_v13  ;;  %412 = vmatprep.subr.bf16.mxu1 %v439_v9  ;;  %v438_v18 = vcombine.low %v21_v7, %v25_v8  ;;  %v11_v19 = vld [vmem:[%s532_s0] sm:$0x1]  ;;  %v23_v24 = vld [vmem:[%s531_s1 + $0x50] sm:$0xff]  ;;  %v24_v27 = vld [vmem:[%s531_s1 + $0x58] sm:$0xff] }
   0x6   :  { %406 = vmatpush1.bf16.msra.mxu0 %v436_v6  ;;  %414 = vmatpush1.bf16.msra.mxu1 %v440_v10  ;;  %v442_v21 = vcombine.low %v22_v12, %v26_v13  ;;  %v447_v23 = vcombine.high %v16_v17, %v20_v20  ;;  %v27_v25 = vld [vmem:[%s531_s1 + $0x70] sm:$0xff]  ;;  %v12_v26 = vunpack.c.l.bf16 %v11_v19  ;;  %v28_v28 = vld [vmem:[%s531_s1 + $0x78] sm:$0xff]  ;;  %v448_v30 = vcombine.low %v16_v17, %v20_v20 }
   0x7   :  { %408 = vmatprep.subr.bf16.mxu0 %v437_v11  ;;  %416 = vmatprep.subr.bf16.mxu1 %v441_v14  ;;  %v445_v31 = vcombine.high %v23_v24, %v27_v25  ;;  %v449_v32 = vcombine.high %v24_v27, %v28_v28  ;;  %v446_v33 = vcombine.low %v23_v24, %v27_v25 }
   0x8   :  { %v450_v34 = vcombine.low %v24_v27, %v28_v28  ;;  %v364_v41 = vsub.s32 %v361_v38, %v363_v39 }
   0xa   :  { %410 = vmatpush1.bf16.msra.mxu0 %v438_v18  ;;  %418 = vmatpush1.bf16.msra.mxu1 %v442_v21 }
   0xb   :  { %420 = vmatprep.subr.bf16.mxu0 %v443_v22  ;;  %428 = vmatprep.subr.bf16.mxu1 %v447_v23 }
   0xd   :  { %399 = vmatmul.mubr.msk.f32.vlgmr.msra.gmra.mrb[0].mxu0 %vm61_vm0, %v12_v26  ;;  %400 = vmatmul.mubr.msk.f32.vlgmr.msra.gmra.mrb[0].mxu1 %vm61_vm0, %v12_v26 }
   0xe   :  { %422 = vmatpush1.bf16.msra.mxu0 %v444_v29  ;;  %430 = vmatpush1.bf16.msra.mxu1 %v448_v30 }
   0xf   :  { %424 = vmatprep.subr.bf16.mxu0 %v445_v31  ;;  %432 = vmatprep.subr.bf16.mxu1 %v449_v32 }
  0x10   :  { %271 = vmatprep.mubr.f32.mxu0 %v453_v3  ;;  %342 = vmatprep.mubr.f32.mxu1 %v453_v3 }
  0x12   :  { %426 = vmatpush1.bf16.msra.mxu0 %v446_v33  ;;  %434 = vmatpush1.bf16.msra.mxu1 %v450_v34 }
  0x15   :  { %401 = vmatmul.mubr.msk.f32.vlgmr.msra.gmra.mrb[2].mxu0 %vm61_vm0, %v12_v26  ;;  %402 = vmatmul.mubr.msk.f32.vlgmr.msra.gmra.mrb[2].mxu1 %vm61_vm0, %v12_v26 }
  0xe0   :  { %v131_v40 = vpop.f32.mrb[0].mxu0  ;;  %v202_v42 = vpop.f32.mrb[0].mxu1 }
  0xe1   :  { %v133_v43 = vpop.f32.mrb[1].mxu0  ;;  %v204_v45 = vpop.f32.mrb[1].mxu1 }
  0xe2   :  { %v357_v44 = vcombine.low %v131_v40, %v133_v43  ;;  %v358_v46 = vcombine.low %v202_v42, %v204_v45 }
  0xe4   :  { %v365_v47 = vrot.slane %v357_v44, %v364_v41  ;;  %v372_v48 = vrot.slane %v358_v46, %v364_v41 }
  0xe6   :  { %v373_v49 = vcombine.low %v365_v47, %v372_v48 }
  0xe8   :  { %v273_v50 = vpop.f32.mrb[2].mxu0  ;;  %393 = vst [vmem:[%s533_s2] sm:$0xff] %v373_v49  ;;  %v344_v51 = vpop.f32.mrb[2].mxu1 }
  0xe9   :  { %v275_v52 = vpop.f32.mrb[3].mxu0  ;;  %v346_v54 = vpop.f32.mrb[3].mxu1 }
  0xea   :  { %v374_v53 = vcombine.low %v273_v50, %v275_v52  ;;  %v375_v55 = vcombine.low %v344_v51, %v346_v54 }
  0xec   :  { %v382_v56 = vrot.slane %v374_v53, %v364_v41  ;;  %v389_v57 = vrot.slane %v375_v55, %v364_v41 }
  0xee   :  { %v390_v58 = vcombine.low %v382_v56, %v389_v57 }
  0xf0   :  { %394 = vst [vmem:[%s533_s2 + $0x8] sm:$0xff] %v390_v58 }

// kernel: generator_forward.11
= control target key start
LH: loop header
LB: loop body
LE: loop exit
PB: predicated region body
PF: predicated region fallthrough
CT: control target
= control target key end

     0   :  { %v206_v0 = vmov 0   ;;  %vm174_vm0 = vcmask 257024   ;;  %s331_s1 = inlined_call_operand.vmem [shape: f32[64,1], index: 1, kind: input, shape index: {}]   ;;  %s332_s2 = inlined_call_operand.vmem [shape: f32[64,1], index: 2, kind: input, shape index: {}]   ;;  %s333_s0 = inlined_call_operand.vmem [shape: f32[1,64,32], index: 0, kind: input, shape index: {}]   ;;  %s334_s3 = inlined_call_operand.vmem [shape: bf16[1,64,32], index: 3, kind: output, shape index: {}]  }
   0x1   :  { %205 = vset.pattern.permute.xlu1 %v206_v0  ;;  %204 = vset.pattern.permute.xlu0 %v206_v0  ;;  %v24_v1 = vld [vmem:[%s331_s1 + $0x10] sm:$0xff]  ;;  %v22_v2 = vld [vmem:[%s331_s1] sm:$0xff]  ;;  %v25_v3 = vld [vmem:[%s331_s1 + $0x18] sm:$0xff] }
   0x2   :  { %42 = vperm.xlu1 %205, %v24_v1   ;;  %32 = vperm.xlu0 %204, %v22_v2   ;;  %v23_v4 = vld [vmem:[%s331_s1 + $0x8] sm:$0xff]  ;;  %v26_v6 = vld [vmem:[%s331_s1 + $0x20] sm:$0xff]  ;;  %v29_v7 = vld [vmem:[%s331_s1 + $0x38] sm:$0xff] }
   0x3   :  { %v27_v5 = vld [vmem:[%s331_s1 + $0x28] sm:$0xff]  ;;  %v28_v8 = vld [vmem:[%s331_s1 + $0x30] sm:$0xff]  ;;  %v78_v10 = vld [vmem:[%s332_s2] sm:$0xff] }
   0x4   :  { %v79_v9 = vld [vmem:[%s332_s2 + $0x8] sm:$0xff]  ;;  %v81_v11 = vld [vmem:[%s332_s2 + $0x18] sm:$0xff]  ;;  %v80_v12 = vld [vmem:[%s332_s2 + $0x10] sm:$0xff] }
   0x5   :  { %v83_v13 = vld [vmem:[%s332_s2 + $0x28] sm:$0xff]  ;;  %v82_v14 = vld [vmem:[%s332_s2 + $0x20] sm:$0xff]  ;;  %v85_v15 = vld [vmem:[%s332_s2 + $0x38] sm:$0xff] }
   0x6   :  { %47 = vperm.xlu1 %205, %v25_v3   ;;  %37 = vperm.xlu0 %204, %v23_v4   ;;  %v84_v16 = vld [vmem:[%s332_s2 + $0x30] sm:$0xff]  ;;  %v14_v23 = vld [vmem:[%s333_s0] sm:$0xff]  ;;  %v15_v24 = vld [vmem:[%s333_s0 + $0x8] sm:$0xff] }
   0x7   :  { %v16_v29 = vld [vmem:[%s333_s0 + $0x10] sm:$0xff]  ;;  %v17_v30 = vld [vmem:[%s333_s0 + $0x18] sm:$0xff]  ;;  %v19_v39 = vld [vmem:[%s333_s0 + $0x28] sm:$0xff] }
   0x8   :  { %v18_v40 = vld [vmem:[%s333_s0 + $0x20] sm:$0xff]  ;;  %v21_v51 = vld [vmem:[%s333_s0 + $0x38] sm:$0xff]  ;;  %v20_v52 = vld [vmem:[%s333_s0 + $0x30] sm:$0xff] }
   0xa   :  { %57 = vperm.xlu1 %205, %v27_v5   ;;  %52 = vperm.xlu0 %204, %v26_v6  }
   0xe   :  { %67 = vperm.xlu1 %205, %v29_v7   ;;  %62 = vperm.xlu0 %204, %v28_v8  }
  0x12   :  { %93 = vperm.xlu1 %205, %v79_v9   ;;  %88 = vperm.xlu0 %204, %v78_v10  }
  0x16   :  { %103 = vperm.xlu1 %205, %v81_v11   ;;  %98 = vperm.xlu0 %204, %v80_v12  }
  0x1a   :  { %113 = vperm.xlu1 %205, %v83_v13   ;;  %108 = vperm.xlu0 %204, %v82_v14  }
  0x1e   :  { %123 = vperm.xlu1 %205, %v85_v15   ;;  %118 = vperm.xlu0 %204, %v84_v16  }
  0x81   :  { %v43_v17 = vpop.permute.xlu1 %42  ;;  %v33_v18 = vpop.permute.xlu0 %32 }
  0x82   :  { %v70_v27 = vmul.f32 %v33_v18, %v14_v23  ;;  %v72_v35 = vmul.f32 %v43_v17, %v16_v29 }
  0x85   :  { %v48_v19 = vpop.permute.xlu1 %47  ;;  %v38_v20 = vpop.permute.xlu0 %37 }
  0x86   :  { %v71_v28 = vmul.f32 %v38_v20, %v15_v24  ;;  %v73_v36 = vmul.f32 %v48_v19, %v17_v30 }
  0x89   :  { %v58_v21 = vpop.permute.xlu1 %57  ;;  %v53_v22 = vpop.permute.xlu0 %52 }
  0x8a   :  { %v75_v47 = vmul.f32 %v58_v21, %v19_v39  ;;  %v74_v48 = vmul.f32 %v53_v22, %v18_v40 }
  0x8d   :  { %v68_v25 = vpop.permute.xlu1 %67  ;;  %v63_v26 = vpop.permute.xlu0 %62 }
  0x8e   :  { %v77_v59 = vmul.f32 %v68_v25, %v21_v51  ;;  %v76_v60 = vmul.f32 %v63_v26, %v20_v52 }
  0x91   :  { %v94_v31 = vpop.permute.xlu1 %93  ;;  %v89_v32 = vpop.permute.xlu0 %88 }
  0x92   :  { %v127_v33 = vadd.f32 %v94_v31, %v71_v28  ;;  %v126_v34 = vadd.f32 %v89_v32, %v70_v27 }
  0x94   :  { %v135_v37 = vmax.f32 %v127_v33, 0.0  ;;  %v134_v38 = vmax.f32 %v126_v34, 0.0 }
  0x95   :  { %v104_v41 = vpop.permute.xlu1 %103  ;;  %v99_v42 = vpop.permute.xlu0 %98 }
  0x96   :  { %v196_v43 = vpack.c.bf16 %v135_v37, %v135_v37  ;;  %v195_v44 = vpack.c.bf16 %v134_v38, %v134_v38  ;;  %v129_v45 = vadd.f32 %v104_v41, %v73_v36  ;;  %v128_v46 = vadd.f32 %v99_v42, %v72_v35 }
  0x98   :  { %176 = vst.msk [vmem:[%s334_s3 + $0x4] sm:$0xf] %vm174_vm0, %v196_v43  ;;  %175 = vst.msk [vmem:[%s334_s3] sm:$0xf] %vm174_vm0, %v195_v44  ;;  %v137_v49 = vmax.f32 %v129_v45, 0.0  ;;  %v136_v50 = vmax.f32 %v128_v46, 0.0 }
  0x99   :  { %v114_v53 = vpop.permute.xlu1 %113  ;;  %v109_v54 = vpop.permute.xlu0 %108 }
  0x9a   :  { %v198_v55 = vpack.c.bf16 %v137_v49, %v137_v49  ;;  %v197_v56 = vpack.c.bf16 %v136_v50, %v136_v50  ;;  %v131_v57 = vadd.f32 %v114_v53, %v75_v47  ;;  %v130_v58 = vadd.f32 %v109_v54, %v74_v48 }
  0x9c   :  { %178 = vst.msk [vmem:[%s334_s3 + $0xc] sm:$0xf] %vm174_vm0, %v198_v55  ;;  %177 = vst.msk [vmem:[%s334_s3 + $0x8] sm:$0xf] %vm174_vm0, %v197_v56  ;;  %v139_v61 = vmax.f32 %v131_v57, 0.0  ;;  %v138_v62 = vmax.f32 %v130_v58, 0.0 }
  0x9d   :  { %v124_v63 = vpop.permute.xlu1 %123  ;;  %v119_v0 = vpop.permute.xlu0 %118 }
  0x9e   :  { %v200_v1 = vpack.c.bf16 %v139_v61, %v139_v61  ;;  %v199_v2 = vpack.c.bf16 %v138_v62, %v138_v62  ;;  %v133_v3 = vadd.f32 %v124_v63, %v77_v59  ;;  %v132_v4 = vadd.f32 %v119_v0, %v76_v60 }
  0xa0   :  { %180 = vst.msk [vmem:[%s334_s3 + $0x14] sm:$0xf] %vm174_vm0, %v200_v1  ;;  %179 = vst.msk [vmem:[%s334_s3 + $0x10] sm:$0xf] %vm174_vm0, %v199_v2  ;;  %v141_v5 = vmax.f32 %v133_v3, 0.0  ;;  %v140_v6 = vmax.f32 %v132_v4, 0.0 }
  0xa2   :  { %v202_v7 = vpack.c.bf16 %v141_v5, %v141_v5  ;;  %v201_v8 = vpack.c.bf16 %v140_v6, %v140_v6 }
  0xa4   :  { %182 = vst.msk [vmem:[%s334_s3 + $0x1c] sm:$0xf] %vm174_vm0, %v202_v7  ;;  %181 = vst.msk [vmem:[%s334_s3 + $0x18] sm:$0xf] %vm174_vm0, %v201_v8 }

// kernel: generator_forward.12
= control target key start
LH: loop header
LB: loop body
LE: loop exit
PB: predicated region body
PF: predicated region fallthrough
CT: control target
= control target key end

     0   :  { %s1172_s0 = inlined_call_operand.hbm [shape: s32[4,4], index: 0, kind: input, shape index: {}]   ;;  %s1173_s1 = inlined_call_operand.vmem [shape: bf16[4,4,32,64], index: 1, kind: input, shape index: {}]   ;;  %s1174_s2 = inlined_call_operand.vmem [shape: bf16[9,64,32], index: 2, kind: input, shape index: {}]   ;;  %s1175_s3 = inlined_call_operand.vmem [shape: bf16[4,32,32], index: 3, kind: output, shape index: {0}]   ;;  %s1176_s4 = inlined_call_operand.vmem [shape: f32[4,32,1], index: 4, kind: output, shape index: {1}]   ;;  %s1177_s5 = inlined_call_operand.vmem [shape: f32[4,32,1], index: 5, kind: output, shape index: {2}]  }
   0x1   :  { %s942_s20 = scalar_lea.hbm %s1172_s0, 64 }
   0x2   :  { %p943_p0 = scmp.ne.s32.totalorder %s1172_s0, %s942_s20  ;;  %p946_p1 = scmp.lt.u32.totalorder %s942_s20, %s1172_s0 }
   0x4   :  { %p948_p2 = pnand %p946_p1, %p943_p0 }
   0x6   :  { %951 = shalt.err (!%p948_p2)  }
   0x7   :  { %s994_s25 = smov [#allocation4]  }
   0x8   :  { %12 = dma.hbm_to_smem %s1172_s0, 64, %s994_s25, [#allocation3] }
   0x9   :  { %972 = dma.done.wait [#allocation3], 64 }
   0xa   :  { %973 = vsyncadd [#allocation3], 4294967232 }
   0xb   :  { %14 = sfence }
   0xc   :  { %s1039_s28 = smov 0   ;;  %s1041_s29 = smov 0  }
   0xd   :  { %s1043_s30 = smov 0   ;;  %s1045_s6 = smov 0  }
   0xe   :  { %s1047_s7 = smov 0  }
   0xf LB: > { %s32_s0 = sadd.s32 1, %s984_s30  ;;  %s39_s8 = sadd.s32 1, %s988_s6  ;;  %s992_s7 = sphi %s1047_s7, %s20_s7   ;;  %s988_s6 = sphi %s1045_s6, %s1185_s6   ;;  %s984_s30 = sphi %s1043_s30, %s1184_s30   ;;  %s980_s29 = sphi %s1041_s29, %s1183_s29   ;;  %s976_s28 = sphi %s1039_s28, %s1182_s28  }
  0x10   : > { %p33_p3 = scmp.ge.s32.totalorder %s32_s0, 4  ;;  %p778_p4 = scmp.ge.s32.totalorder %s992_s7, 1 }
  0x11   : > { %p246_p5 = scmp.lt.s32.totalorder %s992_s7, 17 }
  0x12   : > { %s1187_s0 = smov (%p33_p3, %s32_s0), 0  ;;  %s1189_s8 = smov (!%p33_p3, %s39_s8), %s988_s6 }
  0x13   : > { %1178 = sst [smem:[#allocation6_spill]] %s1187_s0  ;;  %p247_p6 = pnand %p778_p4, %p246_p5 }
  0x14   : > { %p41_p7 = scmp.ge.s32.totalorder %s1189_s8, 4  ;;  %p305_p8 = scmp.lt.s32.totalorder (!%p247_p6), %s980_s29, 3 }
  0x15   : > { %250 = sbr.rel (%p247_p6) target bundleno = 440 (0x1b8), region = 28  ;;  %p307_p9 = scmp.lt.s32.totalorder (!%p247_p6), %s976_s28, 3 }
  0x16   : > { %s1191_s8 = smov (%p41_p7, %s1189_s8), 0  ;;  %s314_s9 = sshra.s32 (!%p247_p6), %s976_s28, 7 }
  0x17   : > { %1179 = sst [smem:[#allocation7_spill]] %s1191_s8  ;;  %s319_s10 = sand.u32 (!%p247_p6), 127, %s976_s28 }
  0x18   : > { %s316_s14 = sadd.s32 (!%p247_p6), %s980_s29, %s314_s9  ;;  %p356_p10 = scmp.eq.s32.totalorder (!%p247_p6), %s976_s28, 0 }
  0x19   : > { %s782_s16 = sshll.u32 (!%p247_p6), %s316_s14, 7  ;;  %p791_p12 = scmp.ne.s32.totalorder (!%p247_p6), %s976_s28, 0 }
  0x1a   : > { %s320_s18 = sadd.s32 (!%p247_p6), %s782_s16, %s319_s10 }
  0x1b   : > { %s321_s20 = sld [smem:[#allocation4 + %s320_s18]] (!%p247_p6) }
  0x1c   : > { %s306_s11 = scalar_select %p305_p8, %s980_s29, 3 }
  0x1d   : > { %s308_s12 = scalar_select %p307_p9, %s976_s28, 3 }
  0x1e   : > { %s780_s13 = sshll.u32 %s306_s11, 4  ;;  %s806_s27 = sshll.u32 %s306_s11, 5  ;;  %vm360_vm0 = vcmask (!%p791_p12), 261120   ;;  %v995_v0 = vmov (!%p791_p12), 0.0  }
  0x1f   : > { %s779_s15 = sshll.u32 %s308_s12, 2  ;;  %s1081_s26 = scalar_lea.vmem %s1175_s3, %s780_s13  ;;  %361 = vst.msk [vmem:[#allocation2] sm:$0xff] (!%p791_p12), %vm360_vm0, %v995_v0  ;;  %362 = vst.msk [vmem:[#allocation2 + $0x8] sm:$0xff] (!%p791_p12), %vm360_vm0, %v995_v0 }
  0x20   : > { %s311_s17 = sadd.s32 %s780_s13, %s779_s15  ;;  %s1087_s29 = scalar_lea.vmem %s1176_s4, %s806_s27  ;;  %363 = vst.msk [vmem:[#allocation2 + $0x10] sm:$0xff] (!%p791_p12), %vm360_vm0, %v995_v0  ;;  %364 = vst.msk [vmem:[#allocation2 + $0x18] sm:$0xff] (!%p791_p12), %vm360_vm0, %v995_v0 }
  0x21   : > { %s781_s19 = sshll.u32 %s311_s17, 2  ;;  %s1092_s12 = scalar_lea.vmem %s1177_s5, %s806_s27 }
  0x22   : > { %s313_s23 = scalar_lea.vmem %s1173_s1, %s781_s19  ;;  %p322_p11 = scmp.lt.s32.totalorder %s321_s20, 8 }
  0x23   : > { %359 = sbr.rel (%p791_p12) target bundleno = 42 (0x2a), region = 32 }
  0x24   : > { %s1193_s20 = smov (!%p322_p11, %s321_s20), 8 }
  0x25   : > { %s804_s14 = sshll.u32 %s1193_s20, 5 }
  0x26   : > { %s329_s13 = scalar_lea.vmem %s1174_s2, %s804_s14 }
  0x2a PF: > { %v822_v1 = vld [vmem:[%s329_s13] sm:$0xff]   ;;  %v838_v2 = vld [vmem:[%s329_s13 + $0x8] sm:$0xff]   ;;  %vm393_vm1 = vcmask 523264   ;;  %v839_v7 = vld [vmem:[%s329_s13 + $0x10] sm:$0xff]   ;;  %vm495_vm2 = vcmask 261120   ;;  %vm505_vm3 = vcmask (%p356_p10), 7168  }
  0x2b   : > { %876 = vmatprep.subr.bf16.mxu0 %v822_v1  ;;  %891 = vmatprep.subr.bf16.mxu1 %v822_v1  ;;  %v814_v3 = vld [vmem:[%s313_s23] sm:$0xff]   ;;  %v837_v4 = vld [vmem:[%s313_s23 + $0x8] sm:$0xff]   ;;  %v840_v8 = vld [vmem:[%s329_s13 + $0x18] sm:$0xff]   ;;  %v996_v23 = vmov (%p356_p10), 0.0  }
  0x2c   : > { %878 = vmatpush3.bf16.msra.mxu0 %v822_v1  ;;  %895 = vmatpush3.bf16.msra.mxu1 %v822_v1  ;;  %v815_v5 = vunpack.c.l.bf16 %v814_v3  ;;  %v819_v6 = vunpack.c.l.bf16 %v837_v4  ;;  %v816_v9 = vunpack.c.h.bf16 %v814_v3  ;;  %v820_v10 = vunpack.c.h.bf16 %v837_v4  ;;  %v366_v11 = vld [vmem:[#allocation2 + $0x8] sm:$0xff]  ;;  %v368_v12 = vld [vmem:[#allocation2 + $0x18] sm:$0xff]  ;;  %v365_v13 = vld [vmem:[#allocation2] sm:$0xff]  ;;  %506 = vst.msk [vmem:[%s1087_s29] sm:$0xff] (%p356_p10), %vm505_vm3, %v996_v23 }
  0x2d   : > { %880 = vmatprep.subr.bf16.mxu0 %v838_v2  ;;  %892 = vmatprep.subr.bf16.mxu1 %v838_v2  ;;  %v367_v14 = vld [vmem:[#allocation2 + $0x10] sm:$0xff]  ;;  %507 = vst.msk [vmem:[%s1087_s29 + $0x8] sm:$0xff] (%p356_p10), %vm505_vm3, %v996_v23  ;;  %508 = vst.msk [vmem:[%s1087_s29 + $0x10] sm:$0xff] (%p356_p10), %vm505_vm3, %v996_v23 }
  0x2e   : > { %869 = vmatprep.mubr.msk.f32.mxu0 %vm393_vm1, %v815_v5  ;;  %872 = vmatprep.mubr.msk.f32.mxu1 %vm393_vm1, %v819_v6  ;;  %509 = vst.msk [vmem:[%s1087_s29 + $0x18] sm:$0xff] (%p356_p10), %vm505_vm3, %v996_v23  ;;  %510 = vst.msk [vmem:[%s1092_s12] sm:$0xff] (%p356_p10), %vm505_vm3, %v996_v23 }
  0x2f   : > { %511 = vst.msk [vmem:[%s1092_s12 + $0x8] sm:$0xff] (%p356_p10), %vm505_vm3, %v996_v23  ;;  %512 = vst.msk [vmem:[%s1092_s12 + $0x10] sm:$0xff] (%p356_p10), %vm505_vm3, %v996_v23 }
  0x30   : > { %882 = vmatpush3.bf16.msra.mxu0 %v838_v2  ;;  %896 = vmatpush3.bf16.msra.mxu1 %v838_v2  ;;  %513 = vst.msk [vmem:[%s1092_s12 + $0x18] sm:$0xff] (%p356_p10), %vm505_vm3, %v996_v23 }
  0x31   : > { %884 = vmatprep.subr.bf16.mxu0 %v839_v7  ;;  %893 = vmatprep.subr.bf16.mxu1 %v839_v7 }
  0x34   : > { %886 = vmatpush3.bf16.msra.mxu0 %v839_v7  ;;  %897 = vmatpush3.bf16.msra.mxu1 %v839_v7 }
  0x35   : > { %888 = vmatprep.subr.bf16.mxu0 %v840_v8  ;;  %894 = vmatprep.subr.bf16.mxu1 %v840_v8 }
  0x38   : > { %890 = vmatpush3.bf16.msra.mxu0 %v840_v8  ;;  %898 = vmatpush3.bf16.msra.mxu1 %v840_v8 }
  0x3b   : > { %870 = vmatmul.mubr.msk.f32.vlgmr.msra.gmra.mrb[0].mxu0 %vm393_vm1, %v816_v9  ;;  %873 = vmatmul.mubr.msk.f32.vlgmr.msra.gmra.mrb[0].mxu1 %vm393_vm1, %v820_v10 }
 0x10c   : > { %504 = sbr.rel (!%p356_p10) target bundleno = 275 (0x113), region = 36 }
 0x10e   : > { %v871_v15 = vpop.f32.mrb[0].mxu0  ;;  %v874_v16 = vpop.f32.mrb[0].mxu1 }
 0x10f   : > { %v492_v17 = vadd.f32 %v871_v15, %v366_v11  ;;  %v494_v18 = vadd.f32 %v874_v16, %v368_v12  ;;  %v472_v19 = vpop.f32.mrb[1].mxu0  ;;  %v482_v20 = vpop.f32.mrb[1].mxu1 }
 0x110   : > { %v491_v21 = vadd.f32 %v472_v19, %v365_v13  ;;  %v493_v22 = vadd.f32 %v482_v20, %v367_v14 }
 0x111   : > { %497 = vst.msk [vmem:[#allocation2 + $0x8] sm:$0xff] %vm495_vm2, %v492_v17  ;;  %499 = vst.msk [vmem:[#allocation2 + $0x18] sm:$0xff] %vm495_vm2, %v494_v18 }
 0x112   : > { %496 = vst.msk [vmem:[#allocation2] sm:$0xff] %vm495_vm2, %v491_v21  ;;  %498 = vst.msk [vmem:[#allocation2 + $0x10] sm:$0xff] %vm495_vm2, %v493_v22 }
 0x113 PF: > { %p797_p13 = scmp.ne.s32.totalorder %s976_s28, 3 }
 0x114   : > { %vm538_vm4 = vcmask (!%p797_p13), 257024   ;;  %v545_v44 = vld [vmem:[%s1087_s29 + $0x10] sm:$0xff] (!%p797_p13)  ;;  %v543_v45 = vld [vmem:[%s1087_s29] sm:$0xff] (!%p797_p13)  ;;  %vm563_vm5 = vcmask (!%p797_p13), 7168   ;;  %v546_v50 = vld [vmem:[%s1087_s29 + $0x18] sm:$0xff] (!%p797_p13) }
 0x115   : > { %517 = sbr.rel (%p797_p13) target bundleno = 440 (0x1b8), region = 40  ;;  %v544_v51 = vld [vmem:[%s1087_s29 + $0x8] sm:$0xff] (!%p797_p13)  ;;  %v568_v57 = vld [vmem:[%s1092_s12] sm:$0xff] (!%p797_p13)  ;;  %v571_v62 = vld [vmem:[%s1092_s12 + $0x18] sm:$0xff] (!%p797_p13) }
 0x116   : > { %v569_v56 = vld [vmem:[%s1092_s12 + $0x8] sm:$0xff] (!%p797_p13)  ;;  %v570_v63 = vld [vmem:[%s1092_s12 + $0x10] sm:$0xff] (!%p797_p13) }
 0x118   : > { %v521_v26 = vld [vmem:[#allocation2 + $0x18] sm:$0xff] (!%p797_p13)  ;;  %v519_v31 = vld [vmem:[#allocation2 + $0x8] sm:$0xff] (!%p797_p13) }
 0x119   : > { %v520_v24 = vld [vmem:[#allocation2 + $0x10] sm:$0xff] (!%p797_p13)  ;;  %v518_v25 = vld [vmem:[#allocation2] sm:$0xff] (!%p797_p13)  ;;  %v812_v32 = vpack.c.bf16 (!%p797_p13), %v521_v26, %v521_v26  ;;  %v810_v33 = vpack.c.bf16 (!%p797_p13), %v519_v31, %v519_v31  ;;  %v556_v34 = vsel (!%p797_p13), %vm495_vm2, %v521_v26, 0.0  ;;  %v550_v35 = vsel (!%p797_p13), %vm495_vm2, %v519_v31, 0.0 }
 0x11a   : > { %v553_v27 = vsel (!%p797_p13), %vm495_vm2, %v520_v24, 0.0  ;;  %v811_v28 = vpack.c.bf16 (!%p797_p13), %v520_v24, %v520_v24  ;;  %v547_v29 = vsel (!%p797_p13), %vm495_vm2, %v518_v25, 0.0  ;;  %v809_v30 = vpack.c.bf16 (!%p797_p13), %v518_v25, %v518_v25 }
 0x11b   : > { %554 = vadd.xlane.f32.xlu1 (!%p797_p13), %v553_v27  ;;  %548 = vadd.xlane.f32.xlu0 (!%p797_p13), %v547_v29  ;;  %v573_v36 = vmul.f32 (!%p797_p13), %v519_v31, %v519_v31  ;;  %v572_v37 = vmul.f32 (!%p797_p13), %v518_v25, %v518_v25  ;;  %542 = vst.msk [vmem:[%s1081_s26 + $0xc] sm:$0xf] (!%p797_p13), %vm538_vm4, %v812_v32  ;;  %540 = vst.msk [vmem:[%s1081_s26 + $0x4] sm:$0xf] (!%p797_p13), %vm538_vm4, %v810_v33 }
 0x11c   : > { %541 = vst.msk [vmem:[%s1081_s26 + $0x8] sm:$0xf] %vm538_vm4, %v811_v28  ;;  %539 = vst.msk [vmem:[%s1081_s26] sm:$0xf] %vm538_vm4, %v809_v30  ;;  %v575_v40 = vmul.f32 %v521_v26, %v521_v26  ;;  %v574_v41 = vmul.f32 %v520_v24, %v520_v24 }
 0x11d   : > { %v579_v38 = vsel %vm495_vm2, %v573_v36, 0.0  ;;  %v576_v39 = vsel %vm495_vm2, %v572_v37, 0.0 }
 0x11e   : > { %v585_v42 = vsel %vm495_vm2, %v575_v40, 0.0  ;;  %v582_v43 = vsel %vm495_vm2, %v574_v41, 0.0 }
 0x11f   : > { %557 = vadd.xlane.f32.xlu1 %v556_v34  ;;  %551 = vadd.xlane.f32.xlu0 %v550_v35 }
 0x123   : > { %580 = vadd.xlane.f32.xlu1 %v579_v38  ;;  %577 = vadd.xlane.f32.xlu0 %v576_v39 }
 0x127   : > { %586 = vadd.xlane.f32.xlu1 %v585_v42  ;;  %583 = vadd.xlane.f32.xlu0 %v582_v43 }
 0x1a8   : > { %v555_v46 = vpop.xlane.xlu1 %554  ;;  %v549_v47 = vpop.xlane.xlu0 %548 }
 0x1a9   : > { %v561_v48 = vadd.f32 %v555_v46, %v545_v44  ;;  %v559_v49 = vadd.f32 %v549_v47, %v543_v45 }
 0x1ab   : > { %566 = vst.msk [vmem:[%s1087_s29 + $0x10] sm:$0xff] %vm563_vm5, %v561_v48  ;;  %564 = vst.msk [vmem:[%s1087_s29] sm:$0xff] %vm563_vm5, %v559_v49 }
 0x1ac   : > { %v558_v52 = vpop.xlane.xlu1 %557  ;;  %v552_v53 = vpop.xlane.xlu0 %551 }
 0x1ad   : > { %v562_v54 = vadd.f32 %v558_v52, %v546_v50  ;;  %v560_v55 = vadd.f32 %v552_v53, %v544_v51 }
 0x1af   : > { %567 = vst.msk [vmem:[%s1087_s29 + $0x18] sm:$0xff] %vm563_vm5, %v562_v54  ;;  %565 = vst.msk [vmem:[%s1087_s29 + $0x8] sm:$0xff] %vm563_vm5, %v560_v55 }
 0x1b0   : > { %v581_v58 = vpop.xlane.xlu1 %580  ;;  %v578_v59 = vpop.xlane.xlu0 %577 }
 0x1b1   : > { %v589_v60 = vadd.f32 %v581_v58, %v569_v56  ;;  %v588_v61 = vadd.f32 %v578_v59, %v568_v57 }
 0x1b3   : > { %593 = vst.msk [vmem:[%s1092_s12 + $0x8] sm:$0xff] %vm563_vm5, %v589_v60  ;;  %592 = vst.msk [vmem:[%s1092_s12] sm:$0xff] %vm563_vm5, %v588_v61 }
 0x1b4   : > { %v587_v0 = vpop.xlane.xlu1 %586  ;;  %v584_v1 = vpop.xlane.xlu0 %583 }
 0x1b5   : > { %v591_v2 = vadd.f32 %v587_v0, %v571_v62  ;;  %v590_v3 = vadd.f32 %v584_v1, %v570_v63 }
 0x1b7   : > { %595 = vst.msk [vmem:[%s1092_s12 + $0x18] sm:$0xff] %vm563_vm5, %v591_v2  ;;  %594 = vst.msk [vmem:[%s1092_s12 + $0x10] sm:$0xff] %vm563_vm5, %v590_v3 }
 0x1b8 PF: > { %s20_s7 = sadd.s32 1, %s992_s7   ;;  %s1180_s0 = sld [smem:[#allocation6_spill]] }
 0x1b9   : > { %p17_p0 = scmp.ge.s32.totalorder %s20_s7, 18   ;;  %s1181_s8 = sld [smem:[#allocation7_spill]] }
 0x1ba   : > { %s1182_s28 = smov %s984_s30  ;;  %s1183_s29 = smov %s988_s6 }
 0x1bb   :  { %19 = sbr.rel (!%p17_p0) target bundleno = 15 (0xf), region = 97 }
 0x1be   : > { %s1184_s30 = smov %s1180_s0 }
 0x1bf   : > { %s1185_s6 = smov %s1181_s8 }

// kernel: generator_forward.13
= control target key start
LH: loop header
LB: loop body
LE: loop exit
PB: predicated region body
PF: predicated region fallthrough
CT: control target
= control target key end

     0   :  { %v301_v0 = vmov 0   ;;  %vm206_vm0 = vcmask 257024   ;;  %s434_s1 = inlined_call_operand.vmem [shape: f32[32,1], index: 1, kind: input, shape index: {}]   ;;  %s435_s2 = inlined_call_operand.vmem [shape: f32[32,1], index: 2, kind: input, shape index: {}]   ;;  %s436_s0 = inlined_call_operand.vmem [shape: bf16[4,32,32], index: 0, kind: input, shape index: {}]   ;;  %s437_s3 = inlined_call_operand.vmem [shape: bf16[4,32,32], index: 3, kind: output, shape index: {}]  }
   0x1   :  { %300 = vset.pattern.permute.xlu1 %v301_v0  ;;  %299 = vset.pattern.permute.xlu0 %v301_v0  ;;  %v48_v1 = vld [vmem:[%s434_s1 + $0x10] sm:$0xff]  ;;  %v46_v2 = vld [vmem:[%s434_s1] sm:$0xff]  ;;  %v49_v3 = vld [vmem:[%s434_s1 + $0x18] sm:$0xff] }
   0x2   :  { %62 = vperm.xlu1 %300, %v48_v1   ;;  %52 = vperm.xlu0 %299, %v46_v2   ;;  %v47_v4 = vld [vmem:[%s434_s1 + $0x8] sm:$0xff]  ;;  %v86_v6 = vld [vmem:[%s435_s2] sm:$0xff]  ;;  %v89_v7 = vld [vmem:[%s435_s2 + $0x18] sm:$0xff] }
   0x3   :  { %v87_v5 = vld [vmem:[%s435_s2 + $0x8] sm:$0xff]  ;;  %v88_v8 = vld [vmem:[%s435_s2 + $0x10] sm:$0xff]  ;;  %v260_v9 = vld [vmem:[%s436_s0] sm:$0xff]  }
   0x4   :  { %v292_v10 = vld [vmem:[%s436_s0 + $0x10] sm:$0xff]   ;;  %v294_v11 = vld [vmem:[%s436_s0 + $0x20] sm:$0xff]   ;;  %v291_v13 = vld [vmem:[%s436_s0 + $0x8] sm:$0xff]   ;;  %v261_v19 = vunpack.c.l.bf16 %v260_v9  ;;  %v262_v27 = vunpack.c.h.bf16 %v260_v9 }
   0x5   :  { %v296_v12 = vld [vmem:[%s436_s0 + $0x30] sm:$0xff]   ;;  %v293_v14 = vld [vmem:[%s436_s0 + $0x18] sm:$0xff]   ;;  %v295_v15 = vld [vmem:[%s436_s0 + $0x28] sm:$0xff]   ;;  %v269_v20 = vunpack.c.l.bf16 %v292_v10  ;;  %v277_v21 = vunpack.c.l.bf16 %v294_v11  ;;  %v265_v23 = vunpack.c.l.bf16 %v291_v13  ;;  %v270_v28 = vunpack.c.h.bf16 %v292_v10 }
   0x6   :  { %67 = vperm.xlu1 %300, %v49_v3   ;;  %57 = vperm.xlu0 %299, %v47_v4   ;;  %v297_v16 = vld [vmem:[%s436_s0 + $0x38] sm:$0xff]   ;;  %v285_v22 = vunpack.c.l.bf16 %v296_v12  ;;  %v273_v24 = vunpack.c.l.bf16 %v293_v14  ;;  %v281_v25 = vunpack.c.l.bf16 %v295_v15  ;;  %v278_v29 = vunpack.c.h.bf16 %v294_v11 }
   0x7   :  { %v289_v26 = vunpack.c.l.bf16 %v297_v16  ;;  %v286_v30 = vunpack.c.h.bf16 %v296_v12  ;;  %v266_v33 = vunpack.c.h.bf16 %v291_v13  ;;  %v274_v34 = vunpack.c.h.bf16 %v293_v14 }
   0x8   :  { %v282_v35 = vunpack.c.h.bf16 %v295_v15  ;;  %v290_v36 = vunpack.c.h.bf16 %v297_v16 }
   0xa   :  { %97 = vperm.xlu1 %300, %v87_v5   ;;  %92 = vperm.xlu0 %299, %v86_v6  }
   0xe   :  { %107 = vperm.xlu1 %300, %v89_v7   ;;  %102 = vperm.xlu0 %299, %v88_v8  }
  0x81   :  { %v63_v17 = vpop.permute.xlu1 %62  ;;  %v53_v18 = vpop.permute.xlu0 %52 }
  0x82   :  { %v70_v37 = vmul.f32 %v261_v19, %v53_v18  ;;  %v74_v38 = vmul.f32 %v269_v20, %v53_v18  ;;  %v78_v39 = vmul.f32 %v277_v21, %v53_v18  ;;  %v82_v40 = vmul.f32 %v285_v22, %v53_v18 }
  0x83   :  { %v72_v41 = vmul.f32 %v265_v23, %v63_v17  ;;  %v76_v42 = vmul.f32 %v273_v24, %v63_v17  ;;  %v80_v43 = vmul.f32 %v281_v25, %v63_v17  ;;  %v84_v44 = vmul.f32 %v289_v26, %v63_v17 }
  0x85   :  { %v68_v31 = vpop.permute.xlu1 %67  ;;  %v58_v32 = vpop.permute.xlu0 %57 }
  0x86   :  { %v71_v45 = vmul.f32 %v262_v27, %v58_v32  ;;  %v75_v46 = vmul.f32 %v270_v28, %v58_v32  ;;  %v79_v47 = vmul.f32 %v278_v29, %v58_v32  ;;  %v83_v48 = vmul.f32 %v286_v30, %v58_v32 }
  0x87   :  { %v73_v51 = vmul.f32 %v266_v33, %v68_v31  ;;  %v77_v52 = vmul.f32 %v274_v34, %v68_v31  ;;  %v81_v53 = vmul.f32 %v282_v35, %v68_v31  ;;  %v85_v54 = vmul.f32 %v290_v36, %v68_v31 }
  0x89   :  { %v98_v49 = vpop.permute.xlu1 %97  ;;  %v93_v50 = vpop.permute.xlu0 %92 }
  0x8a   :  { %v111_v55 = vadd.f32 %v98_v49, %v71_v45  ;;  %v115_v56 = vadd.f32 %v98_v49, %v75_v46  ;;  %v119_v57 = vadd.f32 %v98_v49, %v79_v47  ;;  %v123_v58 = vadd.f32 %v98_v49, %v83_v48 }
  0x8b   :  { %v110_v59 = vadd.f32 %v93_v50, %v70_v37  ;;  %v114_v60 = vadd.f32 %v93_v50, %v74_v38  ;;  %v118_v61 = vadd.f32 %v93_v50, %v78_v39  ;;  %v122_v62 = vadd.f32 %v93_v50, %v82_v40 }
  0x8c   :  { %v127_v63 = vmax.f32 %v111_v55, 0.0  ;;  %v131_v0 = vmax.f32 %v115_v56, 0.0  ;;  %v135_v1 = vmax.f32 %v119_v57, 0.0  ;;  %v139_v2 = vmax.f32 %v123_v58, 0.0 }
  0x8d   :  { %v126_v3 = vmax.f32 %v110_v59, 0.0  ;;  %v130_v4 = vmax.f32 %v114_v60, 0.0  ;;  %v134_v5 = vmax.f32 %v118_v61, 0.0  ;;  %v138_v6 = vmax.f32 %v122_v62, 0.0  ;;  %v108_v7 = vpop.permute.xlu1 %107  ;;  %v103_v12 = vpop.permute.xlu0 %102 }
  0x8e   :  { %v244_v8 = vpack.c.bf16 %v127_v63, %v127_v63  ;;  %v248_v9 = vpack.c.bf16 %v131_v0, %v131_v0  ;;  %v252_v10 = vpack.c.bf16 %v135_v1, %v135_v1  ;;  %v256_v11 = vpack.c.bf16 %v139_v2, %v139_v2 }
  0x8f   :  { %v243_v13 = vpack.c.bf16 %v126_v3, %v126_v3  ;;  %v247_v14 = vpack.c.bf16 %v130_v4, %v130_v4  ;;  %v251_v15 = vpack.c.bf16 %v134_v5, %v134_v5  ;;  %v255_v16 = vpack.c.bf16 %v138_v6, %v138_v6 }
  0x90   :  { %208 = vst.msk [vmem:[%s437_s3 + $0x4] sm:$0xf] %vm206_vm0, %v244_v8  ;;  %212 = vst.msk [vmem:[%s437_s3 + $0x14] sm:$0xf] %vm206_vm0, %v248_v9  ;;  %v113_v17 = vadd.f32 %v108_v7, %v73_v51  ;;  %v117_v18 = vadd.f32 %v108_v7, %v77_v52  ;;  %v121_v19 = vadd.f32 %v108_v7, %v81_v53 }
  0x91   :  { %216 = vst.msk [vmem:[%s437_s3 + $0x24] sm:$0xf] %vm206_vm0, %v252_v10  ;;  %220 = vst.msk [vmem:[%s437_s3 + $0x34] sm:$0xf] %vm206_vm0, %v256_v11  ;;  %v125_v20 = vadd.f32 %v108_v7, %v85_v54  ;;  %v112_v21 = vadd.f32 %v103_v12, %v72_v41  ;;  %v116_v22 = vadd.f32 %v103_v12, %v76_v42 }
  0x92   :  { %207 = vst.msk [vmem:[%s437_s3] sm:$0xf] %vm206_vm0, %v243_v13  ;;  %211 = vst.msk [vmem:[%s437_s3 + $0x10] sm:$0xf] %vm206_vm0, %v247_v14  ;;  %v120_v23 = vadd.f32 %v103_v12, %v80_v43  ;;  %v124_v24 = vadd.f32 %v103_v12, %v84_v44  ;;  %v129_v25 = vmax.f32 %v113_v17, 0.0  ;;  %v133_v26 = vmax.f32 %v117_v18, 0.0 }
  0x93   :  { %215 = vst.msk [vmem:[%s437_s3 + $0x20] sm:$0xf] %vm206_vm0, %v251_v15  ;;  %219 = vst.msk [vmem:[%s437_s3 + $0x30] sm:$0xf] %vm206_vm0, %v255_v16  ;;  %v137_v27 = vmax.f32 %v121_v19, 0.0  ;;  %v141_v28 = vmax.f32 %v125_v20, 0.0 }
  0x94   :  { %v128_v29 = vmax.f32 %v112_v21, 0.0  ;;  %v132_v30 = vmax.f32 %v116_v22, 0.0  ;;  %v136_v31 = vmax.f32 %v120_v23, 0.0  ;;  %v140_v32 = vmax.f32 %v124_v24, 0.0 }
  0x95   :  { %v246_v33 = vpack.c.bf16 %v129_v25, %v129_v25  ;;  %v250_v34 = vpack.c.bf16 %v133_v26, %v133_v26  ;;  %v254_v35 = vpack.c.bf16 %v137_v27, %v137_v27  ;;  %v258_v36 = vpack.c.bf16 %v141_v28, %v141_v28 }
  0x96   :  { %v245_v37 = vpack.c.bf16 %v128_v29, %v128_v29  ;;  %v249_v38 = vpack.c.bf16 %v132_v30, %v132_v30  ;;  %v253_v39 = vpack.c.bf16 %v136_v31, %v136_v31  ;;  %v257_v40 = vpack.c.bf16 %v140_v32, %v140_v32 }
  0x97   :  { %210 = vst.msk [vmem:[%s437_s3 + $0xc] sm:$0xf] %vm206_vm0, %v246_v33  ;;  %214 = vst.msk [vmem:[%s437_s3 + $0x1c] sm:$0xf] %vm206_vm0, %v250_v34 }
  0x98   :  { %218 = vst.msk [vmem:[%s437_s3 + $0x2c] sm:$0xf] %vm206_vm0, %v254_v35  ;;  %222 = vst.msk [vmem:[%s437_s3 + $0x3c] sm:$0xf] %vm206_vm0, %v258_v36 }
  0x99   :  { %209 = vst.msk [vmem:[%s437_s3 + $0x8] sm:$0xf] %vm206_vm0, %v245_v37  ;;  %213 = vst.msk [vmem:[%s437_s3 + $0x18] sm:$0xf] %vm206_vm0, %v249_v38 }
  0x9a   :  { %217 = vst.msk [vmem:[%s437_s3 + $0x28] sm:$0xf] %vm206_vm0, %v253_v39  ;;  %221 = vst.msk [vmem:[%s437_s3 + $0x38] sm:$0xf] %vm206_vm0, %v257_v40 }

// kernel: generator_forward.14
= control target key start
LH: loop header
LB: loop body
LE: loop exit
PB: predicated region body
PF: predicated region fallthrough
CT: control target
= control target key end

     0   :  { %s990_s0 = inlined_call_operand.vmem [shape: s32[4,4], index: 0, kind: input, shape index: {}]   ;;  %s991_s1 = inlined_call_operand.vmem [shape: bf16[4,4,16,32], index: 1, kind: input, shape index: {}]   ;;  %s992_s2 = inlined_call_operand.vmem [shape: bf16[9,32,128], index: 2, kind: input, shape index: {}]   ;;  %s993_s3 = inlined_call_operand.vmem [shape: bf16[4,16,128], index: 3, kind: output, shape index: {0}]   ;;  %s994_s4 = inlined_call_operand.vmem [shape: f32[4,16,1], index: 4, kind: output, shape index: {1}]   ;;  %s995_s5 = inlined_call_operand.vmem [shape: f32[4,16,1], index: 5, kind: output, shape index: {2}]  }
   0x1   :  { %s11_s20 = sshll.u32 %s990_s0, 4  ;;  %s12_s20 = int_to_ptr.vmem [resolvable:$true] %s11_s20 }
   0x2   :  { %s810_s21 = scalar_lea.vmem %s12_s20, 64  ;;  %p815_p1 = scmp.lt.s32.totalorder %s12_s20, %s12_s20 }
   0x3   :  { %p811_p0 = scmp.ne.s32.totalorder %s12_s20, %s810_s21  ;;  %p816_p2 = scmp.lt.s32.totalorder %s810_s21, %s810_s21 }
   0x5   :  { %p817_p3 = por %p816_p2, %p815_p1 }
   0x7   :  { %p818_p4 = pnand %p817_p3, %p811_p0 }
   0x9   :  { %821 = shalt.err (!%p818_p4)  }
   0xa   :  { %s864_s22 = smov [#allocation4]  }
   0xb   :  { %14 = dma.vmem_to_smem %s12_s20, 64, %s864_s22, [#allocation3] }
   0xc   :  { %842 = dma.done.wait [#allocation3], 64 }
   0xd   :  { %843 = vsyncadd [#allocation3], 4294967232 }
   0xe   :  { %16 = sfence }
   0xf   :  { %s900_s23 = smov 0   ;;  %s902_s24 = smov 0  }
  0x10   :  { %s904_s25 = smov 0   ;;  %s906_s0 = smov 0  }
  0x11   :  { %s908_s26 = smov 0  }
  0x12 LB: > { %s34_s27 = sadd.s32 1, %s854_s25  ;;  %s41_s28 = sadd.s32 1, %s858_s0  ;;  %s862_s26 = sphi %s908_s26, %s22_s26   ;;  %s858_s0 = sphi %s906_s0, %s1003_s0   ;;  %s854_s25 = sphi %s904_s25, %s1002_s25   ;;  %s850_s24 = sphi %s902_s24, %s1001_s24   ;;  %s846_s23 = sphi %s900_s23, %s1000_s23  }
  0x13   : > { %p35_p5 = scmp.ge.s32.totalorder %s34_s27, 4  ;;  %p695_p6 = scmp.ge.s32.totalorder %s862_s26, 1 }
  0x14   : > { %p248_p7 = scmp.lt.s32.totalorder %s862_s26, 17 }
  0x15   : > { %s1005_s27 = smov (%p35_p5, %s34_s27), 0  ;;  %s1007_s28 = smov (!%p35_p5, %s41_s28), %s858_s0 }
  0x16   : > { %996 = sst [smem:[#allocation6_spill]] %s1005_s27  ;;  %p249_p8 = pnand %p695_p6, %p248_p7 }
  0x17   : > { %p43_p9 = scmp.ge.s32.totalorder %s1007_s28, 4  ;;  %p307_p10 = scmp.lt.s32.totalorder (!%p249_p8), %s850_s24, 3 }
  0x18   : > { %252 = sbr.rel (%p249_p8) target bundleno = 428 (0x1ac), region = 28  ;;  %p309_p11 = scmp.lt.s32.totalorder (!%p249_p8), %s846_s23, 3 }
  0x19   : > { %s1009_s28 = smov (%p43_p9, %s1007_s28), 0  ;;  %s316_s29 = sshra.s32 (!%p249_p8), %s846_s23, 7 }
  0x1a   : > { %997 = sst [smem:[#allocation7_spill]] %s1009_s28  ;;  %s321_s30 = sand.u32 (!%p249_p8), 127, %s846_s23 }
  0x1b   : > { %s318_s9 = sadd.s32 (!%p249_p8), %s850_s24, %s316_s29  ;;  %p358_p12 = scmp.eq.s32.totalorder (!%p249_p8), %s846_s23, 0 }
  0x1c   : > { %s699_s11 = sshll.u32 (!%p249_p8), %s318_s9, 7  ;;  %p708_p0 = scmp.ne.s32.totalorder (!%p249_p8), %s846_s23, 0 }
  0x1d   : > { %s322_s13 = sadd.s32 (!%p249_p8), %s699_s11, %s321_s30 }
  0x1e   : > { %s323_s15 = sld [smem:[#allocation4 + %s322_s13]] (!%p249_p8) }
  0x1f   : > { %s308_s6 = scalar_select %p307_p10, %s850_s24, 3 }
  0x20   : > { %s310_s7 = scalar_select %p309_p11, %s846_s23, 3 }
  0x21   : > { %s697_s8 = sshll.u32 %s308_s6, 3  ;;  %s719_s22 = sshll.u32 %s308_s6, 4  ;;  %v865_v0 = vmov (!%p708_p0), 0.0  }
  0x22   : > { %s696_s10 = sshll.u32 %s310_s7, 1  ;;  %s942_s21 = scalar_lea.vmem %s993_s3, %s697_s8  ;;  %362 = vst [vmem:[#allocation2] sm:$0xff] (!%p708_p0), %v865_v0  ;;  %363 = vst [vmem:[#allocation2 + $0x8] sm:$0xff] (!%p708_p0), %v865_v0 }
  0x23   : > { %s313_s12 = sadd.s32 %s697_s8, %s696_s10  ;;  %s948_s24 = scalar_lea.vmem %s994_s4, %s719_s22 }
  0x24   : > { %s698_s14 = sshll.u32 %s313_s12, 2  ;;  %s953_s7 = scalar_lea.vmem %s995_s5, %s719_s22 }
  0x25   : > { %s315_s18 = scalar_lea.vmem %s991_s1, %s698_s14  ;;  %p324_p13 = scmp.lt.s32.totalorder %s323_s15, 8 }
  0x26   : > { %361 = sbr.rel (%p708_p0) target bundleno = 45 (0x2d), region = 32 }
  0x27   : > { %s1011_s15 = smov (!%p324_p13, %s323_s15), 8 }
  0x28   : > { %s717_s9 = sshll.u32 %s1011_s15, 4 }
  0x29   : > { %s331_s8 = scalar_lea.vmem %s992_s2, %s717_s9 }
  0x2d PF: > { %v729_v1 = vld [vmem:[%s331_s8] sm:$0xff]   ;;  %v741_v2 = vld [vmem:[%s331_s8 + $0x8] sm:$0xff]   ;;  %vm378_vm0 = vcmask 261120   ;;  %vm469_vm1 = vcmask (%p358_p12), 7168   ;;  %v866_v12 = vmov (%p358_p12), 0.0  }
  0x2e   : > { %v725_v3 = vld [vmem:[%s315_s18] sm:$0xff]   ;;  %760 = vmatprep.subr.bf16.mxu0 %v729_v1  ;;  %v365_v6 = vld [vmem:[#allocation2 + $0x8] sm:$0xff]  ;;  %470 = vst.msk [vmem:[%s948_s24] sm:$0xff] (%p358_p12), %vm469_vm1, %v866_v12  ;;  %471 = vst.msk [vmem:[%s948_s24 + $0x8] sm:$0xff] (%p358_p12), %vm469_vm1, %v866_v12 }
  0x2f   : > { %v726_v4 = vunpack.c.l.bf16 %v725_v3  ;;  %762 = vmatpush3.bf16.msra.mxu0 %v729_v1  ;;  %v727_v5 = vunpack.c.h.bf16 %v725_v3  ;;  %v364_v7 = vld [vmem:[#allocation2] sm:$0xff]  ;;  %472 = vst.msk [vmem:[%s953_s7] sm:$0xff] (%p358_p12), %vm469_vm1, %v866_v12  ;;  %473 = vst.msk [vmem:[%s953_s7 + $0x8] sm:$0xff] (%p358_p12), %vm469_vm1, %v866_v12 }
  0x30   : > { %764 = vmatprep.subr.bf16.mxu0 %v741_v2 }
  0x31   : > { %756 = vmatprep.mubr.msk.f32.mxu0 %vm378_vm0, %v726_v4 }
  0x33   : > { %766 = vmatpush3.bf16.msra.mxu0 %v741_v2 }
  0x36   : > { %757 = vmatmul.mubr.msk.f32.vlgmr.msra.gmra.mrb[0].mxu0 %vm378_vm0, %v727_v5 }
 0x107   : > { %468 = sbr.rel (!%p358_p12) target bundleno = 270 (0x10e), region = 36 }
 0x109   : > { %v758_v8 = vpop.f32.mrb[0].mxu0 }
 0x10a   : > { %v461_v9 = vadd.f32 %v758_v8, %v365_v6  ;;  %v451_v10 = vpop.f32.mrb[1].mxu0 }
 0x10b   : > { %v460_v11 = vadd.f32 %v451_v10, %v364_v7 }
 0x10c   : > { %463 = vst [vmem:[#allocation2 + $0x8] sm:$0xff] %v461_v9 }
 0x10d   : > { %462 = vst [vmem:[#allocation2] sm:$0xff] %v460_v11 }
 0x10e PF: > { %p712_p1 = scmp.ne.s32.totalorder %s846_s23, 3 }
 0x10f   : > { %v490_v18 = vld [vmem:[%s948_s24] sm:$0xff] (!%p712_p1)  ;;  %vm498_vm2 = vcmask (!%p712_p1), 7168   ;;  %v491_v23 = vld [vmem:[%s948_s24 + $0x8] sm:$0xff] (!%p712_p1) }
 0x110   : > { %477 = sbr.rel (%p712_p1) target bundleno = 428 (0x1ac), region = 40  ;;  %v501_v20 = vld [vmem:[%s953_s7] sm:$0xff] (!%p712_p1)  ;;  %v502_v26 = vld [vmem:[%s953_s7 + $0x8] sm:$0xff] (!%p712_p1) }
 0x113   : > { %v479_v14 = vld [vmem:[#allocation2 + $0x8] sm:$0xff] (!%p712_p1) }
 0x114   : > { %v478_v13 = vld [vmem:[#allocation2] sm:$0xff] (!%p712_p1)  ;;  %v504_v17 = vmul.f32 (!%p712_p1), %v479_v14, %v479_v14 }
 0x115   : > { %492 = vadd.xlane.f32.xlu0 (!%p712_p1), %v478_v13  ;;  %v503_v15 = vmul.f32 (!%p712_p1), %v478_v13, %v478_v13  ;;  %v739_v16 = vpack.c.bf16 (!%p712_p1), %v479_v14, %v478_v13 }
 0x117   : > { %505 = vadd.xlane.f32.xlu1 %v503_v15  ;;  %740 = vst [vmem:[%s942_s21] sm:$0xff] %v739_v16  }
 0x119   : > { %494 = vadd.xlane.f32.xlu0 %v479_v14 }
 0x11b   : > { %507 = vadd.xlane.f32.xlu1 %v504_v17 }
 0x1a2   : > { %v493_v19 = vpop.xlane.xlu0 %492 }
 0x1a3   : > { %v496_v21 = vadd.f32 %v493_v19, %v490_v18 }
 0x1a4   : > { %v506_v22 = vpop.xlane.xlu1 %505 }
 0x1a5   : > { %499 = vst.msk [vmem:[%s948_s24] sm:$0xff] %vm498_vm2, %v496_v21  ;;  %v509_v24 = vadd.f32 %v506_v22, %v501_v20 }
 0x1a6   : > { %v495_v25 = vpop.xlane.xlu0 %494 }
 0x1a7   : > { %511 = vst.msk [vmem:[%s953_s7] sm:$0xff] %vm498_vm2, %v509_v24  ;;  %v497_v27 = vadd.f32 %v495_v25, %v491_v23 }
 0x1a8   : > { %v508_v28 = vpop.xlane.xlu1 %507 }
 0x1a9   : > { %500 = vst.msk [vmem:[%s948_s24 + $0x8] sm:$0xff] %vm498_vm2, %v497_v27  ;;  %v510_v29 = vadd.f32 %v508_v28, %v502_v26 }
 0x1ab   : > { %512 = vst.msk [vmem:[%s953_s7 + $0x8] sm:$0xff] %vm498_vm2, %v510_v29 }
 0x1ac PF: > { %s22_s26 = sadd.s32 1, %s862_s26   ;;  %s998_s27 = sld [smem:[#allocation6_spill]] }
 0x1ad   : > { %p19_p2 = scmp.ge.s32.totalorder %s22_s26, 18   ;;  %s999_s28 = sld [smem:[#allocation7_spill]] }
 0x1ae   : > { %s1000_s23 = smov %s854_s25  ;;  %s1001_s24 = smov %s858_s0 }
 0x1af   :  { %21 = sbr.rel (!%p19_p2) target bundleno = 18 (0x12), region = 97 }
 0x1b2   : > { %s1002_s25 = smov %s998_s27 }
 0x1b3   : > { %s1003_s0 = smov %s999_s28 }

// kernel: generator_forward.15
= control target key start
LH: loop header
LB: loop body
LE: loop exit
PB: predicated region body
PF: predicated region fallthrough
CT: control target
= control target key end

     0   :  { %v183_v0 = vmov 0   ;;  %s240_s2 = inlined_call_operand.vmem [shape: f32[16,1], index: 2, kind: input, shape index: {}]   ;;  %s241_s1 = inlined_call_operand.vmem [shape: f32[16,1], index: 1, kind: input, shape index: {}]   ;;  %s242_s0 = inlined_call_operand.vmem [shape: bf16[4,16,128], index: 0, kind: input, shape index: {}]   ;;  %s243_s3 = inlined_call_operand.vmem [shape: bf16[4,16,128], index: 3, kind: output, shape index: {}]  }
   0x1   :  { %182 = vset.pattern.permute.xlu1 %v183_v0  ;;  %181 = vset.pattern.permute.xlu0 %v183_v0  ;;  %v50_v1 = vld [vmem:[%s240_s2] sm:$0xff]  ;;  %v51_v3 = vld [vmem:[%s240_s2 + $0x8] sm:$0xff]  ;;  %v175_v7 = vld [vmem:[%s242_s0 + $0x10] sm:$0xff]  }
   0x2   :  { %v30_v2 = vld [vmem:[%s241_s1] sm:$0xff]  ;;  %54 = vperm.xlu1 %182, %v50_v1   ;;  %v31_v4 = vld [vmem:[%s241_s1 + $0x8] sm:$0xff]  ;;  %v176_v8 = vld [vmem:[%s242_s0 + $0x18] sm:$0xff]   ;;  %v148_v11 = vunpack.c.l.bf16 %v175_v7  ;;  %v149_v21 = vunpack.c.h.bf16 %v175_v7 }
   0x3   :  { %34 = vperm.xlu0 %181, %v30_v2   ;;  %v139_v5 = vld [vmem:[%s242_s0] sm:$0xff]   ;;  %v174_v6 = vld [vmem:[%s242_s0 + $0x8] sm:$0xff]   ;;  %v152_v12 = vunpack.c.l.bf16 %v176_v8  ;;  %v153_v22 = vunpack.c.h.bf16 %v176_v8 }
   0x4   :  { %v140_v9 = vunpack.c.l.bf16 %v139_v5  ;;  %v144_v10 = vunpack.c.l.bf16 %v174_v6  ;;  %v141_v19 = vunpack.c.h.bf16 %v139_v5  ;;  %v145_v20 = vunpack.c.h.bf16 %v174_v6 }
   0x6   :  { %59 = vperm.xlu1 %182, %v51_v3  }
   0x7   :  { %39 = vperm.xlu0 %181, %v31_v4  }
  0x81   :  { %v55_v14 = vpop.permute.xlu1 %54 }
  0x82   :  { %v35_v13 = vpop.permute.xlu0 %34 }
  0x83   :  { %v42_v15 = vmul.f32 %v140_v9, %v35_v13  ;;  %v44_v16 = vmul.f32 %v144_v10, %v35_v13  ;;  %v46_v17 = vmul.f32 %v148_v11, %v35_v13  ;;  %v48_v18 = vmul.f32 %v152_v12, %v35_v13 }
  0x85   :  { %v62_v24 = vadd.f32 %v55_v14, %v42_v15  ;;  %v64_v25 = vadd.f32 %v55_v14, %v44_v16  ;;  %v66_v26 = vadd.f32 %v55_v14, %v46_v17  ;;  %v68_v27 = vadd.f32 %v55_v14, %v48_v18  ;;  %v60_v32 = vpop.permute.xlu1 %59 }
  0x86   :  { %v40_v23 = vpop.permute.xlu0 %39 }
  0x87   :  { %v43_v28 = vmul.f32 %v141_v19, %v40_v23  ;;  %v45_v29 = vmul.f32 %v145_v20, %v40_v23  ;;  %v47_v30 = vmul.f32 %v149_v21, %v40_v23  ;;  %v49_v31 = vmul.f32 %v153_v22, %v40_v23 }
  0x88   :  { %v70_v37 = vmax.f32 %v62_v24, 0.0  ;;  %v72_v38 = vmax.f32 %v64_v25, 0.0  ;;  %v74_v39 = vmax.f32 %v66_v26, 0.0  ;;  %v76_v40 = vmax.f32 %v68_v27, 0.0 }
  0x89   :  { %v63_v33 = vadd.f32 %v60_v32, %v43_v28  ;;  %v65_v34 = vadd.f32 %v60_v32, %v45_v29  ;;  %v67_v35 = vadd.f32 %v60_v32, %v47_v30  ;;  %v69_v36 = vadd.f32 %v60_v32, %v49_v31 }
  0x8b   :  { %v71_v41 = vmax.f32 %v63_v33, 0.0  ;;  %v73_v42 = vmax.f32 %v65_v34, 0.0  ;;  %v75_v43 = vmax.f32 %v67_v35, 0.0  ;;  %v77_v44 = vmax.f32 %v69_v36, 0.0 }
  0x8d   :  { %v157_v45 = vpack.c.bf16 %v71_v41, %v70_v37  ;;  %v162_v46 = vpack.c.bf16 %v73_v42, %v72_v38  ;;  %v167_v47 = vpack.c.bf16 %v75_v43, %v74_v39  ;;  %v172_v48 = vpack.c.bf16 %v77_v44, %v76_v40 }
  0x8f   :  { %158 = vst [vmem:[%s243_s3] sm:$0xff] %v157_v45   ;;  %177 = vst [vmem:[%s243_s3 + $0x8] sm:$0xff] %v162_v46  }
  0x90   :  { %178 = vst [vmem:[%s243_s3 + $0x10] sm:$0xff] %v167_v47   ;;  %179 = vst [vmem:[%s243_s3 + $0x18] sm:$0xff] %v172_v48  }

// kernel: generator_forward.17
= control target key start
LH: loop header
LB: loop body
LE: loop exit
PB: predicated region body
PF: predicated region fallthrough
CT: control target
= control target key end

     0   :  { %v192_v0 = vmov 0   ;;  %s267_s1 = inlined_call_operand.vmem [shape: f32[8,1], index: 1, kind: input, shape index: {}]   ;;  %s268_s2 = inlined_call_operand.vmem [shape: f32[8,1], index: 2, kind: input, shape index: {}]   ;;  %s269_s0 = inlined_call_operand.vmem [shape: bf16[4,8,512], index: 0, kind: input, shape index: {}]   ;;  %s270_s3 = inlined_call_operand.vmem [shape: bf16[4,8,512], index: 3, kind: output, shape index: {}]  }
   0x1   :  { %191 = vset.pattern.permute.xlu0 %v192_v0  ;;  %v38_v1 = vld [vmem:[%s267_s1] sm:$0xff]  ;;  %v15_v4 = vld [vmem:[%s269_s0 + $0x8] sm:$0xff]  ;;  %v16_v5 = vld [vmem:[%s269_s0 + $0x10] sm:$0xff] }
   0x2   :  { %41 = vperm.xlu0 %191, %v38_v1   ;;  %v60_v2 = vld [vmem:[%s268_s2] sm:$0xff]  ;;  %v17_v6 = vld [vmem:[%s269_s0 + $0x18] sm:$0xff]  ;;  %v19_v8 = vld [vmem:[%s269_s0 + $0x28] sm:$0xff]  ;;  %v24_v13 = vunpack.c.l.bf16 %v15_v4  ;;  %v25_v14 = vunpack.c.h.bf16 %v15_v4  ;;  %v26_v15 = vunpack.c.l.bf16 %v16_v5  ;;  %v27_v16 = vunpack.c.h.bf16 %v16_v5 }
   0x3   :  { %v14_v3 = vld [vmem:[%s269_s0] sm:$0xff]  ;;  %v20_v9 = vld [vmem:[%s269_s0 + $0x30] sm:$0xff]  ;;  %v21_v10 = vld [vmem:[%s269_s0 + $0x38] sm:$0xff]  ;;  %v28_v17 = vunpack.c.l.bf16 %v17_v6  ;;  %v29_v18 = vunpack.c.h.bf16 %v17_v6  ;;  %v32_v21 = vunpack.c.l.bf16 %v19_v8  ;;  %v33_v22 = vunpack.c.h.bf16 %v19_v8 }
   0x4   :  { %v18_v7 = vld [vmem:[%s269_s0 + $0x20] sm:$0xff]  ;;  %v22_v11 = vunpack.c.l.bf16 %v14_v3  ;;  %v23_v12 = vunpack.c.h.bf16 %v14_v3  ;;  %v34_v24 = vunpack.c.l.bf16 %v20_v9  ;;  %v35_v25 = vunpack.c.h.bf16 %v20_v9 }
   0x5   :  { %v30_v19 = vunpack.c.l.bf16 %v18_v7  ;;  %v31_v20 = vunpack.c.h.bf16 %v18_v7  ;;  %v36_v26 = vunpack.c.l.bf16 %v21_v10  ;;  %v37_v27 = vunpack.c.h.bf16 %v21_v10 }
   0x6   :  { %63 = vperm.xlu0 %191, %v60_v2  }
  0x81   :  { %v42_v23 = vpop.permute.xlu0 %41 }
  0x82   :  { %v44_v28 = vmul.f32 %v42_v23, %v22_v11  ;;  %v45_v29 = vmul.f32 %v42_v23, %v23_v12  ;;  %v46_v30 = vmul.f32 %v42_v23, %v24_v13  ;;  %v47_v31 = vmul.f32 %v42_v23, %v25_v14 }
  0x83   :  { %v48_v32 = vmul.f32 %v42_v23, %v26_v15  ;;  %v49_v33 = vmul.f32 %v42_v23, %v27_v16  ;;  %v50_v34 = vmul.f32 %v42_v23, %v28_v17  ;;  %v51_v35 = vmul.f32 %v42_v23, %v29_v18 }
  0x84   :  { %v52_v36 = vmul.f32 %v42_v23, %v30_v19  ;;  %v53_v37 = vmul.f32 %v42_v23, %v31_v20  ;;  %v54_v38 = vmul.f32 %v42_v23, %v32_v21  ;;  %v55_v39 = vmul.f32 %v42_v23, %v33_v22 }
  0x85   :  { %v64_v40 = vpop.permute.xlu0 %63  ;;  %v56_v41 = vmul.f32 %v42_v23, %v34_v24  ;;  %v57_v42 = vmul.f32 %v42_v23, %v35_v25  ;;  %v58_v43 = vmul.f32 %v42_v23, %v36_v26  ;;  %v59_v44 = vmul.f32 %v42_v23, %v37_v27 }
  0x86   :  { %v66_v45 = vadd.f32 %v64_v40, %v44_v28  ;;  %v67_v46 = vadd.f32 %v64_v40, %v45_v29  ;;  %v68_v47 = vadd.f32 %v64_v40, %v46_v30  ;;  %v69_v48 = vadd.f32 %v64_v40, %v47_v31 }
  0x87   :  { %v70_v49 = vadd.f32 %v64_v40, %v48_v32  ;;  %v71_v50 = vadd.f32 %v64_v40, %v49_v33  ;;  %v72_v51 = vadd.f32 %v64_v40, %v50_v34  ;;  %v73_v52 = vadd.f32 %v64_v40, %v51_v35 }
  0x88   :  { %v74_v53 = vadd.f32 %v64_v40, %v52_v36  ;;  %v75_v54 = vadd.f32 %v64_v40, %v53_v37  ;;  %v76_v55 = vadd.f32 %v64_v40, %v54_v38  ;;  %v77_v56 = vadd.f32 %v64_v40, %v55_v39 }
  0x89   :  { %v78_v57 = vadd.f32 %v64_v40, %v56_v41  ;;  %v79_v58 = vadd.f32 %v64_v40, %v57_v42  ;;  %v80_v59 = vadd.f32 %v64_v40, %v58_v43  ;;  %v81_v60 = vadd.f32 %v64_v40, %v59_v44 }
  0x8a   :  { %v82_v61 = vmax.f32 %v66_v45, 0.0  ;;  %v83_v62 = vmax.f32 %v67_v46, 0.0  ;;  %v84_v63 = vmax.f32 %v68_v47, 0.0  ;;  %v85_v0 = vmax.f32 %v69_v48, 0.0 }
  0x8b   :  { %v86_v1 = vmax.f32 %v70_v49, 0.0  ;;  %v87_v2 = vmax.f32 %v71_v50, 0.0  ;;  %v88_v3 = vmax.f32 %v72_v51, 0.0  ;;  %v89_v4 = vmax.f32 %v73_v52, 0.0 }
  0x8c   :  { %v90_v5 = vmax.f32 %v74_v53, 0.0  ;;  %v91_v6 = vmax.f32 %v75_v54, 0.0  ;;  %v92_v7 = vmax.f32 %v76_v55, 0.0  ;;  %v93_v8 = vmax.f32 %v77_v56, 0.0 }
  0x8d   :  { %v94_v9 = vmax.f32 %v78_v57, 0.0  ;;  %v95_v10 = vmax.f32 %v79_v58, 0.0  ;;  %v96_v11 = vmax.f32 %v80_v59, 0.0  ;;  %v97_v12 = vmax.f32 %v81_v60, 0.0 }
  0x8e   :  { %v182_v13 = vpack.c.bf16 %v83_v62, %v82_v61  ;;  %v183_v14 = vpack.c.bf16 %v85_v0, %v84_v63  ;;  %v184_v15 = vpack.c.bf16 %v87_v2, %v86_v1  ;;  %v185_v16 = vpack.c.bf16 %v89_v4, %v88_v3 }
  0x8f   :  { %v186_v17 = vpack.c.bf16 %v91_v6, %v90_v5  ;;  %v187_v18 = vpack.c.bf16 %v93_v8, %v92_v7  ;;  %v188_v19 = vpack.c.bf16 %v95_v10, %v94_v9  ;;  %v189_v20 = vpack.c.bf16 %v97_v12, %v96_v11 }
  0x90   :  { %162 = vst [vmem:[%s270_s3] sm:$0xff] %v182_v13  ;;  %163 = vst [vmem:[%s270_s3 + $0x8] sm:$0xff] %v183_v14 }
  0x91   :  { %164 = vst [vmem:[%s270_s3 + $0x10] sm:$0xff] %v184_v15  ;;  %165 = vst [vmem:[%s270_s3 + $0x18] sm:$0xff] %v185_v16 }
  0x92   :  { %166 = vst [vmem:[%s270_s3 + $0x20] sm:$0xff] %v186_v17  ;;  %167 = vst [vmem:[%s270_s3 + $0x28] sm:$0xff] %v187_v18 }
  0x93   :  { %168 = vst [vmem:[%s270_s3 + $0x30] sm:$0xff] %v188_v19  ;;  %169 = vst [vmem:[%s270_s3 + $0x38] sm:$0xff] %v189_v20 }

// kernel: generator_forward.16
= control target key start
LH: loop header
LB: loop body
LE: loop exit
PB: predicated region body
PF: predicated region fallthrough
CT: control target
= control target key end

     0   :  { %s1035_s0 = inlined_call_operand.vmem [shape: s32[4,4], index: 0, kind: input, shape index: {}]   ;;  %s1036_s1 = inlined_call_operand.vmem [shape: bf16[4,4,8,16], index: 1, kind: input, shape index: {}]   ;;  %s1037_s2 = inlined_call_operand.vmem [shape: bf16[9,16,512], index: 2, kind: input, shape index: {}]   ;;  %s1038_s3 = inlined_call_operand.vmem [shape: bf16[4,8,512], index: 3, kind: output, shape index: {0}]   ;;  %s1039_s4 = inlined_call_operand.vmem [shape: f32[4,8,1], index: 4, kind: output, shape index: {1}]   ;;  %s1040_s5 = inlined_call_operand.vmem [shape: f32[4,8,1], index: 5, kind: output, shape index: {2}]  }
   0x1   :  { %s11_s20 = sshll.u32 %s1035_s0, 4  ;;  %s12_s20 = int_to_ptr.vmem [resolvable:$true] %s11_s20 }
   0x2   :  { %s859_s21 = scalar_lea.vmem %s12_s20, 64  ;;  %p864_p1 = scmp.lt.s32.totalorder %s12_s20, %s12_s20 }
   0x3   :  { %p860_p0 = scmp.ne.s32.totalorder %s12_s20, %s859_s21  ;;  %p865_p2 = scmp.lt.s32.totalorder %s859_s21, %s859_s21 }
   0x5   :  { %p866_p3 = por %p865_p2, %p864_p1 }
   0x7   :  { %p867_p4 = pnand %p866_p3, %p860_p0 }
   0x9   :  { %870 = shalt.err (!%p867_p4)  }
   0xa   :  { %s913_s22 = smov [#allocation4]  }
   0xb   :  { %14 = dma.vmem_to_smem %s12_s20, 64, %s913_s22, [#allocation3] }
   0xc   :  { %891 = dma.done.wait [#allocation3], 64 }
   0xd   :  { %892 = vsyncadd [#allocation3], 4294967232 }
   0xe   :  { %16 = sfence }
   0xf   :  { %s950_s23 = smov 0   ;;  %s952_s24 = smov 0  }
  0x10   :  { %s954_s25 = smov 0   ;;  %s956_s0 = smov 0  }
  0x11   :  { %s958_s26 = smov 0  }
  0x12 LB: > { %s34_s27 = sadd.s32 1, %s903_s25  ;;  %s41_s28 = sadd.s32 1, %s907_s0  ;;  %s911_s26 = sphi %s958_s26, %s22_s26   ;;  %s907_s0 = sphi %s956_s0, %s1048_s0   ;;  %s903_s25 = sphi %s954_s25, %s1047_s25   ;;  %s899_s24 = sphi %s952_s24, %s1046_s24   ;;  %s895_s23 = sphi %s950_s23, %s1045_s23  }
  0x13   : > { %p35_p5 = scmp.ge.s32.totalorder %s34_s27, 4  ;;  %p773_p6 = scmp.ge.s32.totalorder %s911_s26, 1 }
  0x14   : > { %p249_p7 = scmp.lt.s32.totalorder %s911_s26, 17 }
  0x15   : > { %s1050_s27 = smov (%p35_p5, %s34_s27), 0  ;;  %s1052_s28 = smov (!%p35_p5, %s41_s28), %s907_s0 }
  0x16   : > { %1041 = sst [smem:[#allocation6_spill]] %s1050_s27  ;;  %p250_p8 = pnand %p773_p6, %p249_p7 }
  0x17   : > { %p43_p9 = scmp.ge.s32.totalorder %s1052_s28, 4  ;;  %p307_p10 = scmp.lt.s32.totalorder (!%p250_p8), %s899_s24, 3 }
  0x18   : > { %253 = sbr.rel (%p250_p8) target bundleno = 429 (0x1ad), region = 28  ;;  %p309_p11 = scmp.lt.s32.totalorder (!%p250_p8), %s895_s23, 3 }
  0x19   : > { %s1054_s28 = smov (%p43_p9, %s1052_s28), 0  ;;  %s315_s29 = sshra.s32 (!%p250_p8), %s895_s23, 7 }
  0x1a   : > { %1042 = sst [smem:[#allocation7_spill]] %s1054_s28  ;;  %s320_s30 = sand.u32 (!%p250_p8), 127, %s895_s23 }
  0x1b   : > { %s317_s9 = sadd.s32 (!%p250_p8), %s899_s24, %s315_s29  ;;  %p359_p12 = scmp.eq.s32.totalorder (!%p250_p8), %s895_s23, 0 }
  0x1c   : > { %s776_s11 = sshll.u32 (!%p250_p8), %s317_s9, 7  ;;  %p783_p0 = scmp.ne.s32.totalorder (!%p250_p8), %s895_s23, 0 }
  0x1d   : > { %s321_s13 = sadd.s32 (!%p250_p8), %s776_s11, %s320_s30 }
  0x1e   : > { %s322_s17 = sld [smem:[#allocation4 + %s321_s13]] (!%p250_p8) }
  0x1f   : > { %s308_s6 = scalar_select %p307_p10, %s899_s24, 3 }
  0x20   : > { %s310_s7 = scalar_select %p309_p11, %s895_s23, 3 }
  0x21   : > { %s774_s8 = sshll.u32 %s308_s6, 2  ;;  %s793_s18 = sshll.u32 %s308_s6, 4  ;;  %v914_v0 = vmov (!%p783_p0), 0.0  }
  0x22   : > { %s312_s10 = sadd.s32 %s774_s8, %s310_s7  ;;  %s781_s19 = sshll.u32 %s308_s6, 3  ;;  %363 = vst [vmem:[#allocation2] sm:$0xff] (!%p783_p0), %v914_v0  ;;  %364 = vst [vmem:[#allocation2 + $0x8] sm:$0xff] (!%p783_p0), %v914_v0 }
  0x23   : > { %s775_s12 = sshll.u32 %s312_s10, 2  ;;  %s992_s22 = scalar_lea.vmem %s1038_s3, %s793_s18  ;;  %365 = vst [vmem:[#allocation2 + $0x10] sm:$0xff] (!%p783_p0), %v914_v0  ;;  %366 = vst [vmem:[#allocation2 + $0x18] sm:$0xff] (!%p783_p0), %v914_v0 }
  0x24   : > { %s314_s16 = scalar_lea.vmem %s1036_s1, %s775_s12  ;;  %s997_s24 = scalar_lea.vmem %s1039_s4, %s781_s19 }
  0x25   : > { %s1002_s30 = scalar_lea.vmem %s1040_s5, %s781_s19  ;;  %p324_p13 = scmp.lt.s32.totalorder %s322_s17, 8 }
  0x26   : > { %362 = sbr.rel (%p783_p0) target bundleno = 45 (0x2d), region = 32 }
  0x27   : > { %s1056_s17 = smov (!%p324_p13, %s322_s17), 8 }
  0x28   : > { %s792_s8 = sshll.u32 %s1056_s17, 5 }
  0x29   : > { %s331_s10 = scalar_lea.vmem %s1037_s2, %s792_s8 }
  0x2d PF: > { %v853_v1 = vld [vmem:[%s331_s10 + $0x4] ss:$16 sps:$4 sm:$0xff]   ;;  %v855_v2 = vld [vmem:[%s331_s10 + $0xc] ss:$16 sps:$4 sm:$0xff]   ;;  %v915_v3 = vmov 0.0   ;;  %vm385_vm0 = vcmask 130048  }
  0x2e   : > { %453 = vmatprep.mubr.f32.mxu0 %v915_v3  ;;  %524 = vmatprep.mubr.f32.mxu1 %v915_v3  ;;  %v857_v4 = vld [vmem:[%s331_s10] ss:$16 sps:$4 sm:$0xff]   ;;  %v858_v5 = vld [vmem:[%s331_s10 + $0x8] ss:$16 sps:$4 sm:$0xff]   ;;  %vm544_vm1 = vcmask (%p359_p12), 7168   ;;  %v916_v20 = vmov (%p359_p12), 0.0  }
  0x2f   : > { %798 = vmatprep.subr.bf16.mxu0 %v853_v1  ;;  %v371_v6 = vld [vmem:[%s314_s16] sm:$0xf]  ;;  %802 = vmatprep.subr.bf16.mxu1 %v855_v2  ;;  %v369_v9 = vld [vmem:[#allocation2 + $0x10] sm:$0xff]  ;;  %v368_v10 = vld [vmem:[#allocation2 + $0x8] sm:$0xff]  ;;  %545 = vst.msk [vmem:[%s997_s24] sm:$0xff] (%p359_p12), %vm544_vm1, %v916_v20 }
  0x30   : > { %v372_v7 = vunpack.c.l.bf16 %v371_v6  ;;  %800 = vmatpush1.bf16.msra.mxu0 %v857_v4  ;;  %804 = vmatpush1.bf16.msra.mxu1 %v858_v5  ;;  %v367_v8 = vld [vmem:[#allocation2] sm:$0xff]  ;;  %v370_v11 = vld [vmem:[#allocation2 + $0x18] sm:$0xff]  ;;  %546 = vst.msk [vmem:[%s1002_s30] sm:$0xff] (%p359_p12), %vm544_vm1, %v916_v20 }
  0x33   : > { %784 = vmatmul.mubr.msk.f32.vlgmr.msra.gmra.mrb[0].mxu0 %vm385_vm0, %v372_v7  ;;  %785 = vmatmul.mubr.msk.f32.vlgmr.msra.gmra.mrb[0].mxu1 %vm385_vm0, %v372_v7 }
 0x104   : > { %543 = sbr.rel (!%p359_p12) target bundleno = 267 (0x10b), region = 36 }
 0x106   : > { %v455_v12 = vpop.f32.mrb[0].mxu0  ;;  %v526_v13 = vpop.f32.mrb[0].mxu1 }
 0x107   : > { %v531_v14 = vadd.f32 %v455_v12, %v367_v8  ;;  %v533_v15 = vadd.f32 %v526_v13, %v369_v9  ;;  %v457_v16 = vpop.f32.mrb[1].mxu0  ;;  %v528_v17 = vpop.f32.mrb[1].mxu1 }
 0x108   : > { %v532_v18 = vadd.f32 %v457_v16, %v368_v10  ;;  %v534_v19 = vadd.f32 %v528_v17, %v370_v11 }
 0x109   : > { %535 = vst [vmem:[#allocation2] sm:$0xff] %v531_v14  ;;  %537 = vst [vmem:[#allocation2 + $0x10] sm:$0xff] %v533_v15 }
 0x10a   : > { %536 = vst [vmem:[#allocation2 + $0x8] sm:$0xff] %v532_v18  ;;  %538 = vst [vmem:[#allocation2 + $0x18] sm:$0xff] %v534_v19 }
 0x10b PF: > { %p787_p1 = scmp.ne.s32.totalorder %s895_s23, 3 }
 0x10c   : > { %v573_v37 = vld [vmem:[%s997_s24] sm:$0xff] (!%p787_p1)  ;;  %vm580_vm2 = vcmask (!%p787_p1), 7168  }
 0x10d   : > { %550 = sbr.rel (%p787_p1) target bundleno = 429 (0x1ad), region = 40  ;;  %v582_v40 = vld [vmem:[%s1002_s30] sm:$0xff] (!%p787_p1) }
 0x110   : > { %v551_v21 = vld [vmem:[#allocation2] sm:$0xff] (!%p787_p1)  ;;  %v553_v23 = vld [vmem:[#allocation2 + $0x10] sm:$0xff] (!%p787_p1) }
 0x111   : > { %v552_v22 = vld [vmem:[#allocation2 + $0x8] sm:$0xff] (!%p787_p1)  ;;  %v554_v24 = vld [vmem:[#allocation2 + $0x18] sm:$0xff] (!%p787_p1)  ;;  %v583_v27 = vmul.f32 (!%p787_p1), %v551_v21, %v551_v21  ;;  %v585_v30 = vmul.f32 (!%p787_p1), %v553_v23, %v553_v23 }
 0x112   : > { %v574_v25 = vadd.f32 (!%p787_p1), %v552_v22, %v551_v21  ;;  %v795_v26 = vpack.c.bf16 (!%p787_p1), %v552_v22, %v551_v21  ;;  %v584_v28 = vmul.f32 (!%p787_p1), %v552_v22, %v552_v22  ;;  %v796_v29 = vpack.c.bf16 (!%p787_p1), %v554_v24, %v553_v23 }
 0x113   : > { %v586_v32 = vmul.f32 (!%p787_p1), %v554_v24, %v554_v24 }
 0x114   : > { %v575_v31 = vadd.f32 %v574_v25, %v553_v23  ;;  %571 = vst [vmem:[%s992_s22] sm:$0xff] %v795_v26  ;;  %v587_v33 = vadd.f32 %v584_v28, %v583_v27  ;;  %572 = vst [vmem:[%s992_s22 + $0x8] sm:$0xff] %v796_v29 }
 0x116   : > { %v576_v34 = vadd.f32 %v575_v31, %v554_v24  ;;  %v588_v35 = vadd.f32 %v587_v33, %v585_v30 }
 0x118   : > { %577 = vadd.xlane.f32.xlu0 %v576_v34  ;;  %v589_v36 = vadd.f32 %v588_v35, %v586_v32 }
 0x11c   : > { %590 = vadd.xlane.f32.xlu0 %v589_v36 }
 0x1a5   : > { %v578_v38 = vpop.xlane.xlu0 %577 }
 0x1a6   : > { %v579_v39 = vadd.f32 %v578_v38, %v573_v37 }
 0x1a8   : > { %581 = vst.msk [vmem:[%s997_s24] sm:$0xff] %vm580_vm2, %v579_v39 }
 0x1a9   : > { %v591_v41 = vpop.xlane.xlu0 %590 }
 0x1aa   : > { %v592_v42 = vadd.f32 %v591_v41, %v582_v40 }
 0x1ac   : > { %593 = vst.msk [vmem:[%s1002_s30] sm:$0xff] %vm580_vm2, %v592_v42 }
 0x1ad PF: > { %s22_s26 = sadd.s32 1, %s911_s26   ;;  %s1043_s27 = sld [smem:[#allocation6_spill]] }
 0x1ae   : > { %p19_p2 = scmp.ge.s32.totalorder %s22_s26, 18   ;;  %s1044_s28 = sld [smem:[#allocation7_spill]] }
 0x1af   : > { %s1045_s23 = smov %s903_s25  ;;  %s1046_s24 = smov %s907_s0 }
 0x1b0   :  { %21 = sbr.rel (!%p19_p2) target bundleno = 18 (0x12), region = 97 }
 0x1b3   : > { %s1047_s25 = smov %s1043_s27 }
 0x1b4   : > { %s1048_s0 = smov %s1044_s28 }

// kernel: generator_forward.19
= control target key start
LH: loop header
LB: loop body
LE: loop exit
PB: predicated region body
PF: predicated region fallthrough
CT: control target
= control target key end

     0   :  { %s550_s12 = smov 0   ;;  %s552_s13 = smov 0   ;;  %s664_s0 = inlined_call_operand.vmem [shape: bf16[4,3,2048], index: 0, kind: input, shape index: {}]   ;;  %s665_s1 = inlined_call_operand.vmem [shape: f32[3,1], index: 1, kind: input, shape index: {}]   ;;  %s666_s2 = inlined_call_operand.vmem [shape: f32[3,1], index: 2, kind: input, shape index: {}]   ;;  %s667_s3 = inlined_call_operand.vmem [shape: f32[4,3,2048], index: 3, kind: output, shape index: {}]  }
   0x1   :  { %s554_s14 = smov 0  }
   0x2 LB: > { %s428_s15 = sadd.s32 4294967295, %s526_s14   ;;  %s567_s16 = sadd.s32 1, %s526_s14   ;;  %s526_s14 = sphi %s554_s14, %s671_s14   ;;  %s522_s13 = sphi %s552_s13, %s670_s13   ;;  %s518_s12 = sphi %s550_s12, %s669_s12  }
   0x3   : > { %s17_s17 = ssub.s32 %s526_s14, %s567_s16  ;;  %s20_s18 = sadd.s32 1, %s522_s13 }
   0x4   : > { %p18_p0 = scmp.eq.s32.totalorder %s17_s17, 0  ;;  %p27_p1 = scmp.ne.s32.totalorder %s522_s13, %s518_s12 }
   0x5   : > { %p28_p2 = scmp.eq.s32.totalorder %s526_s14, 0  ;;  %p99_p3 = scmp.eq.s32.totalorder %s428_s15, 1 }
   0x6   : > { %s578_s19 = scalar_select %p18_p0, %s522_s13, %s20_s18  }
   0x7   : > { %p29_p4 = por %p28_p2, %p27_p1  ;;  %p580_p5 = por %p99_p3, %p27_p1 }
   0x8   : > { %p431_p6 = scmp.ge.s32.totalorder %s526_s14, 2 }
   0xa   : > { %127 = sbr.rel (%p431_p6) target bundleno = 25 (0x19), region = 24 }
  0x11   : > { %130 = sbr.rel (!%p29_p4) target bundleno = 25 (0x19), region = 28  ;;  %s132_s21 = sand.u32 (%p29_p4), 1, %s522_s13  }
  0x12   : > { %s443_s22 = sshll.u32 (%p29_p4), %s526_s14, 4  ;;  %s432_s23 = sshll.u32 (%p29_p4), %s132_s21, 6 }
  0x13   : > { %s137_s26 = scalar_lea.vmem (%p29_p4), %s664_s0, %s443_s22  ;;  %s134_s27 = scalar_lea.vmem (%p29_p4), [#allocation2], %s432_s23 }
  0x14   : > { %v150_v0 = vld [vmem:[%s137_s26] sm:$0xff] (%p29_p4)  ;;  %v152_v1 = vld [vmem:[%s137_s26 + $0x8] sm:$0xff] (%p29_p4) }
  0x15   : > { %v154_v2 = vld [vmem:[%s137_s26 + $0x20] sm:$0xff] (%p29_p4)  ;;  %151 = vst [vmem:[%s134_s27] sm:$0xff] (%p29_p4), %v150_v0  ;;  %153 = vst [vmem:[%s134_s27 + $0x8] sm:$0xff] (%p29_p4), %v152_v1  ;;  %v156_v3 = vld [vmem:[%s137_s26 + $0x28] sm:$0xff] (%p29_p4) }
  0x16   : > { %155 = vst [vmem:[%s134_s27 + $0x10] sm:$0xff] (%p29_p4), %v154_v2  ;;  %v158_v4 = vld [vmem:[%s137_s26 + $0x40] sm:$0xff] (%p29_p4)  ;;  %v160_v5 = vld [vmem:[%s137_s26 + $0x48] sm:$0xff] (%p29_p4)  ;;  %157 = vst [vmem:[%s134_s27 + $0x18] sm:$0xff] (%p29_p4), %v156_v3 }
  0x17   : > { %159 = vst [vmem:[%s134_s27 + $0x20] sm:$0xff] (%p29_p4), %v158_v4  ;;  %161 = vst [vmem:[%s134_s27 + $0x28] sm:$0xff] (%p29_p4), %v160_v5  ;;  %v162_v6 = vld [vmem:[%s137_s26 + $0x60] sm:$0xff] (%p29_p4)  ;;  %v164_v7 = vld [vmem:[%s137_s26 + $0x68] sm:$0xff] (%p29_p4) }
  0x18   : > { %163 = vst [vmem:[%s134_s27 + $0x30] sm:$0xff] %v162_v6  ;;  %165 = vst [vmem:[%s134_s27 + $0x38] sm:$0xff] %v164_v7 }
  0x19 PF: > { %p435_p7 = scmp.ge.s32.totalorder %s526_s14, 1  ;;  %p170_p8 = scmp.lt.s32.totalorder %s526_s14, 3 }
  0x1b   : > { %p171_p9 = pnand %p435_p7, %p170_p8 }
  0x1c   : > { %v225_v8 = vld [vmem:[%s665_s1] sm:$0x7] (!%p171_p9)  ;;  %v528_v9 = vmov (!%p171_p9), 0   ;;  %v529_v11 = vmov (!%p171_p9), 839922192   ;;  %v233_v13 = vlaneseq (!%p171_p9)  ;;  %s177_s5 = sand.u32 (!%p171_p9), 1, %s518_s12  }
  0x1d   : > { %174 = sbr.rel (%p171_p9) target bundleno = 201 (0xc9), region = 51  ;;  %471 = vset.pattern.permute.xlu0 (!%p171_p9), %v528_v9  ;;  %v254_v10 = vld [vmem:[%s666_s2] sm:$0x7] (!%p171_p9)  ;;  %v231_v12 = vunpack.c.l.s4 (!%p171_p9), %v529_v11  ;;  %s436_s6 = sshll.u32 (!%p171_p9), %s177_s5, 6 }
  0x1e   : > { %228 = vperm.xlu0 (!%p171_p9), %471, %v225_v8   ;;  %v234_v15 = vshrl.u32 (!%p171_p9), %v233_v13, 7  ;;  %s601_s7 = scalar_lea.vmem (!%p171_p9), [#allocation2], %s436_s6  ;;  %s437_s8 = sshll.u32 (!%p171_p9), %s177_s5, 7 }
  0x1f   : > { %v232_v14 = vunpack.c.0.s8 (!%p171_p9), %v231_v12  ;;  %v201_v18 = vld [vmem:[%s601_s7] sm:$0xff] (!%p171_p9)  ;;  %v202_v19 = vld [vmem:[%s601_s7 + $0x8] sm:$0xff] (!%p171_p9)  ;;  %v203_v22 = vld [vmem:[%s601_s7 + $0x10] sm:$0xff] (!%p171_p9)  ;;  %s613_s9 = scalar_lea.vmem (!%p171_p9), [#allocation3], %s437_s8 }
  0x20   : > { %v209_v20 = vunpack.c.l.bf16 (!%p171_p9), %v201_v18  ;;  %v210_v23 = vunpack.c.h.bf16 (!%p171_p9), %v201_v18  ;;  %v211_v25 = vunpack.c.l.bf16 (!%p171_p9), %v202_v19  ;;  %v204_v26 = vld [vmem:[%s601_s7 + $0x18] sm:$0xff] (!%p171_p9)  ;;  %v212_v27 = vunpack.c.h.bf16 (!%p171_p9), %v202_v19  ;;  %v205_v31 = vld [vmem:[%s601_s7 + $0x20] sm:$0xff] (!%p171_p9)  ;;  %v206_v37 = vld [vmem:[%s601_s7 + $0x28] sm:$0xff] (!%p171_p9) }
  0x21   : > { %v235_v16 = vsub.s32 (!%p171_p9), %v232_v14, %v234_v15  ;;  %v213_v28 = vunpack.c.l.bf16 (!%p171_p9), %v203_v22  ;;  %v214_v32 = vunpack.c.h.bf16 (!%p171_p9), %v203_v22  ;;  %v215_v34 = vunpack.c.l.bf16 (!%p171_p9), %v204_v26  ;;  %v207_v44 = vld [vmem:[%s601_s7 + $0x30] sm:$0xff] (!%p171_p9)  ;;  %v208_v51 = vld [vmem:[%s601_s7 + $0x38] sm:$0xff] (!%p171_p9) }
  0x22   : > { %257 = vperm.xlu0 (!%p171_p9), %471, %v254_v10   ;;  %v216_v38 = vunpack.c.h.bf16 (!%p171_p9), %v204_v26  ;;  %v217_v41 = vunpack.c.l.bf16 (!%p171_p9), %v205_v31  ;;  %v218_v45 = vunpack.c.h.bf16 (!%p171_p9), %v205_v31  ;;  %v219_v48 = vunpack.c.l.bf16 (!%p171_p9), %v206_v37 }
  0x23   : > { %v220_v52 = vunpack.c.h.bf16 (!%p171_p9), %v206_v37  ;;  %v221_v55 = vunpack.c.l.bf16 (!%p171_p9), %v207_v44  ;;  %v222_v58 = vunpack.c.h.bf16 (!%p171_p9), %v207_v44  ;;  %v223_v61 = vunpack.c.l.bf16 (!%p171_p9), %v208_v51 }
  0x24   : > { %v224_v0 = vunpack.c.h.bf16 %v208_v51  ;;  %s444_s10 = sshll.u32 (%p580_p5), %s428_s15, 5 }
  0x25   : > { %s324_s17 = scalar_lea.vmem (%p580_p5), %s667_s3, %s444_s10 }
  0x9d   : > { %v229_v17 = vpop.permute.xlu0 %228 }
  0x9e   : > { %v236_v21 = vrot.slane %v229_v17, %v235_v16 }
  0xa0   : > { %v238_v29 = vmul.f32 %v236_v21, %v209_v20  ;;  %v239_v33 = vmul.f32 %v236_v21, %v210_v23  ;;  %v240_v35 = vmul.f32 %v236_v21, %v211_v25  ;;  %v241_v39 = vmul.f32 %v236_v21, %v212_v27 }
  0xa1   : > { %v258_v24 = vpop.permute.xlu0 %257  ;;  %v242_v42 = vmul.f32 %v236_v21, %v213_v28  ;;  %v243_v46 = vmul.f32 %v236_v21, %v214_v32  ;;  %v244_v49 = vmul.f32 %v236_v21, %v215_v34  ;;  %v245_v53 = vmul.f32 %v236_v21, %v216_v38 }
  0xa2   : > { %v265_v30 = vrot.slane %v258_v24, %v235_v16  ;;  %v246_v56 = vmul.f32 %v236_v21, %v217_v41  ;;  %v247_v59 = vmul.f32 %v236_v21, %v218_v45  ;;  %v248_v62 = vmul.f32 %v236_v21, %v219_v48 }
  0xa3   : > { %v249_v1 = vmul.f32 %v236_v21, %v220_v52  ;;  %v250_v3 = vmul.f32 %v236_v21, %v221_v55  ;;  %v251_v5 = vmul.f32 %v236_v21, %v222_v58  ;;  %v252_v7 = vmul.f32 %v236_v21, %v223_v61 }
  0xa4   : > { %v267_v36 = vadd.f32 %v265_v30, %v238_v29  ;;  %v268_v40 = vadd.f32 %v265_v30, %v239_v33  ;;  %v269_v43 = vadd.f32 %v265_v30, %v240_v35  ;;  %v270_v47 = vadd.f32 %v265_v30, %v241_v39 }
  0xa5   : > { %v271_v50 = vadd.f32 %v265_v30, %v242_v42  ;;  %v272_v54 = vadd.f32 %v265_v30, %v243_v46  ;;  %v273_v57 = vadd.f32 %v265_v30, %v244_v49  ;;  %v274_v60 = vadd.f32 %v265_v30, %v245_v53 }
  0xa6   : > { %472 = vtanh.f32 %v267_v36  ;;  %v275_v63 = vadd.f32 %v265_v30, %v246_v56  ;;  %v276_v2 = vadd.f32 %v265_v30, %v247_v59  ;;  %v277_v4 = vadd.f32 %v265_v30, %v248_v62 }
  0xa7   : > { %474 = vtanh.f32 %v268_v40  ;;  %v278_v6 = vadd.f32 %v265_v30, %v249_v1  ;;  %v279_v8 = vadd.f32 %v265_v30, %v250_v3  ;;  %v253_v9 = vmul.f32 %v236_v21, %v224_v0 }
  0xa8   : > { %476 = vtanh.f32 %v269_v43  ;;  %v280_v10 = vadd.f32 %v265_v30, %v251_v5  ;;  %v281_v12 = vadd.f32 %v265_v30, %v252_v7 }
  0xa9   : > { %478 = vtanh.f32 %v270_v47  ;;  %v282_v14 = vadd.f32 %v265_v30, %v253_v9 }
  0xaa   : > { %480 = vtanh.f32 %v271_v50 }
  0xab   : > { %482 = vtanh.f32 %v272_v54 }
  0xac   : > { %484 = vtanh.f32 %v273_v57 }
  0xad   : > { %486 = vtanh.f32 %v274_v60 }
  0xae   : > { %488 = vtanh.f32 %v275_v63 }
  0xaf   : > { %490 = vtanh.f32 %v276_v2 }
  0xb0   : > { %v473_v11 = vpop.eup %472  ;;  %492 = vtanh.f32 %v277_v4 }
  0xb1   : > { %v475_v13 = vpop.eup %474  ;;  %494 = vtanh.f32 %v278_v6  ;;  %299 = vst [vmem:[%s613_s9] sm:$0x77] %v473_v11 }
  0xb2   : > { %v477_v15 = vpop.eup %476  ;;  %496 = vtanh.f32 %v279_v8  ;;  %300 = vst [vmem:[%s613_s9 + $0x8] sm:$0x77] %v475_v13 }
  0xb3   : > { %v479_v16 = vpop.eup %478  ;;  %498 = vtanh.f32 %v280_v10  ;;  %301 = vst [vmem:[%s613_s9 + $0x10] sm:$0x77] %v477_v15 }
  0xb4   : > { %v481_v17 = vpop.eup %480  ;;  %500 = vtanh.f32 %v281_v12  ;;  %302 = vst [vmem:[%s613_s9 + $0x18] sm:$0x77] %v479_v16 }
  0xb5   : > { %v483_v18 = vpop.eup %482  ;;  %502 = vtanh.f32 %v282_v14  ;;  %303 = vst [vmem:[%s613_s9 + $0x20] sm:$0x77] %v481_v17 }
  0xb6   : > { %v485_v19 = vpop.eup %484  ;;  %304 = vst [vmem:[%s613_s9 + $0x28] sm:$0x77] %v483_v18 }
  0xb7   : > { %v487_v20 = vpop.eup %486  ;;  %305 = vst [vmem:[%s613_s9 + $0x30] sm:$0x77] %v485_v19 }
  0xb8   : > { %v489_v21 = vpop.eup %488  ;;  %306 = vst [vmem:[%s613_s9 + $0x38] sm:$0x77] %v487_v20  ;;  %v337_v29 = vld [vmem:[%s613_s9] sm:$0xff] (%p580_p5) }
  0xb9   : > { %v491_v22 = vpop.eup %490  ;;  %307 = vst [vmem:[%s613_s9 + $0x40] sm:$0x77] %v489_v21  ;;  %v339_v30 = vld [vmem:[%s613_s9 + $0x8] sm:$0xff] (%p580_p5)  ;;  %338 = vst [vmem:[%s324_s17] sm:$0xff] (%p580_p5), %v337_v29 }
  0xba   : > { %v493_v23 = vpop.eup %492  ;;  %308 = vst [vmem:[%s613_s9 + $0x48] sm:$0x77] %v491_v22  ;;  %321 = sbr.rel (!%p580_p5) target bundleno = 201 (0xc9), region = 59  ;;  %v341_v31 = vld [vmem:[%s613_s9 + $0x10] sm:$0xff] (%p580_p5)  ;;  %340 = vst [vmem:[%s324_s17 + $0x8] sm:$0xff] (%p580_p5), %v339_v30 }
  0xbb   : > { %v495_v24 = vpop.eup %494  ;;  %309 = vst [vmem:[%s613_s9 + $0x50] sm:$0x77] %v493_v23  ;;  %v343_v32 = vld [vmem:[%s613_s9 + $0x18] sm:$0xff] (%p580_p5)  ;;  %342 = vst [vmem:[%s324_s17 + $0x10] sm:$0xff] (%p580_p5), %v341_v31 }
  0xbc   : > { %v497_v25 = vpop.eup %496  ;;  %310 = vst [vmem:[%s613_s9 + $0x58] sm:$0x77] %v495_v24  ;;  %v345_v33 = vld [vmem:[%s613_s9 + $0x20] sm:$0xff] (%p580_p5)  ;;  %344 = vst [vmem:[%s324_s17 + $0x18] sm:$0xff] (%p580_p5), %v343_v32 }
  0xbd   : > { %v499_v26 = vpop.eup %498  ;;  %311 = vst [vmem:[%s613_s9 + $0x60] sm:$0x77] %v497_v25  ;;  %v347_v34 = vld [vmem:[%s613_s9 + $0x28] sm:$0xff] (%p580_p5)  ;;  %346 = vst [vmem:[%s324_s17 + $0x40] sm:$0xff] (%p580_p5), %v345_v33 }
  0xbe   : > { %v501_v27 = vpop.eup %500  ;;  %312 = vst [vmem:[%s613_s9 + $0x68] sm:$0x77] %v499_v26  ;;  %348 = vst [vmem:[%s324_s17 + $0x48] sm:$0xff] (%p580_p5), %v347_v34  ;;  %v349_v35 = vld [vmem:[%s613_s9 + $0x30] sm:$0xff] (%p580_p5) }
  0xbf   : > { %v503_v28 = vpop.eup %502  ;;  %313 = vst [vmem:[%s613_s9 + $0x70] sm:$0x77] %v501_v27  ;;  %v351_v36 = vld [vmem:[%s613_s9 + $0x38] sm:$0xff] (%p580_p5)  ;;  %350 = vst [vmem:[%s324_s17 + $0x50] sm:$0xff] (%p580_p5), %v349_v35 }
  0xc0   : > { %314 = vst [vmem:[%s613_s9 + $0x78] sm:$0x77] %v503_v28  ;;  %v353_v37 = vld [vmem:[%s613_s9 + $0x40] sm:$0xff] (%p580_p5)  ;;  %352 = vst [vmem:[%s324_s17 + $0x58] sm:$0xff] (%p580_p5), %v351_v36 }
  0xc1   : > { %354 = vst [vmem:[%s324_s17 + $0x80] sm:$0xff] %v353_v37  ;;  %v355_v38 = vld [vmem:[%s613_s9 + $0x48] sm:$0xff] }
  0xc2   : > { %v357_v39 = vld [vmem:[%s613_s9 + $0x50] sm:$0xff]  ;;  %356 = vst [vmem:[%s324_s17 + $0x88] sm:$0xff] %v355_v38 }
  0xc3   : > { %v359_v40 = vld [vmem:[%s613_s9 + $0x58] sm:$0xff]  ;;  %358 = vst [vmem:[%s324_s17 + $0x90] sm:$0xff] %v357_v39 }
  0xc4   : > { %360 = vst [vmem:[%s324_s17 + $0x98] sm:$0xff] %v359_v40  ;;  %v361_v41 = vld [vmem:[%s613_s9 + $0x60] sm:$0xff] }
  0xc5   : > { %v363_v42 = vld [vmem:[%s613_s9 + $0x68] sm:$0xff]  ;;  %362 = vst [vmem:[%s324_s17 + $0xc0] sm:$0xff] %v361_v41 }
  0xc6   : > { %v365_v43 = vld [vmem:[%s613_s9 + $0x70] sm:$0xff]  ;;  %364 = vst [vmem:[%s324_s17 + $0xc8] sm:$0xff] %v363_v42 }
  0xc7   : > { %366 = vst [vmem:[%s324_s17 + $0xd0] sm:$0xff] %v365_v43  ;;  %v367_v44 = vld [vmem:[%s613_s9 + $0x78] sm:$0xff] }
  0xc8   : > { %368 = vst [vmem:[%s324_s17 + $0xd8] sm:$0xff] %v367_v44 }
  0xc9 PF: > { %p10_p10 = scmp.ge.s32.totalorder %s567_s16, 4   ;;  %s669_s12 = smov %s522_s13 }
  0xca   : > { %s670_s13 = smov %s578_s19  ;;  %s671_s14 = smov %s567_s16 }
  0xcb   :  { %12 = sbr.rel (!%p10_p10) target bundleno = 2 (0x2), region = 113 }

// kernel: generator_forward.18
= control target key start
LH: loop header
LB: loop body
LE: loop exit
PB: predicated region body
PF: predicated region fallthrough
CT: control target
= control target key end

     0   :  { %s1117_s0 = inlined_call_operand.vmem [shape: s32[4,4], index: 0, kind: input, shape index: {}]   ;;  %s1118_s1 = inlined_call_operand.vmem [shape: bf16[4,4,3,8], index: 1, kind: input, shape index: {}]   ;;  %s1119_s2 = inlined_call_operand.vmem [shape: bf16[9,8,2048], index: 2, kind: input, shape index: {}]   ;;  %s1120_s3 = inlined_call_operand.vmem [shape: bf16[4,3,2048], index: 3, kind: output, shape index: {}]  }
   0x1   :  { %s8_s14 = sshll.u32 %s1117_s0, 4  ;;  %s9_s14 = int_to_ptr.vmem [resolvable:$true] %s8_s14 }
   0x2   :  { %s921_s15 = scalar_lea.vmem %s9_s14, 64  ;;  %p926_p1 = scmp.lt.s32.totalorder %s9_s14, %s9_s14 }
   0x3   :  { %p922_p0 = scmp.ne.s32.totalorder %s9_s14, %s921_s15  ;;  %p927_p2 = scmp.lt.s32.totalorder %s921_s15, %s921_s15 }
   0x5   :  { %p928_p3 = por %p927_p2, %p926_p1 }
   0x7   :  { %p929_p4 = pnand %p928_p3, %p922_p0 }
   0x9   :  { %932 = shalt.err (!%p929_p4)  }
   0xa   :  { %s991_s16 = smov [#allocation4]  }
   0xb   :  { %11 = dma.vmem_to_smem %s9_s14, 64, %s991_s16, [#allocation3] }
   0xc   :  { %961 = dma.done.wait [#allocation3], 64 }
   0xd   :  { %962 = vsyncadd [#allocation3], 4294967232 }
   0xe   :  { %13 = sfence }
   0xf   :  { %s1018_s17 = smov 0   ;;  %s1020_s18 = smov 0  }
  0x10   :  { %s1022_s19 = smov 0   ;;  %s1024_s0 = smov 0  }
  0x11   :  { %s1026_s20 = smov 0   ;;  %s1028_s21 = smov 0  }
  0x12   :  { %s1030_s22 = smov 0  }
  0x13 LB: > { %s31_s23 = sadd.s32 1, %s977_s0  ;;  %s34_s24 = sadd.s32 1, %s981_s20  ;;  %s989_s22 = sphi %s1030_s22, %s19_s22   ;;  %s985_s21 = sphi %s1028_s21, %s1132_s21   ;;  %s981_s20 = sphi %s1026_s20, %s1131_s20   ;;  %s977_s0 = sphi %s1024_s0, %s1130_s0   ;;  %s973_s19 = sphi %s1022_s19, %s1129_s19   ;;  %s969_s18 = sphi %s1020_s18, %s1128_s18   ;;  %s965_s17 = sphi %s1018_s17, %s1127_s17  }
  0x14   : > { %p32_p5 = scmp.ge.s32.totalorder %s31_s23, 4  ;;  %p835_p6 = scmp.ge.s32.totalorder %s989_s22, 1 }
  0x15   : > { %p194_p7 = scmp.lt.s32.totalorder %s989_s22, 33  ;;  %s38_s25 = sadd.s32 1, %s985_s21 }
  0x16   : > { %s1134_s23 = smov (%p32_p5, %s31_s23), 0  ;;  %s1136_s24 = smov (!%p32_p5, %s34_s24), %s981_s20 }
  0x17   : > { %p195_p8 = pnand %p835_p6, %p194_p7  ;;  %p36_p9 = scmp.ge.s32.totalorder %s1136_s24, 2 }
  0x18   : > { %p240_p11 = scmp.lt.s32.totalorder (!%p195_p8), %s973_s19, 3  ;;  %p242_p12 = scmp.lt.s32.totalorder (!%p195_p8), %s965_s17, 3 }
  0x19   : > { %s1138_s24 = smov (%p36_p9, %s1136_s24), 0  ;;  %s1140_s25 = smov (!%p36_p9, %s38_s25), %s985_s21 }
  0x1a   : > { %1121 = sst [smem:[#allocation6_spill]] %s1138_s24  ;;  %p40_p10 = scmp.ge.s32.totalorder %s1140_s25, 4 }
  0x1b   : > { %198 = sbr.rel (%p195_p8) target bundleno = 293 (0x125), region = 28  ;;  %s248_s26 = sshra.s32 (!%p195_p8), %s965_s17, 7 }
  0x1c   : > { %s1142_s25 = smov (%p40_p10, %s1140_s25), 0  ;;  %s253_s27 = sand.u32 (!%p195_p8), 127, %s965_s17 }
  0x1d   : > { %1122 = sst [smem:[#allocation7_spill]] %s1142_s25  ;;  %s250_s4 = sadd.s32 (!%p195_p8), %s973_s19, %s248_s26 }
  0x1e   : > { %s838_s6 = sshll.u32 (!%p195_p8), %s250_s4, 7  ;;  %s839_s13 = sshll.u32 (!%p195_p8), %s969_s18, 3 }
  0x1f   : > { %s254_s8 = sadd.s32 (!%p195_p8), %s838_s6, %s253_s27  ;;  %p259_p13 = scmp.lt.s32.totalorder (!%p195_p8), %s839_s13, 15 }
  0x20   : > { %s255_s12 = sld [smem:[#allocation4 + %s254_s8]] (!%p195_p8)  ;;  %p845_p1 = scmp.ne.s32.totalorder (!%p195_p8), %s965_s17, 0 }
  0x22   : > { %s241_s28 = scalar_select %p240_p11, %s973_s19, 3 }
  0x23   : > { %s243_s29 = scalar_select %p242_p12, %s965_s17, 3 }
  0x24   : > { %s836_s30 = sshll.u32 %s241_s28, 2  ;;  %s843_s14 = sshll.u32 %s241_s28, 4  ;;  %v992_v0 = vmov (!%p845_p1), 0.0  }
  0x25   : > { %s245_s5 = sadd.s32 %s836_s30, %s243_s29  ;;  %s1144_s13 = smov (!%p259_p13, %s839_s13), 15  ;;  %288 = vst [vmem:[#allocation2] sm:$0x77] (!%p845_p1), %v992_v0  ;;  %289 = vst [vmem:[#allocation2 + $0x8] sm:$0x77] (!%p845_p1), %v992_v0 }
  0x26   : > { %s837_s7 = sshll.u32 %s245_s5, 1  ;;  %p257_p0 = scmp.lt.s32.totalorder %s255_s12, 8  ;;  %290 = vst [vmem:[#allocation2 + $0x10] sm:$0x77] (!%p845_p1), %v992_v0  ;;  %291 = vst [vmem:[#allocation2 + $0x18] sm:$0x77] (!%p845_p1), %v992_v0 }
  0x27   : > { %s247_s11 = scalar_lea.vmem %s1118_s1, %s837_s7  ;;  %s280_s15 = sadd.s32 %s843_s14, %s1144_s13 }
  0x28   : > { %s844_s16 = sshll.u32 %s280_s15, 1  ;;  %s1146_s12 = smov (!%p257_p0, %s255_s12), 8 }
  0x29   : > { %s1075_s19 = scalar_lea.vmem %s1120_s3, %s844_s16  ;;  %s840_s26 = sshll.u32 %s1146_s12, 4 }
  0x2a   : > { %s262_s27 = sadd.s32 %s840_s26, %s1144_s13  ;;  %287 = sbr.rel (%p845_p1) target bundleno = 49 (0x31), region = 32 }
  0x2b   : > { %s841_s29 = sshll.u32 %s262_s27, 2 }
  0x2c   : > { %s264_s5 = scalar_lea.vmem %s1119_s2, %s841_s29 }
  0x31 PF: > { %v298_v1 = vld [vmem:[%s264_s5] sm:$0xff]  ;;  %v299_v2 = vld [vmem:[%s264_s5 + $0x8] sm:$0xff]  ;;  %v993_v7 = vmov 0.0   ;;  %v300_v9 = vld [vmem:[%s264_s5 + $0x10] sm:$0xff]  ;;  %vm310_vm0 = vcmask 64512   ;;  %p850_p2 = scmp.ne.s32.totalorder %s965_s17, 3 }
  0x32   : > { %v296_v3 = vld [vmem:[%s247_s11] sm:$0x3]  ;;  %v303_v4 = vunpack.c.h.bf16 %v298_v1  ;;  %v305_v5 = vunpack.c.h.bf16 %v299_v2  ;;  %v302_v6 = vunpack.c.l.bf16 %v298_v1  ;;  %378 = vmatprep.mubr.f32.mxu0 %v993_v7  ;;  %v304_v8 = vunpack.c.l.bf16 %v299_v2  ;;  %449 = vmatprep.mubr.f32.mxu1 %v993_v7  ;;  %v301_v10 = vld [vmem:[%s264_s5 + $0x18] sm:$0xff]  ;;  %v293_v20 = vld [vmem:[#allocation2 + $0x8] sm:$0x77] }
  0x33   : > { %v297_v11 = vunpack.c.l.bf16 %v296_v3  ;;  %v307_v12 = vunpack.c.h.bf16 %v300_v9  ;;  %v306_v13 = vunpack.c.l.bf16 %v300_v9  ;;  %v308_v14 = vunpack.c.l.bf16 %v301_v10  ;;  %v292_v18 = vld [vmem:[#allocation2] sm:$0x77]  ;;  %v294_v28 = vld [vmem:[#allocation2 + $0x10] sm:$0x77]  ;;  %v295_v30 = vld [vmem:[#allocation2 + $0x18] sm:$0x77] }
  0x34   : > { %314 = vmatprep.subr.mxu0 %v303_v4  ;;  %385 = vmatprep.subr.mxu1 %v305_v5  ;;  %v309_v15 = vunpack.c.h.bf16 %v301_v10  ;;  %v663_v38 = vlaneseq (!%p850_p2)  ;;  %v994_v41 = vmov (!%p850_p2), 1983009808   ;;  %vm694_vm1 = vcmask (!%p850_p2), 1041408   ;;  %v709_v57 = vld [vmem:[%s1075_s19] sm:$0xff] (!%p850_p2)  ;;  %v712_v61 = vld [vmem:[%s1075_s19 + $0x8] sm:$0xff] (!%p850_p2) }
  0x35   : > { %315 = vmatpush1.msra.mxu0 %v302_v6  ;;  %386 = vmatpush1.msra.mxu1 %v304_v8  ;;  %v661_v42 = vunpack.c.l.s4 (!%p850_p2), %v994_v41  ;;  %vm695_vm2 = vsmask.f32 (!%p850_p2), 1280  ;;  %vm697_vm3 = vcmask (!%p850_p2), 1043458   ;;  %vm698_vm4 = vsmask.f32 (!%p850_p2), 3328 }
  0x36   : > { %846 = vmatmul.mubr.msk.f32.vlgmr.msra.gmra.mrb[0].mxu0 %vm310_vm0, %v297_v11  ;;  %847 = vmatmul.mubr.msk.f32.vlgmr.msra.gmra.mrb[0].mxu1 %vm310_vm0, %v297_v11  ;;  %v664_v45 = vshrl.u32 (!%p850_p2), %v663_v38, 7  ;;  %vm1086_vm5 = vmand (!%p850_p2), %vm694_vm1, %vm695_vm2  ;;  %vm701_vm6 = vcmask (!%p850_p2), 1045508   ;;  %vm702_vm8 = vsmask.f32 (!%p850_p2), 5376  ;;  %vm705_vm10 = vcmask (!%p850_p2), 1047558  }
  0x37   : > { %456 = vmatprep.subr.mxu0 %v307_v12  ;;  %527 = vmatprep.subr.mxu1 %v309_v15  ;;  %v662_v48 = vunpack.c.0.s8 (!%p850_p2), %v661_v42  ;;  %vm699_vm7 = vmand (!%p850_p2), %vm697_vm3, %vm698_vm4  ;;  %vm706_vm11 = vsmask.f32 (!%p850_p2), 7424 }
  0x38   : > { %457 = vmatpush1.msra.mxu0 %v306_v13  ;;  %528 = vmatpush1.msra.mxu1 %v308_v14  ;;  %vm700_vm9 = vmor (!%p850_p2), %vm699_vm7, %vm1086_vm5 }
  0x39   : > { %520 = vmatprep.mubr.f32.mxu0 %v993_v7  ;;  %591 = vmatprep.mubr.f32.mxu1 %v993_v7  ;;  %v665_v51 = vsub.s32 (!%p850_p2), %v662_v48, %v664_v45  ;;  %vm703_vm12 = vmand (!%p850_p2), %vm701_vm6, %vm702_vm8 }
  0x3a   : > { %848 = vmatmul.mubr.msk.f32.vlgmr.msra.gmra.mrb[2].mxu0 %vm310_vm0, %v297_v11  ;;  %849 = vmatmul.mubr.msk.f32.vlgmr.msra.gmra.mrb[2].mxu1 %vm310_vm0, %v297_v11  ;;  %vm704_vm13 = vmor (!%p850_p2), %vm703_vm12, %vm700_vm9 }
  0x3b   : > { %vm707_vm14 = vmand (!%p850_p2), %vm705_vm10, %vm706_vm11 }
  0x3c   : > { %vm708_vm15 = vmor (!%p850_p2), %vm707_vm14, %vm704_vm13 }
 0x109   : > { %v380_v16 = vpop.f32.mrb[0].mxu0  ;;  %v451_v17 = vpop.f32.mrb[0].mxu1 }
 0x10a   : > { %v382_v19 = vpop.f32.mrb[1].mxu0  ;;  %v453_v21 = vpop.f32.mrb[1].mxu1 }
 0x10b   : > { %v606_v22 = vcombine.low %v380_v16, %v382_v19  ;;  %v607_v23 = vcombine.low %v451_v17, %v453_v21 }
 0x10d   : > { %v614_v24 = vadd.f32 %v606_v22, %v292_v18  ;;  %v615_v25 = vadd.f32 %v607_v23, %v293_v20  ;;  %v522_v26 = vpop.f32.mrb[2].mxu0  ;;  %v593_v27 = vpop.f32.mrb[2].mxu1  ;;  %625 = sbr.rel (%p850_p2) target bundleno = 293 (0x125), region = 36 }
 0x10e   : > { %v524_v29 = vpop.f32.mrb[3].mxu0  ;;  %v595_v31 = vpop.f32.mrb[3].mxu1 }
 0x10f   : > { %618 = vst [vmem:[#allocation2] sm:$0x77] %v614_v24  ;;  %619 = vst [vmem:[#allocation2 + $0x8] sm:$0x77] %v615_v25  ;;  %v608_v32 = vcombine.low %v522_v26, %v524_v29  ;;  %v609_v33 = vcombine.low %v593_v27, %v595_v31 }
 0x111   : > { %v616_v34 = vadd.f32 %v608_v32, %v294_v28  ;;  %v617_v35 = vadd.f32 %v609_v33, %v295_v30 }
 0x113   : > { %620 = vst [vmem:[#allocation2 + $0x10] sm:$0x77] %v616_v34  ;;  %621 = vst [vmem:[#allocation2 + $0x18] sm:$0x77] %v617_v35 }
 0x116   : > { %v626_v36 = vld [vmem:[#allocation2] sm:$0x77]  ;;  %v627_v37 = vld [vmem:[#allocation2 + $0x8] sm:$0x77] }
 0x117   : > { %v634_v39 = vcombine.high %v626_v36, %v626_v36  ;;  %v635_v40 = vcombine.high %v627_v37, %v627_v37 }
 0x119   : > { %v851_v46 = vpack.c.bf16 %v634_v39, %v626_v36  ;;  %v852_v47 = vpack.c.bf16 %v635_v40, %v627_v37 }
 0x11a   : > { %v628_v43 = vld [vmem:[#allocation2 + $0x10] sm:$0x77]  ;;  %v629_v44 = vld [vmem:[#allocation2 + $0x18] sm:$0x77] }
 0x11b   : > { %v636_v50 = vcombine.high %v628_v43, %v628_v43  ;;  %v637_v52 = vcombine.high %v629_v44, %v629_v44  ;;  %v666_v54 = vrot.slane %v851_v46, %v665_v51  ;;  %v673_v55 = vrot.slane %v852_v47, %v665_v51 }
 0x11d   : > { %v853_v53 = vpack.c.bf16 %v636_v50, %v628_v43  ;;  %v854_v56 = vpack.c.bf16 %v637_v52, %v629_v44  ;;  %v674_v59 = vcombine.low %v666_v54, %v673_v55 }
 0x11f   : > { %v683_v58 = vrot.slane %v853_v53, %v665_v51  ;;  %v690_v60 = vrot.slane %v854_v56, %v665_v51  ;;  %v710_v62 = vsel %vm708_vm15, %v674_v59, %v709_v57 }
 0x120   : > { %711 = vst [vmem:[%s1075_s19] sm:$0xff] %v710_v62 }
 0x121   : > { %v691_v63 = vcombine.low %v683_v58, %v690_v60 }
 0x123   : > { %v713_v0 = vsel %vm708_vm15, %v691_v63, %v712_v61 }
 0x124   : > { %714 = vst [vmem:[%s1075_s19 + $0x8] sm:$0xff] %v713_v0 }
 0x125 PF: > { %s19_s22 = sadd.s32 1, %s989_s22   ;;  %s1125_s24 = sld [smem:[#allocation6_spill]] }
 0x126   : > { %p16_p3 = scmp.ge.s32.totalorder %s19_s22, 34   ;;  %s1126_s25 = sld [smem:[#allocation7_spill]] }
 0x127   : > { %s1127_s17 = smov %s977_s0  ;;  %s1128_s18 = smov %s981_s20 }
 0x128   : > { %s1129_s19 = smov %s985_s21  ;;  %s1130_s0 = smov %s1134_s23 }
 0x129   :  { %18 = sbr.rel (!%p16_p3) target bundleno = 19 (0x13), region = 69 }
 0x12b   : > { %s1131_s20 = smov %s1125_s24 }
 0x12c   : > { %s1132_s21 = smov %s1126_s25 }

</bundles_post_ra>
